<compile_context>
chip_gen: v6e
topology: v6e:2x2x1
jax: 0.10.0
libtpu: 0.0.40
codegen_flags: <defaults>
</compile_context>

<pallas_src>
import math

import jax
import jax.numpy as jnp
import numpy as np
from jax.experimental import pallas as pl
from jax.experimental.pallas import tpu as pltpu

# Make all dot_general (in-kernel MXU dots AND the XLA reference) true f32.
jax.config.update("jax_default_matmul_precision", "highest")

LN_EPS = 1e-5  # PyTorch nn.LayerNorm default eps


def _layernorm(x, g, b):
    m = jnp.mean(x, axis=-1, keepdims=True)
    v = jnp.mean(jnp.square(x - m), axis=-1, keepdims=True)
    return (x - m) * jax.lax.rsqrt(v + LN_EPS) * g + b


def _pick_batch_tile(B):
    """Largest power-of-two tile (<=8) dividing B, preferring >=2 grid steps so the
    'parallel' batch axis can be split across v7x's two TensorCores."""
    divs = [t for t in (8, 4, 2, 1) if B % t == 0]
    tb = divs[0]
    if B // tb < 2:
        for t in divs:
            if B // t >= 2:
                tb = t
                break
    return tb


def _make_kernel(n_layers, n_heads, hidden, tb, seq):
    hd = hidden // n_heads
    scale = 1.0 / math.sqrt(hd)
    rows = tb * seq

    def kernel(traj_ref, user_ref,
               w_in_ref, b_in_ref, w_o_ref, b_o_ref,
               ln1_g_ref, ln1_b_ref, ln2_g_ref, ln2_b_ref,
               w_f1_ref, b_f1_ref, w_f2_ref, b_f2_ref,
               w_pool_ref, b_pool_ref, pool_g_ref, pool_b_ref,
               attn_g_ref, attn_b_ref, user_g_ref, user_b_ref,
               out_ref):
        # Flatten the batch tile so every Linear/FFN is one (TB*S, .) MXU matmul.
        x2 = traj_ref[...].reshape(rows, hidden)                          # (TB*S, H)

        # ---- n_layers x nn.TransformerEncoderLayer (post-norm, ReLU, eval) ----
        for l in range(n_layers):                                         # unrolled
            qkv = jnp.dot(x2, w_in_ref[l],
                          preferred_element_type=jnp.float32) + b_in_ref[l]  # (TB*S, 3H)
            wo = w_o_ref[l]                                               # (H, H)
            attn2 = jnp.zeros((rows, hidden), jnp.float32)
            for h in range(n_heads):                                      # unrolled over heads
                lo, hi = h * hd, (h + 1) * hd
                qh = (qkv[:, lo:hi] * scale).reshape(tb, seq, hd)
                kh = qkv[:, hidden + lo:hidden + hi].reshape(tb, seq, hd)
                vh = qkv[:, 2 * hidden + lo:2 * hidden + hi].reshape(tb, seq, hd)
                # batched q @ k^T over the batch tile (no batch mixing)
                s = jnp.einsum('bqd,bkd->bqk', qh, kh,
                               preferred_element_type=jnp.float32)        # (TB, S, S)
                s = s - jnp.max(s, axis=-1, keepdims=True)
                p = jnp.exp(s)
                p = p / jnp.sum(p, axis=-1, keepdims=True)
                head = jnp.einsum('bqk,bkd->bqd', p, vh,
                                  preferred_element_type=jnp.float32)     # (TB, S, hd)
                # out_proj applied per head slice (== concat-then-project, no concat op)
                attn2 = attn2 + jnp.dot(head.reshape(rows, hd), wo[lo:hi, :],
                                        preferred_element_type=jnp.float32)
            attn2 = attn2 + b_o_ref[l]
            x2 = _layernorm(x2 + attn2, ln1_g_ref[l], ln1_b_ref[l])       # norm1(x + sa(x))
            ff = jnp.maximum(jnp.dot(x2, w_f1_ref[l],
                                     preferred_element_type=jnp.float32) + b_f1_ref[l], 0.0)
            ff = jnp.dot(ff, w_f2_ref[l],
                         preferred_element_type=jnp.float32) + b_f2_ref[l]
            x2 = _layernorm(x2 + ff, ln2_g_ref[l], ln2_b_ref[l])          # norm2(x + ff(x))

        # ---- attention pooling: Linear(H,1) -> LayerNorm(1) -> softmax over seq ----
        score = jnp.dot(x2, w_pool_ref[...],
                        preferred_element_type=jnp.float32) + b_pool_ref[...]  # (TB*S, 1)
        score = _layernorm(score, pool_g_ref[...], pool_b_ref[...])       # LayerNorm over size-1 dim
        score = score.reshape(tb, seq, 1)
        score = score - jnp.max(score, axis=1, keepdims=True)
        w = jnp.exp(score)
        w = w / jnp.sum(w, axis=1, keepdims=True)                         # softmax over seq
        x3 = x2.reshape(tb, seq, hidden)
        pooled = jnp.sum(w * x3, axis=1)                                  # (TB, H)

        pooled = _layernorm(pooled, attn_g_ref[...], attn_b_ref[...])     # attention_layer_norm
        out = _layernorm(pooled + user_ref[...].reshape(tb, hidden),      # + user_embedding
                         user_g_ref[...], user_b_ref[...])                # user_layer_norm
        out_ref[...] = out.reshape(tb, 1, hidden)

    return kernel


def feature_extractor_cold_forward(data, params, *, n_heads):
    """FeatureExtractorCold.forward for stage != 'pretrain'.

    data['poi']  : (B, S, n_levels) int32 hierarchical POI category indices
    data['user'] : (B, 1) int32 user ids
    Returns (B, H) float32 model_output.
    """
    # TODO(synk): stage == 'pretrain' selects rows with a boolean mask
    # (data-dependent shape); only the finetune/test path is implemented here.
    poi = data["poi"]
    user = data["user"]
    B, S, n_levels = poi.shape
    H = params["user_table"].shape[1]
    L = params["w_in"].shape[0]

    # --- embedding gathers (glue: one XLA gather per tiny table, feeds the fused kernel) ---
    traj = params["poi_tables"][0][poi[:, :, 0]]
    for i in range(1, n_levels):
        traj = traj + params["poi_tables"][i][poi[:, :, i]]
    traj = traj / float(n_levels)                                         # POIEmbedding
    user_emb = params["user_table"][user[:, 0]].reshape(B, 1, H)          # UserEmbedding (+squeeze(1))

    TB = _pick_batch_tile(B)
    kernel = _make_kernel(L, n_heads, H, TB, S)

    def _const_spec(a):  # full-array block, resident across the batch grid
        z = (0,) * a.ndim
        return pl.BlockSpec(a.shape, lambda b, _z=z: _z)

    weights = [params[k] for k in (
        "w_in", "b_in", "w_o", "b_o",
        "ln1_g", "ln1_b", "ln2_g", "ln2_b",
        "w_f1", "b_f1", "w_f2", "b_f2",
        "w_pool", "b_pool", "pool_g", "pool_b",
        "attn_g", "attn_b", "user_g", "user_b")]

    in_specs = ([pl.BlockSpec((TB, S, H), lambda b: (b, 0, 0)),
                 pl.BlockSpec((TB, 1, H), lambda b: (b, 0, 0))]
                + [_const_spec(w) for w in weights])

    out = pl.pallas_call(
        kernel,
        out_shape=jax.ShapeDtypeStruct((B, 1, H), jnp.float32),
        grid_spec=pltpu.PrefetchScalarGridSpec(
            num_scalar_prefetch=0,
            grid=(B // TB,),
            in_specs=in_specs,
            out_specs=pl.BlockSpec((TB, 1, H), lambda b: (b, 0, 0)),
        ),
        compiler_params=pltpu.CompilerParams(
            dimension_semantics=("parallel",)),   # batch axis -> both TCs on v7x
    )(traj, user_emb, *weights)
    return out.reshape(B, H)


# ------------------------- pure-JAX reference (PyTorch semantics) -------------------------
def _reference_forward(data, params, *, n_heads):
    poi, user = data["poi"], data["user"]
    B, S, n_levels = poi.shape
    H = params["user_table"].shape[1]
    L = params["w_in"].shape[0]
    hd = H // n_heads

    traj = sum(params["poi_tables"][i][poi[:, :, i]] for i in range(n_levels)) / float(n_levels)
    user_emb = params["user_table"][user[:, 0]]

    x = traj
    for l in range(L):
        qkv = x @ params["w_in"][l] + params["b_in"][l]
        q, k, v = qkv[..., :H], qkv[..., H:2 * H], qkv[..., 2 * H:]
        q = (q * (1.0 / math.sqrt(hd))).reshape(B, S, n_heads, hd).transpose(0, 2, 1, 3)
        k = k.reshape(B, S, n_heads, hd).transpose(0, 2, 1, 3)
        v = v.reshape(B, S, n_heads, hd).transpose(0, 2, 1, 3)
        s = jnp.einsum("bhqd,bhkd->bhqk", q, k)
        a = jax.nn.softmax(s, axis=-1)
        o = jnp.einsum("bhqk,bhkd->bhqd", a, v).transpose(0, 2, 1, 3).reshape(B, S, H)
        o = o @ params["w_o"][l] + params["b_o"][l]
        x = _layernorm(x + o, params["ln1_g"][l], params["ln1_b"][l])
        ff = jnp.maximum(x @ params["w_f1"][l] + params["b_f1"][l], 0.0)
        ff = ff @ params["w_f2"][l] + params["b_f2"][l]
        x = _layernorm(x + ff, params["ln2_g"][l], params["ln2_b"][l])

    score = x @ params["w_pool"] + params["b_pool"]
    score = _layernorm(score, params["pool_g"], params["pool_b"])
    w = jax.nn.softmax(score, axis=1)
    pooled = jnp.sum(w * x, axis=1)
    pooled = _layernorm(pooled, params["attn_g"], params["attn_b"])
    return _layernorm(pooled + user_emb, params["user_g"], params["user_b"])


def init_params(key, layer_count, user_count, hidden, n_enc_layers):
    H = hidden
    keys = iter(jax.random.split(key, 64))

    def rnd(shape, scale=0.1):
        return jax.random.normal(next(keys), shape, jnp.float32) * scale

    poi_tables = []
    for c in layer_count:
        t = rnd((c + 1, H))
        t = t.at[c].set(0.0)                 # nn.Embedding padding_idx row = 0
        poi_tables.append(t)

    return dict(
        poi_tables=poi_tables,
        user_table=rnd((user_count, H)),
        # transformer encoder layers (Linear weights pre-transposed to (in, out))
        w_in=rnd((n_enc_layers, H, 3 * H)), b_in=rnd((n_enc_layers, 1, 3 * H)),
        w_o=rnd((n_enc_layers, H, H)),      b_o=rnd((n_enc_layers, 1, H)),
        ln1_g=1.0 + rnd((n_enc_layers, 1, H)), ln1_b=rnd((n_enc_layers, 1, H)),
        w_f1=rnd((n_enc_layers, H, 4 * H)), b_f1=rnd((n_enc_layers, 1, 4 * H)),
        w_f2=rnd((n_enc_layers, 4 * H, H)), b_f2=rnd((n_enc_layers, 1, H)),
        ln2_g=1.0 + rnd((n_enc_layers, 1, H)), ln2_b=rnd((n_enc_layers, 1, H)),
        # attention_pooling = Linear(H, 1) + LayerNorm(1)
        w_pool=rnd((H, 1)), b_pool=rnd((1, 1)),
        pool_g=1.0 + rnd((1, 1)), pool_b=rnd((1, 1)),
        # attention_layer_norm / user_layer_norm
        attn_g=1.0 + rnd((1, H)), attn_b=rnd((1, H)),
        user_g=1.0 + rnd((1, H)), user_b=rnd((1, H)),
    )


if __name__ == "__main__":
    B, S, H = 4, 8, 32
    N_HEADS = 2
    N_ENC_LAYERS = 2
    LAYER_COUNT = [16, 24, 8]   # hierarchical POI category sizes
    USER_COUNT = 10             # `user_count` is an undefined global in the original module

    key = jax.random.PRNGKey(0)
    kp, kpoi, kuser = jax.random.split(key, 3)
    params = init_params(kp, LAYER_COUNT, USER_COUNT, H, N_ENC_LAYERS)

    poi = jnp.stack(
        [jax.random.randint(jax.random.fold_in(kpoi, i), (B, S), 0, c)
         for i, c in enumerate(LAYER_COUNT)], axis=-1).astype(jnp.int32)
    user = jax.random.randint(kuser, (B, 1), 0, USER_COUNT).astype(jnp.int32)
    data = {"poi": poi, "user": user}

    out = feature_extractor_cold_forward(data, params, n_heads=N_HEADS)
    out = jax.block_until_ready(out)

    ref = _reference_forward(data, params, n_heads=N_HEADS)
    np.testing.assert_allclose(np.asarray(out), np.asarray(ref), rtol=1e-2, atol=1e-2)

    print("KERNEL_OK")
</pallas_src>

<mosaic_0001>
module attributes {stable_mosaic.version = 11 : i64} {
  func.func @kernel(%arg0: i32, %arg1: memref<2x8x32xf32, #tpu.memory_space<vmem>>, %arg2: memref<2x1x32xf32, #tpu.memory_space<vmem>>, %arg3: memref<2x32x96xf32, #tpu.memory_space<vmem>>, %arg4: memref<2x1x96xf32, #tpu.memory_space<vmem>>, %arg5: memref<2x32x32xf32, #tpu.memory_space<vmem>>, %arg6: memref<2x1x32xf32, #tpu.memory_space<vmem>>, %arg7: memref<2x1x32xf32, #tpu.memory_space<vmem>>, %arg8: memref<2x1x32xf32, #tpu.memory_space<vmem>>, %arg9: memref<2x1x32xf32, #tpu.memory_space<vmem>>, %arg10: memref<2x1x32xf32, #tpu.memory_space<vmem>>, %arg11: memref<2x32x128xf32, #tpu.memory_space<vmem>>, %arg12: memref<2x1x128xf32, #tpu.memory_space<vmem>>, %arg13: memref<2x128x32xf32, #tpu.memory_space<vmem>>, %arg14: memref<2x1x32xf32, #tpu.memory_space<vmem>>, %arg15: memref<32x1xf32, #tpu.memory_space<vmem>>, %arg16: memref<1x1xf32, #tpu.memory_space<vmem>>, %arg17: memref<1x1xf32, #tpu.memory_space<vmem>>, %arg18: memref<1x1xf32, #tpu.memory_space<vmem>>, %arg19: memref<1x32xf32, #tpu.memory_space<vmem>>, %arg20: memref<1x32xf32, #tpu.memory_space<vmem>>, %arg21: memref<1x32xf32, #tpu.memory_space<vmem>>, %arg22: memref<1x32xf32, #tpu.memory_space<vmem>>, %arg23: memref<2x1x32xf32, #tpu.memory_space<vmem>>) attributes {dimension_semantics = [#tpu.dimension_semantics<parallel>], iteration_bounds = array<i64: 2>, scalar_prefetch = 0 : i64, scratch_operands = 0 : i64, tpu.core_type = #tpu.core_type<tc>, window_params = [{transform_indices = @transform_0, window_bounds = array<i64: 2, 8, 32>}, {transform_indices = @transform_1, window_bounds = array<i64: 2, 1, 32>}, {pipeline_mode = #tpu.pipeline_mode<synchronous>, transform_indices = @transform_2, window_bounds = array<i64: 2, 32, 96>}, {pipeline_mode = #tpu.pipeline_mode<synchronous>, transform_indices = @transform_3, window_bounds = array<i64: 2, 1, 96>}, {pipeline_mode = #tpu.pipeline_mode<synchronous>, transform_indices = @transform_4, window_bounds = array<i64: 2, 32, 32>}, {pipeline_mode = #tpu.pipeline_mode<synchronous>, transform_indices = @transform_5, window_bounds = array<i64: 2, 1, 32>}, {pipeline_mode = #tpu.pipeline_mode<synchronous>, transform_indices = @transform_6, window_bounds = array<i64: 2, 1, 32>}, {pipeline_mode = #tpu.pipeline_mode<synchronous>, transform_indices = @transform_7, window_bounds = array<i64: 2, 1, 32>}, {pipeline_mode = #tpu.pipeline_mode<synchronous>, transform_indices = @transform_8, window_bounds = array<i64: 2, 1, 32>}, {pipeline_mode = #tpu.pipeline_mode<synchronous>, transform_indices = @transform_9, window_bounds = array<i64: 2, 1, 32>}, {pipeline_mode = #tpu.pipeline_mode<synchronous>, transform_indices = @transform_10, window_bounds = array<i64: 2, 32, 128>}, {pipeline_mode = #tpu.pipeline_mode<synchronous>, transform_indices = @transform_11, window_bounds = array<i64: 2, 1, 128>}, {pipeline_mode = #tpu.pipeline_mode<synchronous>, transform_indices = @transform_12, window_bounds = array<i64: 2, 128, 32>}, {pipeline_mode = #tpu.pipeline_mode<synchronous>, transform_indices = @transform_13, window_bounds = array<i64: 2, 1, 32>}, {pipeline_mode = #tpu.pipeline_mode<synchronous>, transform_indices = @transform_14, window_bounds = array<i64: 32, 1>}, {pipeline_mode = #tpu.pipeline_mode<synchronous>, transform_indices = @transform_15, window_bounds = array<i64: 1, 1>}, {pipeline_mode = #tpu.pipeline_mode<synchronous>, transform_indices = @transform_16, window_bounds = array<i64: 1, 1>}, {pipeline_mode = #tpu.pipeline_mode<synchronous>, transform_indices = @transform_17, window_bounds = array<i64: 1, 1>}, {pipeline_mode = #tpu.pipeline_mode<synchronous>, transform_indices = @transform_18, window_bounds = array<i64: 1, 32>}, {pipeline_mode = #tpu.pipeline_mode<synchronous>, transform_indices = @transform_19, window_bounds = array<i64: 1, 32>}, {pipeline_mode = #tpu.pipeline_mode<synchronous>, transform_indices = @transform_20, window_bounds = array<i64: 1, 32>}, {pipeline_mode = #tpu.pipeline_mode<synchronous>, transform_indices = @transform_21, window_bounds = array<i64: 1, 32>}, {transform_indices = @transform_22, window_bounds = array<i64: 2, 1, 32>}]} {
    %c0 = arith.constant 0 : index
    %c0_0 = arith.constant 0 : index
    %c0_1 = arith.constant 0 : index
    %0 = vector.load %arg1[%c0, %c0_0, %c0_1] : memref<2x8x32xf32, #tpu.memory_space<vmem>>, vector<2x8x32xf32>
    %1 = vector.shape_cast %0 : vector<2x8x32xf32> to vector<16x32xf32>
    %c0_2 = arith.constant 0 : index
    %c0_3 = arith.constant 0 : index
    %c0_4 = arith.constant 0 : index
    %2 = vector.load %arg3[%c0_2, %c0_3, %c0_4] : memref<2x32x96xf32, #tpu.memory_space<vmem>>, vector<1x32x96xf32>
    %3 = vector.shape_cast %2 : vector<1x32x96xf32> to vector<32x96xf32>
    %cst = arith.constant dense<0.000000e+00> : vector<16x96xf32>
    %4 = tpu.matmul %1, %3, %cst {dimension_numbers = #tpu.dot_dimension_numbers<[1], [0], [0], [1], [0, 0, 1, 1], [], []>, precision = #tpu.contract_precision<fp32>} : vector<16x32xf32>, vector<32x96xf32>, vector<16x96xf32> -> vector<16x96xf32>
    %c0_5 = arith.constant 0 : index
    %c0_6 = arith.constant 0 : index
    %c0_7 = arith.constant 0 : index
    %5 = vector.load %arg4[%c0_5, %c0_6, %c0_7] : memref<2x1x96xf32, #tpu.memory_space<vmem>>, vector<1x1x96xf32>
    %6 = vector.shape_cast %5 : vector<1x1x96xf32> to vector<1x96xf32>
    %7 = vector.broadcast %6 : vector<1x96xf32> to vector<16x96xf32>
    %8 = arith.addf %4, %7 : vector<16x96xf32>
    %c0_8 = arith.constant 0 : index
    %c0_9 = arith.constant 0 : index
    %c0_10 = arith.constant 0 : index
    %9 = vector.load %arg5[%c0_8, %c0_9, %c0_10] : memref<2x32x32xf32, #tpu.memory_space<vmem>>, vector<1x32x32xf32>
    %10 = vector.shape_cast %9 : vector<1x32x32xf32> to vector<32x32xf32>
    %cst_11 = arith.constant 0.000000e+00 : f32
    %11 = vector.broadcast %cst_11 : f32 to vector<16x32xf32>
    %12 = vector.extract_strided_slice %8 {offsets = [0, 0], sizes = [16, 16], strides = [1, 1]} : vector<16x96xf32> to vector<16x16xf32>
    %cst_12 = arith.constant 2.500000e-01 : f32
    %13 = vector.broadcast %cst_12 : f32 to vector<16x16xf32>
    %14 = arith.mulf %12, %13 : vector<16x16xf32>
    %15 = vector.shape_cast %14 : vector<16x16xf32> to vector<2x8x16xf32>
    %16 = vector.extract_strided_slice %8 {offsets = [0, 32], sizes = [16, 16], strides = [1, 1]} : vector<16x96xf32> to vector<16x16xf32>
    %17 = vector.shape_cast %16 : vector<16x16xf32> to vector<2x8x16xf32>
    %18 = vector.extract_strided_slice %8 {offsets = [0, 64], sizes = [16, 16], strides = [1, 1]} : vector<16x96xf32> to vector<16x16xf32>
    %19 = vector.shape_cast %18 : vector<16x16xf32> to vector<2x8x16xf32>
    "tpu.trace_start"() <{level = 10 : i32, message = "bqd,bkd->bqk"}> : () -> ()
    %cst_13 = arith.constant dense<0.000000e+00> : vector<2x8x8xf32>
    %20 = tpu.matmul %15, %17, %cst_13 {dimension_numbers = #tpu.dot_dimension_numbers<[2], [2], [1], [1], [0, 0, 0, 1, 1, 1], [0], [0]>, precision = #tpu.contract_precision<fp32>} : vector<2x8x16xf32>, vector<2x8x16xf32>, vector<2x8x8xf32> -> vector<2x8x8xf32>
    "tpu.trace_stop"() : () -> ()
    %cst_14 = arith.constant dense<0xFF800000> : vector<2x8xf32>
    %21 = vector.multi_reduction <maximumf>, %20, %cst_14 [2] : vector<2x8x8xf32> to vector<2x8xf32>
    %22 = vector.shape_cast %21 : vector<2x8xf32> to vector<2x8x1xf32>
    %23 = vector.broadcast %22 : vector<2x8x1xf32> to vector<2x8x8xf32>
    %24 = arith.subf %20, %23 : vector<2x8x8xf32>
    %25 = math.exp %24 : vector<2x8x8xf32>
    %cst_15 = arith.constant dense<0.000000e+00> : vector<2x8xf32>
    %26 = vector.multi_reduction <add>, %25, %cst_15 [2] : vector<2x8x8xf32> to vector<2x8xf32>
    %27 = vector.shape_cast %26 : vector<2x8xf32> to vector<2x8x1xf32>
    %28 = vector.broadcast %27 : vector<2x8x1xf32> to vector<2x8x8xf32>
    %29 = arith.divf %25, %28 : vector<2x8x8xf32>
    "tpu.trace_start"() <{level = 10 : i32, message = "bqk,bkd->bqd"}> : () -> ()
    %cst_16 = arith.constant dense<0.000000e+00> : vector<2x8x16xf32>
    %30 = tpu.matmul %29, %19, %cst_16 {dimension_numbers = #tpu.dot_dimension_numbers<[2], [1], [1], [2], [0, 0, 0, 1, 1, 2], [0], [0]>, precision = #tpu.contract_precision<fp32>} : vector<2x8x8xf32>, vector<2x8x16xf32>, vector<2x8x16xf32> -> vector<2x8x16xf32>
    "tpu.trace_stop"() : () -> ()
    %31 = vector.shape_cast %30 : vector<2x8x16xf32> to vector<16x16xf32>
    %32 = vector.extract_strided_slice %10 {offsets = [0, 0], sizes = [16, 32], strides = [1, 1]} : vector<32x32xf32> to vector<16x32xf32>
    %cst_17 = arith.constant dense<0.000000e+00> : vector<16x32xf32>
    %33 = tpu.matmul %31, %32, %cst_17 {dimension_numbers = #tpu.dot_dimension_numbers<[1], [0], [0], [1], [0, 0, 1, 1], [], []>, precision = #tpu.contract_precision<fp32>} : vector<16x16xf32>, vector<16x32xf32>, vector<16x32xf32> -> vector<16x32xf32>
    %34 = arith.addf %11, %33 : vector<16x32xf32>
    %35 = vector.extract_strided_slice %8 {offsets = [0, 16], sizes = [16, 16], strides = [1, 1]} : vector<16x96xf32> to vector<16x16xf32>
    %cst_18 = arith.constant 2.500000e-01 : f32
    %36 = vector.broadcast %cst_18 : f32 to vector<16x16xf32>
    %37 = arith.mulf %35, %36 : vector<16x16xf32>
    %38 = vector.shape_cast %37 : vector<16x16xf32> to vector<2x8x16xf32>
    %39 = vector.extract_strided_slice %8 {offsets = [0, 48], sizes = [16, 16], strides = [1, 1]} : vector<16x96xf32> to vector<16x16xf32>
    %40 = vector.shape_cast %39 : vector<16x16xf32> to vector<2x8x16xf32>
    %41 = vector.extract_strided_slice %8 {offsets = [0, 80], sizes = [16, 16], strides = [1, 1]} : vector<16x96xf32> to vector<16x16xf32>
    %42 = vector.shape_cast %41 : vector<16x16xf32> to vector<2x8x16xf32>
    "tpu.trace_start"() <{level = 10 : i32, message = "bqd,bkd->bqk"}> : () -> ()
    %cst_19 = arith.constant dense<0.000000e+00> : vector<2x8x8xf32>
    %43 = tpu.matmul %38, %40, %cst_19 {dimension_numbers = #tpu.dot_dimension_numbers<[2], [2], [1], [1], [0, 0, 0, 1, 1, 1], [0], [0]>, precision = #tpu.contract_precision<fp32>} : vector<2x8x16xf32>, vector<2x8x16xf32>, vector<2x8x8xf32> -> vector<2x8x8xf32>
    "tpu.trace_stop"() : () -> ()
    %cst_20 = arith.constant dense<0xFF800000> : vector<2x8xf32>
    %44 = vector.multi_reduction <maximumf>, %43, %cst_20 [2] : vector<2x8x8xf32> to vector<2x8xf32>
    %45 = vector.shape_cast %44 : vector<2x8xf32> to vector<2x8x1xf32>
    %46 = vector.broadcast %45 : vector<2x8x1xf32> to vector<2x8x8xf32>
    %47 = arith.subf %43, %46 : vector<2x8x8xf32>
    %48 = math.exp %47 : vector<2x8x8xf32>
    %cst_21 = arith.constant dense<0.000000e+00> : vector<2x8xf32>
    %49 = vector.multi_reduction <add>, %48, %cst_21 [2] : vector<2x8x8xf32> to vector<2x8xf32>
    %50 = vector.shape_cast %49 : vector<2x8xf32> to vector<2x8x1xf32>
    %51 = vector.broadcast %50 : vector<2x8x1xf32> to vector<2x8x8xf32>
    %52 = arith.divf %48, %51 : vector<2x8x8xf32>
    "tpu.trace_start"() <{level = 10 : i32, message = "bqk,bkd->bqd"}> : () -> ()
    %cst_22 = arith.constant dense<0.000000e+00> : vector<2x8x16xf32>
    %53 = tpu.matmul %52, %42, %cst_22 {dimension_numbers = #tpu.dot_dimension_numbers<[2], [1], [1], [2], [0, 0, 0, 1, 1, 2], [0], [0]>, precision = #tpu.contract_precision<fp32>} : vector<2x8x8xf32>, vector<2x8x16xf32>, vector<2x8x16xf32> -> vector<2x8x16xf32>
    "tpu.trace_stop"() : () -> ()
    %54 = vector.shape_cast %53 : vector<2x8x16xf32> to vector<16x16xf32>
    %55 = vector.extract_strided_slice %10 {offsets = [16, 0], sizes = [16, 32], strides = [1, 1]} : vector<32x32xf32> to vector<16x32xf32>
    %cst_23 = arith.constant dense<0.000000e+00> : vector<16x32xf32>
    %56 = tpu.matmul %54, %55, %cst_23 {dimension_numbers = #tpu.dot_dimension_numbers<[1], [0], [0], [1], [0, 0, 1, 1], [], []>, precision = #tpu.contract_precision<fp32>} : vector<16x16xf32>, vector<16x32xf32>, vector<16x32xf32> -> vector<16x32xf32>
    %57 = arith.addf %34, %56 : vector<16x32xf32>
    %c0_24 = arith.constant 0 : index
    %c0_25 = arith.constant 0 : index
    %c0_26 = arith.constant 0 : index
    %58 = vector.load %arg6[%c0_24, %c0_25, %c0_26] : memref<2x1x32xf32, #tpu.memory_space<vmem>>, vector<1x1x32xf32>
    %59 = vector.shape_cast %58 : vector<1x1x32xf32> to vector<1x32xf32>
    %60 = vector.broadcast %59 : vector<1x32xf32> to vector<16x32xf32>
    %61 = arith.addf %57, %60 : vector<16x32xf32>
    %62 = arith.addf %1, %61 : vector<16x32xf32>
    %c0_27 = arith.constant 0 : index
    %c0_28 = arith.constant 0 : index
    %c0_29 = arith.constant 0 : index
    %63 = vector.load %arg7[%c0_27, %c0_28, %c0_29] : memref<2x1x32xf32, #tpu.memory_space<vmem>>, vector<1x1x32xf32>
    %64 = vector.shape_cast %63 : vector<1x1x32xf32> to vector<1x32xf32>
    %c0_30 = arith.constant 0 : index
    %c0_31 = arith.constant 0 : index
    %c0_32 = arith.constant 0 : index
    %65 = vector.load %arg8[%c0_30, %c0_31, %c0_32] : memref<2x1x32xf32, #tpu.memory_space<vmem>>, vector<1x1x32xf32>
    %66 = vector.shape_cast %65 : vector<1x1x32xf32> to vector<1x32xf32>
    %cst_33 = arith.constant dense<0.000000e+00> : vector<16xf32>
    %67 = vector.multi_reduction <add>, %62, %cst_33 [1] : vector<16x32xf32> to vector<16xf32>
    %68 = vector.shape_cast %67 : vector<16xf32> to vector<16x1xf32>
    %cst_34 = arith.constant 3.200000e+01 : f32
    %69 = vector.broadcast %cst_34 : f32 to vector<16x1xf32>
    %70 = arith.divf %68, %69 : vector<16x1xf32>
    %71 = vector.broadcast %70 : vector<16x1xf32> to vector<16x32xf32>
    %72 = arith.subf %62, %71 : vector<16x32xf32>
    %73 = arith.mulf %72, %72 : vector<16x32xf32>
    %cst_35 = arith.constant dense<0.000000e+00> : vector<16xf32>
    %74 = vector.multi_reduction <add>, %73, %cst_35 [1] : vector<16x32xf32> to vector<16xf32>
    %75 = vector.shape_cast %74 : vector<16xf32> to vector<16x1xf32>
    %cst_36 = arith.constant 3.200000e+01 : f32
    %76 = vector.broadcast %cst_36 : f32 to vector<16x1xf32>
    %77 = arith.divf %75, %76 : vector<16x1xf32>
    %78 = vector.broadcast %70 : vector<16x1xf32> to vector<16x32xf32>
    %79 = arith.subf %62, %78 : vector<16x32xf32>
    %cst_37 = arith.constant 9.99999974E-6 : f32
    %80 = vector.broadcast %cst_37 : f32 to vector<16x1xf32>
    %81 = arith.addf %77, %80 : vector<16x1xf32>
    %82 = math.rsqrt %81 : vector<16x1xf32>
    %83 = vector.broadcast %82 : vector<16x1xf32> to vector<16x32xf32>
    %84 = arith.mulf %79, %83 : vector<16x32xf32>
    %85 = vector.broadcast %64 : vector<1x32xf32> to vector<16x32xf32>
    %86 = arith.mulf %84, %85 : vector<16x32xf32>
    %87 = vector.broadcast %66 : vector<1x32xf32> to vector<16x32xf32>
    %88 = arith.addf %86, %87 : vector<16x32xf32>
    %c0_38 = arith.constant 0 : index
    %c0_39 = arith.constant 0 : index
    %c0_40 = arith.constant 0 : index
    %89 = vector.load %arg11[%c0_38, %c0_39, %c0_40] : memref<2x32x128xf32, #tpu.memory_space<vmem>>, vector<1x32x128xf32>
    %90 = vector.shape_cast %89 : vector<1x32x128xf32> to vector<32x128xf32>
    %cst_41 = arith.constant dense<0.000000e+00> : vector<16x128xf32>
    %91 = tpu.matmul %88, %90, %cst_41 {dimension_numbers = #tpu.dot_dimension_numbers<[1], [0], [0], [1], [0, 0, 1, 1], [], []>, precision = #tpu.contract_precision<fp32>} : vector<16x32xf32>, vector<32x128xf32>, vector<16x128xf32> -> vector<16x128xf32>
    %c0_42 = arith.constant 0 : index
    %c0_43 = arith.constant 0 : index
    %c0_44 = arith.constant 0 : index
    %92 = vector.load %arg12[%c0_42, %c0_43, %c0_44] : memref<2x1x128xf32, #tpu.memory_space<vmem>>, vector<1x1x128xf32>
    %93 = vector.shape_cast %92 : vector<1x1x128xf32> to vector<1x128xf32>
    %94 = vector.broadcast %93 : vector<1x128xf32> to vector<16x128xf32>
    %95 = arith.addf %91, %94 : vector<16x128xf32>
    %cst_45 = arith.constant 0.000000e+00 : f32
    %96 = vector.broadcast %cst_45 : f32 to vector<16x128xf32>
    %97 = arith.maximumf %95, %96 : vector<16x128xf32>
    %c0_46 = arith.constant 0 : index
    %c0_47 = arith.constant 0 : index
    %c0_48 = arith.constant 0 : index
    %98 = vector.load %arg13[%c0_46, %c0_47, %c0_48] : memref<2x128x32xf32, #tpu.memory_space<vmem>>, vector<1x128x32xf32>
    %99 = vector.shape_cast %98 : vector<1x128x32xf32> to vector<128x32xf32>
    %cst_49 = arith.constant dense<0.000000e+00> : vector<16x32xf32>
    %100 = tpu.matmul %97, %99, %cst_49 {dimension_numbers = #tpu.dot_dimension_numbers<[1], [0], [0], [1], [0, 0, 1, 1], [], []>, precision = #tpu.contract_precision<fp32>} : vector<16x128xf32>, vector<128x32xf32>, vector<16x32xf32> -> vector<16x32xf32>
    %c0_50 = arith.constant 0 : index
    %c0_51 = arith.constant 0 : index
    %c0_52 = arith.constant 0 : index
    %101 = vector.load %arg14[%c0_50, %c0_51, %c0_52] : memref<2x1x32xf32, #tpu.memory_space<vmem>>, vector<1x1x32xf32>
    %102 = vector.shape_cast %101 : vector<1x1x32xf32> to vector<1x32xf32>
    %103 = vector.broadcast %102 : vector<1x32xf32> to vector<16x32xf32>
    %104 = arith.addf %100, %103 : vector<16x32xf32>
    %105 = arith.addf %88, %104 : vector<16x32xf32>
    %c0_53 = arith.constant 0 : index
    %c0_54 = arith.constant 0 : index
    %c0_55 = arith.constant 0 : index
    %106 = vector.load %arg9[%c0_53, %c0_54, %c0_55] : memref<2x1x32xf32, #tpu.memory_space<vmem>>, vector<1x1x32xf32>
    %107 = vector.shape_cast %106 : vector<1x1x32xf32> to vector<1x32xf32>
    %c0_56 = arith.constant 0 : index
    %c0_57 = arith.constant 0 : index
    %c0_58 = arith.constant 0 : index
    %108 = vector.load %arg10[%c0_56, %c0_57, %c0_58] : memref<2x1x32xf32, #tpu.memory_space<vmem>>, vector<1x1x32xf32>
    %109 = vector.shape_cast %108 : vector<1x1x32xf32> to vector<1x32xf32>
    %cst_59 = arith.constant dense<0.000000e+00> : vector<16xf32>
    %110 = vector.multi_reduction <add>, %105, %cst_59 [1] : vector<16x32xf32> to vector<16xf32>
    %111 = vector.shape_cast %110 : vector<16xf32> to vector<16x1xf32>
    %cst_60 = arith.constant 3.200000e+01 : f32
    %112 = vector.broadcast %cst_60 : f32 to vector<16x1xf32>
    %113 = arith.divf %111, %112 : vector<16x1xf32>
    %114 = vector.broadcast %113 : vector<16x1xf32> to vector<16x32xf32>
    %115 = arith.subf %105, %114 : vector<16x32xf32>
    %116 = arith.mulf %115, %115 : vector<16x32xf32>
    %cst_61 = arith.constant dense<0.000000e+00> : vector<16xf32>
    %117 = vector.multi_reduction <add>, %116, %cst_61 [1] : vector<16x32xf32> to vector<16xf32>
    %118 = vector.shape_cast %117 : vector<16xf32> to vector<16x1xf32>
    %cst_62 = arith.constant 3.200000e+01 : f32
    %119 = vector.broadcast %cst_62 : f32 to vector<16x1xf32>
    %120 = arith.divf %118, %119 : vector<16x1xf32>
    %121 = vector.broadcast %113 : vector<16x1xf32> to vector<16x32xf32>
    %122 = arith.subf %105, %121 : vector<16x32xf32>
    %cst_63 = arith.constant 9.99999974E-6 : f32
    %123 = vector.broadcast %cst_63 : f32 to vector<16x1xf32>
    %124 = arith.addf %120, %123 : vector<16x1xf32>
    %125 = math.rsqrt %124 : vector<16x1xf32>
    %126 = vector.broadcast %125 : vector<16x1xf32> to vector<16x32xf32>
    %127 = arith.mulf %122, %126 : vector<16x32xf32>
    %128 = vector.broadcast %107 : vector<1x32xf32> to vector<16x32xf32>
    %129 = arith.mulf %127, %128 : vector<16x32xf32>
    %130 = vector.broadcast %109 : vector<1x32xf32> to vector<16x32xf32>
    %131 = arith.addf %129, %130 : vector<16x32xf32>
    %c1 = arith.constant 1 : index
    %c0_64 = arith.constant 0 : index
    %c0_65 = arith.constant 0 : index
    %132 = vector.load %arg3[%c1, %c0_64, %c0_65] : memref<2x32x96xf32, #tpu.memory_space<vmem>>, vector<1x32x96xf32>
    %133 = vector.shape_cast %132 : vector<1x32x96xf32> to vector<32x96xf32>
    %cst_66 = arith.constant dense<0.000000e+00> : vector<16x96xf32>
    %134 = tpu.matmul %131, %133, %cst_66 {dimension_numbers = #tpu.dot_dimension_numbers<[1], [0], [0], [1], [0, 0, 1, 1], [], []>, precision = #tpu.contract_precision<fp32>} : vector<16x32xf32>, vector<32x96xf32>, vector<16x96xf32> -> vector<16x96xf32>
    %c1_67 = arith.constant 1 : index
    %c0_68 = arith.constant 0 : index
    %c0_69 = arith.constant 0 : index
    %135 = vector.load %arg4[%c1_67, %c0_68, %c0_69] : memref<2x1x96xf32, #tpu.memory_space<vmem>>, vector<1x1x96xf32>
    %136 = vector.shape_cast %135 : vector<1x1x96xf32> to vector<1x96xf32>
    %137 = vector.broadcast %136 : vector<1x96xf32> to vector<16x96xf32>
    %138 = arith.addf %134, %137 : vector<16x96xf32>
    %c1_70 = arith.constant 1 : index
    %c0_71 = arith.constant 0 : index
    %c0_72 = arith.constant 0 : index
    %139 = vector.load %arg5[%c1_70, %c0_71, %c0_72] : memref<2x32x32xf32, #tpu.memory_space<vmem>>, vector<1x32x32xf32>
    %140 = vector.shape_cast %139 : vector<1x32x32xf32> to vector<32x32xf32>
    %cst_73 = arith.constant 0.000000e+00 : f32
    %141 = vector.broadcast %cst_73 : f32 to vector<16x32xf32>
    %142 = vector.extract_strided_slice %138 {offsets = [0, 0], sizes = [16, 16], strides = [1, 1]} : vector<16x96xf32> to vector<16x16xf32>
    %cst_74 = arith.constant 2.500000e-01 : f32
    %143 = vector.broadcast %cst_74 : f32 to vector<16x16xf32>
    %144 = arith.mulf %142, %143 : vector<16x16xf32>
    %145 = vector.shape_cast %144 : vector<16x16xf32> to vector<2x8x16xf32>
    %146 = vector.extract_strided_slice %138 {offsets = [0, 32], sizes = [16, 16], strides = [1, 1]} : vector<16x96xf32> to vector<16x16xf32>
    %147 = vector.shape_cast %146 : vector<16x16xf32> to vector<2x8x16xf32>
    %148 = vector.extract_strided_slice %138 {offsets = [0, 64], sizes = [16, 16], strides = [1, 1]} : vector<16x96xf32> to vector<16x16xf32>
    %149 = vector.shape_cast %148 : vector<16x16xf32> to vector<2x8x16xf32>
    "tpu.trace_start"() <{level = 10 : i32, message = "bqd,bkd->bqk"}> : () -> ()
    %cst_75 = arith.constant dense<0.000000e+00> : vector<2x8x8xf32>
    %150 = tpu.matmul %145, %147, %cst_75 {dimension_numbers = #tpu.dot_dimension_numbers<[2], [2], [1], [1], [0, 0, 0, 1, 1, 1], [0], [0]>, precision = #tpu.contract_precision<fp32>} : vector<2x8x16xf32>, vector<2x8x16xf32>, vector<2x8x8xf32> -> vector<2x8x8xf32>
    "tpu.trace_stop"() : () -> ()
    %cst_76 = arith.constant dense<0xFF800000> : vector<2x8xf32>
    %151 = vector.multi_reduction <maximumf>, %150, %cst_76 [2] : vector<2x8x8xf32> to vector<2x8xf32>
    %152 = vector.shape_cast %151 : vector<2x8xf32> to vector<2x8x1xf32>
    %153 = vector.broadcast %152 : vector<2x8x1xf32> to vector<2x8x8xf32>
    %154 = arith.subf %150, %153 : vector<2x8x8xf32>
    %155 = math.exp %154 : vector<2x8x8xf32>
    %cst_77 = arith.constant dense<0.000000e+00> : vector<2x8xf32>
    %156 = vector.multi_reduction <add>, %155, %cst_77 [2] : vector<2x8x8xf32> to vector<2x8xf32>
    %157 = vector.shape_cast %156 : vector<2x8xf32> to vector<2x8x1xf32>
    %158 = vector.broadcast %157 : vector<2x8x1xf32> to vector<2x8x8xf32>
    %159 = arith.divf %155, %158 : vector<2x8x8xf32>
    "tpu.trace_start"() <{level = 10 : i32, message = "bqk,bkd->bqd"}> : () -> ()
    %cst_78 = arith.constant dense<0.000000e+00> : vector<2x8x16xf32>
    %160 = tpu.matmul %159, %149, %cst_78 {dimension_numbers = #tpu.dot_dimension_numbers<[2], [1], [1], [2], [0, 0, 0, 1, 1, 2], [0], [0]>, precision = #tpu.contract_precision<fp32>} : vector<2x8x8xf32>, vector<2x8x16xf32>, vector<2x8x16xf32> -> vector<2x8x16xf32>
    "tpu.trace_stop"() : () -> ()
    %161 = vector.shape_cast %160 : vector<2x8x16xf32> to vector<16x16xf32>
    %162 = vector.extract_strided_slice %140 {offsets = [0, 0], sizes = [16, 32], strides = [1, 1]} : vector<32x32xf32> to vector<16x32xf32>
    %cst_79 = arith.constant dense<0.000000e+00> : vector<16x32xf32>
    %163 = tpu.matmul %161, %162, %cst_79 {dimension_numbers = #tpu.dot_dimension_numbers<[1], [0], [0], [1], [0, 0, 1, 1], [], []>, precision = #tpu.contract_precision<fp32>} : vector<16x16xf32>, vector<16x32xf32>, vector<16x32xf32> -> vector<16x32xf32>
    %164 = arith.addf %141, %163 : vector<16x32xf32>
    %165 = vector.extract_strided_slice %138 {offsets = [0, 16], sizes = [16, 16], strides = [1, 1]} : vector<16x96xf32> to vector<16x16xf32>
    %cst_80 = arith.constant 2.500000e-01 : f32
    %166 = vector.broadcast %cst_80 : f32 to vector<16x16xf32>
    %167 = arith.mulf %165, %166 : vector<16x16xf32>
    %168 = vector.shape_cast %167 : vector<16x16xf32> to vector<2x8x16xf32>
    %169 = vector.extract_strided_slice %138 {offsets = [0, 48], sizes = [16, 16], strides = [1, 1]} : vector<16x96xf32> to vector<16x16xf32>
    %170 = vector.shape_cast %169 : vector<16x16xf32> to vector<2x8x16xf32>
    %171 = vector.extract_strided_slice %138 {offsets = [0, 80], sizes = [16, 16], strides = [1, 1]} : vector<16x96xf32> to vector<16x16xf32>
    %172 = vector.shape_cast %171 : vector<16x16xf32> to vector<2x8x16xf32>
    "tpu.trace_start"() <{level = 10 : i32, message = "bqd,bkd->bqk"}> : () -> ()
    %cst_81 = arith.constant dense<0.000000e+00> : vector<2x8x8xf32>
    %173 = tpu.matmul %168, %170, %cst_81 {dimension_numbers = #tpu.dot_dimension_numbers<[2], [2], [1], [1], [0, 0, 0, 1, 1, 1], [0], [0]>, precision = #tpu.contract_precision<fp32>} : vector<2x8x16xf32>, vector<2x8x16xf32>, vector<2x8x8xf32> -> vector<2x8x8xf32>
    "tpu.trace_stop"() : () -> ()
    %cst_82 = arith.constant dense<0xFF800000> : vector<2x8xf32>
    %174 = vector.multi_reduction <maximumf>, %173, %cst_82 [2] : vector<2x8x8xf32> to vector<2x8xf32>
    %175 = vector.shape_cast %174 : vector<2x8xf32> to vector<2x8x1xf32>
    %176 = vector.broadcast %175 : vector<2x8x1xf32> to vector<2x8x8xf32>
    %177 = arith.subf %173, %176 : vector<2x8x8xf32>
    %178 = math.exp %177 : vector<2x8x8xf32>
    %cst_83 = arith.constant dense<0.000000e+00> : vector<2x8xf32>
    %179 = vector.multi_reduction <add>, %178, %cst_83 [2] : vector<2x8x8xf32> to vector<2x8xf32>
    %180 = vector.shape_cast %179 : vector<2x8xf32> to vector<2x8x1xf32>
    %181 = vector.broadcast %180 : vector<2x8x1xf32> to vector<2x8x8xf32>
    %182 = arith.divf %178, %181 : vector<2x8x8xf32>
    "tpu.trace_start"() <{level = 10 : i32, message = "bqk,bkd->bqd"}> : () -> ()
    %cst_84 = arith.constant dense<0.000000e+00> : vector<2x8x16xf32>
    %183 = tpu.matmul %182, %172, %cst_84 {dimension_numbers = #tpu.dot_dimension_numbers<[2], [1], [1], [2], [0, 0, 0, 1, 1, 2], [0], [0]>, precision = #tpu.contract_precision<fp32>} : vector<2x8x8xf32>, vector<2x8x16xf32>, vector<2x8x16xf32> -> vector<2x8x16xf32>
    "tpu.trace_stop"() : () -> ()
    %184 = vector.shape_cast %183 : vector<2x8x16xf32> to vector<16x16xf32>
    %185 = vector.extract_strided_slice %140 {offsets = [16, 0], sizes = [16, 32], strides = [1, 1]} : vector<32x32xf32> to vector<16x32xf32>
    %cst_85 = arith.constant dense<0.000000e+00> : vector<16x32xf32>
    %186 = tpu.matmul %184, %185, %cst_85 {dimension_numbers = #tpu.dot_dimension_numbers<[1], [0], [0], [1], [0, 0, 1, 1], [], []>, precision = #tpu.contract_precision<fp32>} : vector<16x16xf32>, vector<16x32xf32>, vector<16x32xf32> -> vector<16x32xf32>
    %187 = arith.addf %164, %186 : vector<16x32xf32>
    %c1_86 = arith.constant 1 : index
    %c0_87 = arith.constant 0 : index
    %c0_88 = arith.constant 0 : index
    %188 = vector.load %arg6[%c1_86, %c0_87, %c0_88] : memref<2x1x32xf32, #tpu.memory_space<vmem>>, vector<1x1x32xf32>
    %189 = vector.shape_cast %188 : vector<1x1x32xf32> to vector<1x32xf32>
    %190 = vector.broadcast %189 : vector<1x32xf32> to vector<16x32xf32>
    %191 = arith.addf %187, %190 : vector<16x32xf32>
    %192 = arith.addf %131, %191 : vector<16x32xf32>
    %c1_89 = arith.constant 1 : index
    %c0_90 = arith.constant 0 : index
    %c0_91 = arith.constant 0 : index
    %193 = vector.load %arg7[%c1_89, %c0_90, %c0_91] : memref<2x1x32xf32, #tpu.memory_space<vmem>>, vector<1x1x32xf32>
    %194 = vector.shape_cast %193 : vector<1x1x32xf32> to vector<1x32xf32>
    %c1_92 = arith.constant 1 : index
    %c0_93 = arith.constant 0 : index
    %c0_94 = arith.constant 0 : index
    %195 = vector.load %arg8[%c1_92, %c0_93, %c0_94] : memref<2x1x32xf32, #tpu.memory_space<vmem>>, vector<1x1x32xf32>
    %196 = vector.shape_cast %195 : vector<1x1x32xf32> to vector<1x32xf32>
    %cst_95 = arith.constant dense<0.000000e+00> : vector<16xf32>
    %197 = vector.multi_reduction <add>, %192, %cst_95 [1] : vector<16x32xf32> to vector<16xf32>
    %198 = vector.shape_cast %197 : vector<16xf32> to vector<16x1xf32>
    %cst_96 = arith.constant 3.200000e+01 : f32
    %199 = vector.broadcast %cst_96 : f32 to vector<16x1xf32>
    %200 = arith.divf %198, %199 : vector<16x1xf32>
    %201 = vector.broadcast %200 : vector<16x1xf32> to vector<16x32xf32>
    %202 = arith.subf %192, %201 : vector<16x32xf32>
    %203 = arith.mulf %202, %202 : vector<16x32xf32>
    %cst_97 = arith.constant dense<0.000000e+00> : vector<16xf32>
    %204 = vector.multi_reduction <add>, %203, %cst_97 [1] : vector<16x32xf32> to vector<16xf32>
    %205 = vector.shape_cast %204 : vector<16xf32> to vector<16x1xf32>
    %cst_98 = arith.constant 3.200000e+01 : f32
    %206 = vector.broadcast %cst_98 : f32 to vector<16x1xf32>
    %207 = arith.divf %205, %206 : vector<16x1xf32>
    %208 = vector.broadcast %200 : vector<16x1xf32> to vector<16x32xf32>
    %209 = arith.subf %192, %208 : vector<16x32xf32>
    %cst_99 = arith.constant 9.99999974E-6 : f32
    %210 = vector.broadcast %cst_99 : f32 to vector<16x1xf32>
    %211 = arith.addf %207, %210 : vector<16x1xf32>
    %212 = math.rsqrt %211 : vector<16x1xf32>
    %213 = vector.broadcast %212 : vector<16x1xf32> to vector<16x32xf32>
    %214 = arith.mulf %209, %213 : vector<16x32xf32>
    %215 = vector.broadcast %194 : vector<1x32xf32> to vector<16x32xf32>
    %216 = arith.mulf %214, %215 : vector<16x32xf32>
    %217 = vector.broadcast %196 : vector<1x32xf32> to vector<16x32xf32>
    %218 = arith.addf %216, %217 : vector<16x32xf32>
    %c1_100 = arith.constant 1 : index
    %c0_101 = arith.constant 0 : index
    %c0_102 = arith.constant 0 : index
    %219 = vector.load %arg11[%c1_100, %c0_101, %c0_102] : memref<2x32x128xf32, #tpu.memory_space<vmem>>, vector<1x32x128xf32>
    %220 = vector.shape_cast %219 : vector<1x32x128xf32> to vector<32x128xf32>
    %cst_103 = arith.constant dense<0.000000e+00> : vector<16x128xf32>
    %221 = tpu.matmul %218, %220, %cst_103 {dimension_numbers = #tpu.dot_dimension_numbers<[1], [0], [0], [1], [0, 0, 1, 1], [], []>, precision = #tpu.contract_precision<fp32>} : vector<16x32xf32>, vector<32x128xf32>, vector<16x128xf32> -> vector<16x128xf32>
    %c1_104 = arith.constant 1 : index
    %c0_105 = arith.constant 0 : index
    %c0_106 = arith.constant 0 : index
    %222 = vector.load %arg12[%c1_104, %c0_105, %c0_106] : memref<2x1x128xf32, #tpu.memory_space<vmem>>, vector<1x1x128xf32>
    %223 = vector.shape_cast %222 : vector<1x1x128xf32> to vector<1x128xf32>
    %224 = vector.broadcast %223 : vector<1x128xf32> to vector<16x128xf32>
    %225 = arith.addf %221, %224 : vector<16x128xf32>
    %cst_107 = arith.constant 0.000000e+00 : f32
    %226 = vector.broadcast %cst_107 : f32 to vector<16x128xf32>
    %227 = arith.maximumf %225, %226 : vector<16x128xf32>
    %c1_108 = arith.constant 1 : index
    %c0_109 = arith.constant 0 : index
    %c0_110 = arith.constant 0 : index
    %228 = vector.load %arg13[%c1_108, %c0_109, %c0_110] : memref<2x128x32xf32, #tpu.memory_space<vmem>>, vector<1x128x32xf32>
    %229 = vector.shape_cast %228 : vector<1x128x32xf32> to vector<128x32xf32>
    %cst_111 = arith.constant dense<0.000000e+00> : vector<16x32xf32>
    %230 = tpu.matmul %227, %229, %cst_111 {dimension_numbers = #tpu.dot_dimension_numbers<[1], [0], [0], [1], [0, 0, 1, 1], [], []>, precision = #tpu.contract_precision<fp32>} : vector<16x128xf32>, vector<128x32xf32>, vector<16x32xf32> -> vector<16x32xf32>
    %c1_112 = arith.constant 1 : index
    %c0_113 = arith.constant 0 : index
    %c0_114 = arith.constant 0 : index
    %231 = vector.load %arg14[%c1_112, %c0_113, %c0_114] : memref<2x1x32xf32, #tpu.memory_space<vmem>>, vector<1x1x32xf32>
    %232 = vector.shape_cast %231 : vector<1x1x32xf32> to vector<1x32xf32>
    %233 = vector.broadcast %232 : vector<1x32xf32> to vector<16x32xf32>
    %234 = arith.addf %230, %233 : vector<16x32xf32>
    %235 = arith.addf %218, %234 : vector<16x32xf32>
    %c1_115 = arith.constant 1 : index
    %c0_116 = arith.constant 0 : index
    %c0_117 = arith.constant 0 : index
    %236 = vector.load %arg9[%c1_115, %c0_116, %c0_117] : memref<2x1x32xf32, #tpu.memory_space<vmem>>, vector<1x1x32xf32>
    %237 = vector.shape_cast %236 : vector<1x1x32xf32> to vector<1x32xf32>
    %c1_118 = arith.constant 1 : index
    %c0_119 = arith.constant 0 : index
    %c0_120 = arith.constant 0 : index
    %238 = vector.load %arg10[%c1_118, %c0_119, %c0_120] : memref<2x1x32xf32, #tpu.memory_space<vmem>>, vector<1x1x32xf32>
    %239 = vector.shape_cast %238 : vector<1x1x32xf32> to vector<1x32xf32>
    %cst_121 = arith.constant dense<0.000000e+00> : vector<16xf32>
    %240 = vector.multi_reduction <add>, %235, %cst_121 [1] : vector<16x32xf32> to vector<16xf32>
    %241 = vector.shape_cast %240 : vector<16xf32> to vector<16x1xf32>
    %cst_122 = arith.constant 3.200000e+01 : f32
    %242 = vector.broadcast %cst_122 : f32 to vector<16x1xf32>
    %243 = arith.divf %241, %242 : vector<16x1xf32>
    %244 = vector.broadcast %243 : vector<16x1xf32> to vector<16x32xf32>
    %245 = arith.subf %235, %244 : vector<16x32xf32>
    %246 = arith.mulf %245, %245 : vector<16x32xf32>
    %cst_123 = arith.constant dense<0.000000e+00> : vector<16xf32>
    %247 = vector.multi_reduction <add>, %246, %cst_123 [1] : vector<16x32xf32> to vector<16xf32>
    %248 = vector.shape_cast %247 : vector<16xf32> to vector<16x1xf32>
    %cst_124 = arith.constant 3.200000e+01 : f32
    %249 = vector.broadcast %cst_124 : f32 to vector<16x1xf32>
    %250 = arith.divf %248, %249 : vector<16x1xf32>
    %251 = vector.broadcast %243 : vector<16x1xf32> to vector<16x32xf32>
    %252 = arith.subf %235, %251 : vector<16x32xf32>
    %cst_125 = arith.constant 9.99999974E-6 : f32
    %253 = vector.broadcast %cst_125 : f32 to vector<16x1xf32>
    %254 = arith.addf %250, %253 : vector<16x1xf32>
    %255 = math.rsqrt %254 : vector<16x1xf32>
    %256 = vector.broadcast %255 : vector<16x1xf32> to vector<16x32xf32>
    %257 = arith.mulf %252, %256 : vector<16x32xf32>
    %258 = vector.broadcast %237 : vector<1x32xf32> to vector<16x32xf32>
    %259 = arith.mulf %257, %258 : vector<16x32xf32>
    %260 = vector.broadcast %239 : vector<1x32xf32> to vector<16x32xf32>
    %261 = arith.addf %259, %260 : vector<16x32xf32>
    %c0_126 = arith.constant 0 : index
    %c0_127 = arith.constant 0 : index
    %262 = vector.load %arg15[%c0_126, %c0_127] : memref<32x1xf32, #tpu.memory_space<vmem>>, vector<32x1xf32>
    %cst_128 = arith.constant dense<0.000000e+00> : vector<16x1xf32>
    %263 = tpu.matmul %261, %262, %cst_128 {dimension_numbers = #tpu.dot_dimension_numbers<[1], [0], [0], [1], [0, 0, 1, 1], [], []>, precision = #tpu.contract_precision<fp32>} : vector<16x32xf32>, vector<32x1xf32>, vector<16x1xf32> -> vector<16x1xf32>
    %c0_129 = arith.constant 0 : index
    %c0_130 = arith.constant 0 : index
    %264 = vector.load %arg16[%c0_129, %c0_130] : memref<1x1xf32, #tpu.memory_space<vmem>>, vector<1x1xf32>
    %265 = vector.broadcast %264 : vector<1x1xf32> to vector<16x1xf32>
    %266 = arith.addf %263, %265 : vector<16x1xf32>
    %c0_131 = arith.constant 0 : index
    %c0_132 = arith.constant 0 : index
    %267 = vector.load %arg17[%c0_131, %c0_132] : memref<1x1xf32, #tpu.memory_space<vmem>>, vector<1x1xf32>
    %c0_133 = arith.constant 0 : index
    %c0_134 = arith.constant 0 : index
    %268 = vector.load %arg18[%c0_133, %c0_134] : memref<1x1xf32, #tpu.memory_space<vmem>>, vector<1x1xf32>
    %cst_135 = arith.constant dense<0.000000e+00> : vector<16xf32>
    %269 = vector.multi_reduction <add>, %266, %cst_135 [1] : vector<16x1xf32> to vector<16xf32>
    %270 = vector.shape_cast %269 : vector<16xf32> to vector<16x1xf32>
    %cst_136 = arith.constant 1.000000e+00 : f32
    %271 = vector.broadcast %cst_136 : f32 to vector<16x1xf32>
    %272 = arith.divf %270, %271 : vector<16x1xf32>
    %273 = arith.subf %266, %272 : vector<16x1xf32>
    %274 = arith.mulf %273, %273 : vector<16x1xf32>
    %cst_137 = arith.constant dense<0.000000e+00> : vector<16xf32>
    %275 = vector.multi_reduction <add>, %274, %cst_137 [1] : vector<16x1xf32> to vector<16xf32>
    %276 = vector.shape_cast %275 : vector<16xf32> to vector<16x1xf32>
    %cst_138 = arith.constant 1.000000e+00 : f32
    %277 = vector.broadcast %cst_138 : f32 to vector<16x1xf32>
    %278 = arith.divf %276, %277 : vector<16x1xf32>
    %279 = arith.subf %266, %272 : vector<16x1xf32>
    %cst_139 = arith.constant 9.99999974E-6 : f32
    %280 = vector.broadcast %cst_139 : f32 to vector<16x1xf32>
    %281 = arith.addf %278, %280 : vector<16x1xf32>
    %282 = math.rsqrt %281 : vector<16x1xf32>
    %283 = arith.mulf %279, %282 : vector<16x1xf32>
    %284 = vector.broadcast %267 : vector<1x1xf32> to vector<16x1xf32>
    %285 = arith.mulf %283, %284 : vector<16x1xf32>
    %286 = vector.broadcast %268 : vector<1x1xf32> to vector<16x1xf32>
    %287 = arith.addf %285, %286 : vector<16x1xf32>
    %288 = vector.shape_cast %287 : vector<16x1xf32> to vector<2x8x1xf32>
    %cst_140 = arith.constant dense<0xFF800000> : vector<2x1xf32>
    %289 = vector.multi_reduction <maximumf>, %288, %cst_140 [1] : vector<2x8x1xf32> to vector<2x1xf32>
    %290 = vector.shape_cast %289 : vector<2x1xf32> to vector<2x1x1xf32>
    %291 = vector.broadcast %290 : vector<2x1x1xf32> to vector<2x8x1xf32>
    %292 = arith.subf %288, %291 : vector<2x8x1xf32>
    %293 = math.exp %292 : vector<2x8x1xf32>
    %cst_141 = arith.constant dense<0.000000e+00> : vector<2x1xf32>
    %294 = vector.multi_reduction <add>, %293, %cst_141 [1] : vector<2x8x1xf32> to vector<2x1xf32>
    %295 = vector.shape_cast %294 : vector<2x1xf32> to vector<2x1x1xf32>
    %296 = vector.broadcast %295 : vector<2x1x1xf32> to vector<2x8x1xf32>
    %297 = arith.divf %293, %296 : vector<2x8x1xf32>
    %298 = vector.shape_cast %261 : vector<16x32xf32> to vector<2x8x32xf32>
    %299 = vector.broadcast %297 : vector<2x8x1xf32> to vector<2x8x32xf32>
    %300 = arith.mulf %299, %298 : vector<2x8x32xf32>
    %cst_142 = arith.constant dense<0.000000e+00> : vector<2x32xf32>
    %301 = vector.multi_reduction <add>, %300, %cst_142 [1] : vector<2x8x32xf32> to vector<2x32xf32>
    %c0_143 = arith.constant 0 : index
    %c0_144 = arith.constant 0 : index
    %302 = vector.load %arg19[%c0_143, %c0_144] : memref<1x32xf32, #tpu.memory_space<vmem>>, vector<1x32xf32>
    %c0_145 = arith.constant 0 : index
    %c0_146 = arith.constant 0 : index
    %303 = vector.load %arg20[%c0_145, %c0_146] : memref<1x32xf32, #tpu.memory_space<vmem>>, vector<1x32xf32>
    %cst_147 = arith.constant dense<0.000000e+00> : vector<2xf32>
    %304 = vector.multi_reduction <add>, %301, %cst_147 [1] : vector<2x32xf32> to vector<2xf32>
    %305 = vector.shape_cast %304 : vector<2xf32> to vector<2x1xf32>
    %cst_148 = arith.constant 3.200000e+01 : f32
    %306 = vector.broadcast %cst_148 : f32 to vector<2x1xf32>
    %307 = arith.divf %305, %306 : vector<2x1xf32>
    %308 = vector.broadcast %307 : vector<2x1xf32> to vector<2x32xf32>
    %309 = arith.subf %301, %308 : vector<2x32xf32>
    %310 = arith.mulf %309, %309 : vector<2x32xf32>
    %cst_149 = arith.constant dense<0.000000e+00> : vector<2xf32>
    %311 = vector.multi_reduction <add>, %310, %cst_149 [1] : vector<2x32xf32> to vector<2xf32>
    %312 = vector.shape_cast %311 : vector<2xf32> to vector<2x1xf32>
    %cst_150 = arith.constant 3.200000e+01 : f32
    %313 = vector.broadcast %cst_150 : f32 to vector<2x1xf32>
    %314 = arith.divf %312, %313 : vector<2x1xf32>
    %315 = vector.broadcast %307 : vector<2x1xf32> to vector<2x32xf32>
    %316 = arith.subf %301, %315 : vector<2x32xf32>
    %cst_151 = arith.constant 9.99999974E-6 : f32
    %317 = vector.broadcast %cst_151 : f32 to vector<2x1xf32>
    %318 = arith.addf %314, %317 : vector<2x1xf32>
    %319 = math.rsqrt %318 : vector<2x1xf32>
    %320 = vector.broadcast %319 : vector<2x1xf32> to vector<2x32xf32>
    %321 = arith.mulf %316, %320 : vector<2x32xf32>
    %322 = vector.broadcast %302 : vector<1x32xf32> to vector<2x32xf32>
    %323 = arith.mulf %321, %322 : vector<2x32xf32>
    %324 = vector.broadcast %303 : vector<1x32xf32> to vector<2x32xf32>
    %325 = arith.addf %323, %324 : vector<2x32xf32>
    %c0_152 = arith.constant 0 : index
    %c0_153 = arith.constant 0 : index
    %c0_154 = arith.constant 0 : index
    %326 = vector.load %arg2[%c0_152, %c0_153, %c0_154] : memref<2x1x32xf32, #tpu.memory_space<vmem>>, vector<2x1x32xf32>
    %327 = vector.shape_cast %326 : vector<2x1x32xf32> to vector<2x32xf32>
    %328 = arith.addf %325, %327 : vector<2x32xf32>
    %c0_155 = arith.constant 0 : index
    %c0_156 = arith.constant 0 : index
    %329 = vector.load %arg21[%c0_155, %c0_156] : memref<1x32xf32, #tpu.memory_space<vmem>>, vector<1x32xf32>
    %c0_157 = arith.constant 0 : index
    %c0_158 = arith.constant 0 : index
    %330 = vector.load %arg22[%c0_157, %c0_158] : memref<1x32xf32, #tpu.memory_space<vmem>>, vector<1x32xf32>
    %cst_159 = arith.constant dense<0.000000e+00> : vector<2xf32>
    %331 = vector.multi_reduction <add>, %328, %cst_159 [1] : vector<2x32xf32> to vector<2xf32>
    %332 = vector.shape_cast %331 : vector<2xf32> to vector<2x1xf32>
    %cst_160 = arith.constant 3.200000e+01 : f32
    %333 = vector.broadcast %cst_160 : f32 to vector<2x1xf32>
    %334 = arith.divf %332, %333 : vector<2x1xf32>
    %335 = vector.broadcast %334 : vector<2x1xf32> to vector<2x32xf32>
    %336 = arith.subf %328, %335 : vector<2x32xf32>
    %337 = arith.mulf %336, %336 : vector<2x32xf32>
    %cst_161 = arith.constant dense<0.000000e+00> : vector<2xf32>
    %338 = vector.multi_reduction <add>, %337, %cst_161 [1] : vector<2x32xf32> to vector<2xf32>
    %339 = vector.shape_cast %338 : vector<2xf32> to vector<2x1xf32>
    %cst_162 = arith.constant 3.200000e+01 : f32
    %340 = vector.broadcast %cst_162 : f32 to vector<2x1xf32>
    %341 = arith.divf %339, %340 : vector<2x1xf32>
    %342 = vector.broadcast %334 : vector<2x1xf32> to vector<2x32xf32>
    %343 = arith.subf %328, %342 : vector<2x32xf32>
    %cst_163 = arith.constant 9.99999974E-6 : f32
    %344 = vector.broadcast %cst_163 : f32 to vector<2x1xf32>
    %345 = arith.addf %341, %344 : vector<2x1xf32>
    %346 = math.rsqrt %345 : vector<2x1xf32>
    %347 = vector.broadcast %346 : vector<2x1xf32> to vector<2x32xf32>
    %348 = arith.mulf %343, %347 : vector<2x32xf32>
    %349 = vector.broadcast %329 : vector<1x32xf32> to vector<2x32xf32>
    %350 = arith.mulf %348, %349 : vector<2x32xf32>
    %351 = vector.broadcast %330 : vector<1x32xf32> to vector<2x32xf32>
    %352 = arith.addf %350, %351 : vector<2x32xf32>
    %353 = vector.shape_cast %352 : vector<2x32xf32> to vector<2x1x32xf32>
    %c0_164 = arith.constant 0 : index
    %c0_165 = arith.constant 0 : index
    %c0_166 = arith.constant 0 : index
    %354 = vector.load %arg23[%c0_164, %c0_165, %c0_166] : memref<2x1x32xf32, #tpu.memory_space<vmem>>, vector<2x1x32xf32>
    tpu.vector_store %arg23[%c0_164, %c0_165, %c0_166], %353 {strides = array<i32>} : memref<2x1x32xf32, #tpu.memory_space<vmem>>, vector<2x1x32xf32>,
    return
  }
  func.func @transform_0(%arg0: i32) -> (i32, i32, i32) {
    %c0_i32 = arith.constant 0 : i32
    %c0_i32_0 = arith.constant 0 : i32
    %c0_i32_1 = arith.constant 0 : i32
    return %arg0, %c0_i32, %c0_i32_0 : i32, i32, i32
  }
  func.func @transform_1(%arg0: i32) -> (i32, i32, i32) {
    %c0_i32 = arith.constant 0 : i32
    %c0_i32_0 = arith.constant 0 : i32
    %c0_i32_1 = arith.constant 0 : i32
    return %arg0, %c0_i32, %c0_i32_0 : i32, i32, i32
  }
  func.func @transform_2(%arg0: i32) -> (i32, i32, i32) {
    %c0_i32 = arith.constant 0 : i32
    %c0_i32_0 = arith.constant 0 : i32
    %c0_i32_1 = arith.constant 0 : i32
    %c0_i32_2 = arith.constant 0 : i32
    return %c0_i32, %c0_i32_0, %c0_i32_1 : i32, i32, i32
  }
  func.func @transform_3(%arg0: i32) -> (i32, i32, i32) {
    %c0_i32 = arith.constant 0 : i32
    %c0_i32_0 = arith.constant 0 : i32
    %c0_i32_1 = arith.constant 0 : i32
    %c0_i32_2 = arith.constant 0 : i32
    return %c0_i32, %c0_i32_0, %c0_i32_1 : i32, i32, i32
  }
  func.func @transform_4(%arg0: i32) -> (i32, i32, i32) {
    %c0_i32 = arith.constant 0 : i32
    %c0_i32_0 = arith.constant 0 : i32
    %c0_i32_1 = arith.constant 0 : i32
    %c0_i32_2 = arith.constant 0 : i32
    return %c0_i32, %c0_i32_0, %c0_i32_1 : i32, i32, i32
  }
  func.func @transform_5(%arg0: i32) -> (i32, i32, i32) {
    %c0_i32 = arith.constant 0 : i32
    %c0_i32_0 = arith.constant 0 : i32
    %c0_i32_1 = arith.constant 0 : i32
    %c0_i32_2 = arith.constant 0 : i32
    return %c0_i32, %c0_i32_0, %c0_i32_1 : i32, i32, i32
  }
  func.func @transform_6(%arg0: i32) -> (i32, i32, i32) {
    %c0_i32 = arith.constant 0 : i32
    %c0_i32_0 = arith.constant 0 : i32
    %c0_i32_1 = arith.constant 0 : i32
    %c0_i32_2 = arith.constant 0 : i32
    return %c0_i32, %c0_i32_0, %c0_i32_1 : i32, i32, i32
  }
  func.func @transform_7(%arg0: i32) -> (i32, i32, i32) {
    %c0_i32 = arith.constant 0 : i32
    %c0_i32_0 = arith.constant 0 : i32
    %c0_i32_1 = arith.constant 0 : i32
    %c0_i32_2 = arith.constant 0 : i32
    return %c0_i32, %c0_i32_0, %c0_i32_1 : i32, i32, i32
  }
  func.func @transform_8(%arg0: i32) -> (i32, i32, i32) {
    %c0_i32 = arith.constant 0 : i32
    %c0_i32_0 = arith.constant 0 : i32
    %c0_i32_1 = arith.constant 0 : i32
    %c0_i32_2 = arith.constant 0 : i32
    return %c0_i32, %c0_i32_0, %c0_i32_1 : i32, i32, i32
  }
  func.func @transform_9(%arg0: i32) -> (i32, i32, i32) {
    %c0_i32 = arith.constant 0 : i32
    %c0_i32_0 = arith.constant 0 : i32
    %c0_i32_1 = arith.constant 0 : i32
    %c0_i32_2 = arith.constant 0 : i32
    return %c0_i32, %c0_i32_0, %c0_i32_1 : i32, i32, i32
  }
  func.func @transform_10(%arg0: i32) -> (i32, i32, i32) {
    %c0_i32 = arith.constant 0 : i32
    %c0_i32_0 = arith.constant 0 : i32
    %c0_i32_1 = arith.constant 0 : i32
    %c0_i32_2 = arith.constant 0 : i32
    return %c0_i32, %c0_i32_0, %c0_i32_1 : i32, i32, i32
  }
  func.func @transform_11(%arg0: i32) -> (i32, i32, i32) {
    %c0_i32 = arith.constant 0 : i32
    %c0_i32_0 = arith.constant 0 : i32
    %c0_i32_1 = arith.constant 0 : i32
    %c0_i32_2 = arith.constant 0 : i32
    return %c0_i32, %c0_i32_0, %c0_i32_1 : i32, i32, i32
  }
  func.func @transform_12(%arg0: i32) -> (i32, i32, i32) {
    %c0_i32 = arith.constant 0 : i32
    %c0_i32_0 = arith.constant 0 : i32
    %c0_i32_1 = arith.constant 0 : i32
    %c0_i32_2 = arith.constant 0 : i32
    return %c0_i32, %c0_i32_0, %c0_i32_1 : i32, i32, i32
  }
  func.func @transform_13(%arg0: i32) -> (i32, i32, i32) {
    %c0_i32 = arith.constant 0 : i32
    %c0_i32_0 = arith.constant 0 : i32
    %c0_i32_1 = arith.constant 0 : i32
    %c0_i32_2 = arith.constant 0 : i32
    return %c0_i32, %c0_i32_0, %c0_i32_1 : i32, i32, i32
  }
  func.func @transform_14(%arg0: i32) -> (i32, i32) {
    %c0_i32 = arith.constant 0 : i32
    %c0_i32_0 = arith.constant 0 : i32
    %c0_i32_1 = arith.constant 0 : i32
    return %c0_i32, %c0_i32_0 : i32, i32
  }
  func.func @transform_15(%arg0: i32) -> (i32, i32) {
    %c0_i32 = arith.constant 0 : i32
    %c0_i32_0 = arith.constant 0 : i32
    %c0_i32_1 = arith.constant 0 : i32
    return %c0_i32, %c0_i32_0 : i32, i32
  }
  func.func @transform_16(%arg0: i32) -> (i32, i32) {
    %c0_i32 = arith.constant 0 : i32
    %c0_i32_0 = arith.constant 0 : i32
    %c0_i32_1 = arith.constant 0 : i32
    return %c0_i32, %c0_i32_0 : i32, i32
  }
  func.func @transform_17(%arg0: i32) -> (i32, i32) {
    %c0_i32 = arith.constant 0 : i32
    %c0_i32_0 = arith.constant 0 : i32
    %c0_i32_1 = arith.constant 0 : i32
    return %c0_i32, %c0_i32_0 : i32, i32
  }
  func.func @transform_18(%arg0: i32) -> (i32, i32) {
    %c0_i32 = arith.constant 0 : i32
    %c0_i32_0 = arith.constant 0 : i32
    %c0_i32_1 = arith.constant 0 : i32
    return %c0_i32, %c0_i32_0 : i32, i32
  }
  func.func @transform_19(%arg0: i32) -> (i32, i32) {
    %c0_i32 = arith.constant 0 : i32
    %c0_i32_0 = arith.constant 0 : i32
    %c0_i32_1 = arith.constant 0 : i32
    return %c0_i32, %c0_i32_0 : i32, i32
  }
  func.func @transform_20(%arg0: i32) -> (i32, i32) {
    %c0_i32 = arith.constant 0 : i32
    %c0_i32_0 = arith.constant 0 : i32
    %c0_i32_1 = arith.constant 0 : i32
    return %c0_i32, %c0_i32_0 : i32, i32
  }
  func.func @transform_21(%arg0: i32) -> (i32, i32) {
    %c0_i32 = arith.constant 0 : i32
    %c0_i32_0 = arith.constant 0 : i32
    %c0_i32_1 = arith.constant 0 : i32
    return %c0_i32, %c0_i32_0 : i32, i32
  }
  func.func @transform_22(%arg0: i32) -> (i32, i32, i32) {
    %c0_i32 = arith.constant 0 : i32
    %c0_i32_0 = arith.constant 0 : i32
    %c0_i32_1 = arith.constant 0 : i32
    return %arg0, %c0_i32, %c0_i32_0 : i32, i32, i32
  }
}

</mosaic_0001>

<bundles_post_ra>
// kernel: tpu_custom_call.1
= control target key start
LH: loop header
LB: loop body
LE: loop exit
PB: predicated region body
PF: predicated region fallthrough
CT: control target
= control target key end

     0   :  { %s19393_s0 = inlined_call_operand.vmem [shape: f32[4,8,32], index: 0, kind: input, shape index: {}]   ;;  %s19394_s1 = inlined_call_operand.vmem [shape: f32[4,1,32], index: 1, kind: input, shape index: {}]   ;;  %s19395_s2 = inlined_call_operand.vmem [shape: f32[2,32,96], index: 2, kind: input, shape index: {}]   ;;  %s19396_s3 = inlined_call_operand.vmem [shape: f32[2,1,96], index: 3, kind: input, shape index: {}]   ;;  %s19397_s4 = inlined_call_operand.vmem [shape: f32[2,32,32], index: 4, kind: input, shape index: {}]   ;;  %s19398_s5 = inlined_call_operand.vmem [shape: f32[2,1,32], index: 5, kind: input, shape index: {}]   ;;  %s19399_s6 = inlined_call_operand.vmem [shape: f32[2,1,32], index: 6, kind: input, shape index: {}]   ;;  %s19400_s7 = inlined_call_operand.vmem [shape: f32[2,1,32], index: 7, kind: input, shape index: {}]   ;;  %s19401_s8 = inlined_call_operand.vmem [shape: f32[2,1,32], index: 8, kind: input, shape index: {}]   ;;  %s19402_s9 = inlined_call_operand.vmem [shape: f32[2,1,32], index: 9, kind: input, shape index: {}]   ;;  %s19403_s10 = inlined_call_operand.vmem [shape: f32[2,32,128], index: 10, kind: input, shape index: {}]   ;;  %s19404_s11 = inlined_call_operand.vmem [shape: f32[2,1,128], index: 11, kind: input, shape index: {}]   ;;  %s19405_s12 = inlined_call_operand.vmem [shape: f32[2,128,32], index: 12, kind: input, shape index: {}]   ;;  %s19406_s13 = inlined_call_operand.vmem [shape: f32[2,1,32], index: 13, kind: input, shape index: {}]   ;;  %s19407_s14 = inlined_call_operand.vmem [shape: f32[32,1], index: 14, kind: input, shape index: {}]   ;;  %s19408_s15 = inlined_call_operand.<no memory space> [shape: f32[1,1], index: 15, kind: input, shape index: {}]   ;;  %s19409_s18 = inlined_call_operand.vmem [shape: f32[1,32], index: 18, kind: input, shape index: {}]   ;;  %s19410_s19 = inlined_call_operand.vmem [shape: f32[1,32], index: 19, kind: input, shape index: {}]   ;;  %s19411_s20 = inlined_call_operand.vmem [shape: f32[1,32], index: 20, kind: input, shape index: {}]   ;;  %s19412_s21 = inlined_call_operand.vmem [shape: f32[1,32], index: 21, kind: input, shape index: {}]   ;;  %s19413_s22 = inlined_call_operand.hbm [shape: f32[4,1,32], index: 22, kind: output, shape index: {}]   ;;  %s19414_s16 = inlined_call_operand.<no memory space> [shape: f32[1,1], index: 16, kind: input, shape index: {}]   ;;  %s19415_s17 = inlined_call_operand.<no memory space> [shape: f32[1,1], index: 17, kind: input, shape index: {}]  }
   0x1   :  { %19475 = sst [smem:[#allocation23_spill]] %s19393_s0  ;;  %v27_v0 = vstv %s19408_s15  ;;  %v29_v1 = vstv %s19414_s16  ;;  %v31_v2 = vstv %s19415_s17 }
   0x2   :  { %19476 = sst [smem:[#allocation24_spill]] %s19394_s1  ;;  %28 = vst [vmem:[#allocation2] sm:$0x1] %v27_v0  ;;  %30 = vst [vmem:[#allocation3] sm:$0x1] %v29_v1 }
   0x3   :  { %19477 = sst [smem:[#allocation25_spill]] %s19395_s2  ;;  %32 = vst [vmem:[#allocation4] sm:$0x1] %v31_v2 }
   0x4   :  { %19478 = sst [smem:[#allocation26_spill]] %s19396_s3 }
   0x5   :  { %19479 = sst [smem:[#allocation27_spill]] %s19397_s4 }
   0x6   :  { %19480 = sst [smem:[#allocation28_spill]] %s19398_s5 }
   0x7   :  { %19481 = sst [smem:[#allocation29_spill]] %s19399_s6 }
   0x8   :  { %19482 = sst [smem:[#allocation30_spill]] %s19400_s7 }
   0x9   :  { %33 = vsyncpa [#allocation6], 0 }
   0xa   :  { %35 = vsyncpa [#allocation6 + $0x1], 0  ;;  %s17216_s23 = smov 0   ;;  %s17218_s1 = smov 0  }
   0xb   :  { %s17220_s5 = smov 0   ;;  %s17222_s15 = smov 0  }
   0xc LB: > { %19483 = sst [smem:[#allocation8_spill]] %s17067_s23  ;;  %s17237_s16 = sadd.s32 4294967295, %s17079_s15   ;;  %s17079_s15 = sphi %s17222_s15, %s19546_s15   ;;  %s17075_s5 = sphi %s17220_s5, %s19548_s5   ;;  %s17071_s1 = sphi %s17218_s1, %s19550_s1   ;;  %s17067_s23 = sphi %s17216_s23, %s19549_s23  }
   0xd   : > { %19484 = sst [smem:[#allocation9_spill]] %s17075_s5  ;;  %s14747_s17 = sadd.s32 4294967294, %s17079_s15  }
   0xe   : > { %s17241_s24 = sadd.s32 1, %s17079_s15   ;;  %s520_s6 = sadd.s32 1, %s17075_s5 }
   0xf   : > { %19485 = sst [smem:[#allocation10_spill]] %s17241_s24  ;;  %s517_s25 = ssub.s32 %s17079_s15, %s17241_s24 }
  0x10   : > { %p530_p0 = scmp.ne.s32.totalorder %s17075_s5, %s17071_s1  ;;  %p518_p1 = scmp.eq.s32.totalorder %s517_s25, 0 }
  0x11   : > { %p531_p2 = scmp.eq.s32.totalorder %s17237_s16, 1  ;;  %p536_p3 = scmp.ne.s32.totalorder %s17071_s1, %s17067_s23 }
  0x12   : > { %p537_p4 = scmp.eq.s32.totalorder %s14747_s17, 1  ;;  %p14750_p7 = scmp.ge.s32.totalorder %s17079_s15, 1 }
  0x13   : > { %s17252_s26 = scalar_select %p518_p1, %s17075_s5, %s520_s6  }
  0x14   : > { %p17254_p5 = por %p531_p2, %p530_p0  ;;  %p17258_p6 = por %p537_p4, %p536_p3 }
  0x15   : > { %19486 = sst [smem:[#allocation11_spill]] %s17252_s26  ;;  %p632_p8 = scmp.lt.s32.totalorder %s17079_s15, 3 }
  0x16   : > { %s19488_s27 = scalar_select %p17258_p6, 1, 0 }
  0x17   : > { %p633_p9 = pnand %p14750_p7, %p632_p8 }
  0x18   : > { %19489 = sst [smem:[#allocation12_spill]] %s19488_s27 }
  0x19   : > { %636 = sbr.rel (%p633_p9) target bundleno = 7182 (0x1c0e), region = 108 }
  0x1e   : > { %s19490_s29 = sld [smem:[#allocation25_spill]]  ;;  %s14752_s6 = sshll.u32 %s17237_s16, 1  ;;  %vm723_vm0 = vcmask 261120   ;;  %v19435_v52 = vmov 0.0   ;;  %vm17082_vm1 = vmmov 0   ;;  %vm1267_vm2 = vcmask 130048  }
  0x1f   : > { %p699_p10 = scmp.lt.s32.totalorder %s14752_s6, 3  ;;  %s19491_s30 = sld [smem:[#allocation23_spill]]  ;;  %vm2173_vm3 = vcmask 64512   ;;  %vm14485_vm4 = vcmask 7168   ;;  %vm14554_vm5 = vcmask 1041409   ;;  %vm14557_vm6 = vcmask 254976  }
  0x20   : > { %s19492_s25 = sld [smem:[#allocation26_spill]]  ;;  %s19427_s3 = smov 64   ;;  %vm14659_vm7 = vcmask 253952  }
  0x21   : > { %s19552_s6 = smov (!%p699_p10, %s14752_s6), 3  ;;  %s19425_s28 = smov 80  }
  0x22   : > { %s14753_s26 = sshll.u32 %s19552_s6, 3  ;;  %s19421_s0 = smov 48  }
  0x23   : > { %s19495_s27 = sld [smem:[#allocation29_spill]]  ;;  %s19519_s17 = smov 64  }
  0x24   : > { %v715_v3 = vld [vmem:[%s19490_s29 + $0x18] sm:$0xff]  ;;  %v714_v4 = vld [vmem:[%s19490_s29 + $0x10] sm:$0xff]  ;;  %v713_v5 = vld [vmem:[%s19490_s29 + $0x8] sm:$0xff]  ;;  %s19496_s7 = sld [smem:[#allocation30_spill]]  ;;  %s19520_s23 = smov 80  }
  0x25   : > { %v17274_v6 = vand.u32 4294901760, %v715_v3  ;;  %v17276_v7 = vand.u32 4294901760, %v714_v4  ;;  %v17278_v8 = vand.u32 4294901760, %v713_v5  ;;  %v712_v9 = vld [vmem:[%s19490_s29] sm:$0xff]  ;;  %s17307_s4 = scalar_lea.vmem %s19491_s30, %s14753_s26  ;;  %s19429_s26 = smov 96  }
  0x26   : > { %v17283_v10 = vand.u32 4294901760, %v712_v9  ;;  %v710_v22 = vld [vmem:[%s17307_s4] sm:$0xff]  ;;  %v711_v23 = vld [vmem:[%s17307_s4 + $0x8] sm:$0xff]  ;;  %s19423_s30 = smov 112  }
  0x27   : > { %15504 = vmatprep.subr.mxu0 %v17274_v6  ;;  %v845_v11 = vsub.f32 %v715_v3, %v17274_v6  ;;  %v852_v12 = vsub.f32 %v714_v4, %v17276_v7  ;;  %v859_v13 = vsub.f32 %v713_v5, %v17278_v8  ;;  %v725_v24 = vsel %vm723_vm0, %v710_v22, 0  ;;  %v14755_v44 = vld [vmem:[%s19492_s25] ss:$0 sm:$0xff] }
  0x28   : > { %15505 = vmatpush3.msra.mxu0 %v17274_v6  ;;  %v866_v14 = vsub.f32 %v712_v9, %v17283_v10  ;;  %v728_v25 = vsel %vm723_vm0, %v711_v23, 0  ;;  %v799_v29 = vand.u32 4294901760, %v725_v24 }
  0x29   : > { %v17293_v15 = vand.u32 4294901760, %v845_v11  ;;  %15506 = vmatprep.subr.mxu0 %v17276_v7  ;;  %v17296_v16 = vand.u32 4294901760, %v852_v12  ;;  %v17298_v17 = vand.u32 4294901760, %v859_v13  ;;  %v809_v30 = vand.u32 4294901760, %v728_v25 }
  0x2a   : > { %15507 = vmatpush3.msra.mxu0 %v17276_v7  ;;  %v17302_v18 = vand.u32 4294901760, %v866_v14  ;;  %v800_v32 = vsub.f32 %v725_v24, %v799_v29  ;;  %15523 = vmatprep.mubr.f32.mxu1 %v799_v29 }
  0x2b   : > { %v847_v19 = vsub.f32 %v845_v11, %v17293_v15  ;;  %v854_v20 = vsub.f32 %v852_v12, %v17296_v16  ;;  %15508 = vmatprep.subr.mxu0 %v17278_v8  ;;  %v861_v21 = vsub.f32 %v859_v13, %v17298_v17  ;;  %v810_v33 = vsub.f32 %v728_v25, %v809_v30 }
  0x2c   : > { %15509 = vmatpush3.msra.mxu0 %v17278_v8  ;;  %v868_v28 = vsub.f32 %v866_v14, %v17302_v18  ;;  %v801_v35 = vand.u32 4294901760, %v800_v32 }
  0x2d   : > { %v848_v26 = vand.u32 4294901760, %v847_v19  ;;  %v855_v27 = vand.u32 4294901760, %v854_v20  ;;  %15510 = vmatprep.subr.mxu0 %v17283_v10  ;;  %v862_v31 = vand.u32 4294901760, %v861_v21  ;;  %v811_v36 = vand.u32 4294901760, %v810_v33 }
  0x2e   : > { %15511 = vmatpush3.msra.mxu0 %v17283_v10  ;;  %v869_v34 = vand.u32 4294901760, %v868_v28  ;;  %v802_v37 = vsub.f32 %v800_v32, %v801_v35 }
  0x2f   : > { %15515 = vmatprep.subr.mxu1 %v848_v26  ;;  %15526 = vmatprep.subr.mxu0 %v845_v11  ;;  %v812_v38 = vsub.f32 %v810_v33, %v811_v36 }
  0x30   : > { %15516 = vmatpush3.msra.mxu1 %v848_v26  ;;  %v803_v39 = vand.u32 4294901760, %v802_v37 }
  0x31   : > { %15517 = vmatprep.subr.mxu1 %v855_v27  ;;  %v813_v40 = vand.u32 4294901760, %v812_v38 }
  0x32   : > { %15518 = vmatpush3.msra.mxu1 %v855_v27  ;;  %15512 = vmatprep.mubr.f32.mxu0 %v803_v39 }
  0x33   : > { %15519 = vmatprep.subr.mxu1 %v862_v31  ;;  %15513 = vmatmul.mubr.f32.vlgmr.msra.gmra.mxu0 %v813_v40 }
  0x34   : > { %15520 = vmatpush3.msra.mxu1 %v862_v31  ;;  %15527 = vmatpush3.msra.mxu0 %v845_v11 }
  0x35   : > { %15521 = vmatprep.subr.mxu1 %v869_v34  ;;  %15528 = vmatprep.subr.mxu0 %v852_v12 }
  0x36   : > { %15522 = vmatpush3.msra.mxu1 %v869_v34  ;;  %15529 = vmatpush3.msra.mxu0 %v852_v12 }
  0x37   : > { %15537 = vmatprep.subr.mxu1 %v17274_v6  ;;  %15524 = vmatmul.mubr.f32.vlgmr.msra.gmra.mxu1 %v809_v30 }
  0x38   : > { %15538 = vmatpush3.msra.mxu1 %v17274_v6  ;;  %15530 = vmatprep.subr.mxu0 %v859_v13 }
  0x39   : > { %15539 = vmatprep.subr.mxu1 %v17276_v7  ;;  %15531 = vmatpush3.msra.mxu0 %v859_v13 }
  0x3a   : > { %15540 = vmatpush3.msra.mxu1 %v17276_v7  ;;  %15532 = vmatprep.subr.mxu0 %v866_v14 }
  0x3b   : > { %15541 = vmatprep.subr.mxu1 %v17278_v8  ;;  %15533 = vmatpush3.msra.mxu0 %v866_v14 }
  0x3c   : > { %15542 = vmatpush3.msra.mxu1 %v17278_v8  ;;  %15534 = vmatprep.mubr.f32.mxu0 %v800_v32 }
  0x3d   : > { %15543 = vmatprep.subr.mxu1 %v17283_v10  ;;  %15535 = vmatmul.mubr.f32.vlgmr.msra.gmra.mxu0 %v810_v33 }
  0x3e   : > { %15544 = vmatpush3.msra.mxu1 %v17283_v10  ;;  %15545 = vmatprep.mubr.f32.mxu1 %v801_v35 }
  0x3f   : > { %15548 = vmatprep.subr.mxu0 %v17293_v15  ;;  %15559 = vmatprep.subr.mxu1 %v17274_v6 }
  0x40   : > { %15546 = vmatmul.mubr.f32.vlgmr.msra.gmra.mxu1 %v811_v36  ;;  %15549 = vmatpush3.msra.mxu0 %v17293_v15 }
  0x41   : > { %15560 = vmatpush3.msra.mxu1 %v17274_v6  ;;  %15550 = vmatprep.subr.mxu0 %v17296_v16 }
  0x42   : > { %15561 = vmatprep.subr.mxu1 %v17276_v7  ;;  %15551 = vmatpush3.msra.mxu0 %v17296_v16 }
  0x43   : > { %15562 = vmatpush3.msra.mxu1 %v17276_v7  ;;  %15552 = vmatprep.subr.mxu0 %v17298_v17 }
  0x44   : > { %15563 = vmatprep.subr.mxu1 %v17278_v8  ;;  %15553 = vmatpush3.msra.mxu0 %v17298_v17 }
  0x45   : > { %15564 = vmatpush3.msra.mxu1 %v17278_v8  ;;  %15554 = vmatprep.subr.mxu0 %v17302_v18 }
  0x46   : > { %15565 = vmatprep.subr.mxu1 %v17283_v10  ;;  %15555 = vmatpush3.msra.mxu0 %v17302_v18 }
  0x47   : > { %15556 = vmatprep.mubr.f32.mxu0 %v799_v29  ;;  %15566 = vmatpush3.msra.mxu1 %v17283_v10 }
  0x48   : > { %15567 = vmatprep.mubr.f32.mxu1 %v799_v29  ;;  %15557 = vmatmul.mubr.f32.vlgmr.msra.gmra.mxu0 %v809_v30 }
  0x49   : > { %15568 = vmatmul.mubr.f32.vlgmr.msra.gmra.mxu1 %v809_v30  ;;  %15570 = vmatprep.subr.mxu0 %v19435_v52 }
  0x4a   : > { %15575 = vmatprep.subr.mxu1 %v19435_v52  ;;  %15572 = vmatprep.mubr.msk.f32.mxu0 %vm17082_vm1, %v19435_v52 }
  0x4b   : > { %15577 = vmatprep.mubr.msk.f32.mxu1 %vm17082_vm1, %v19435_v52 }
  0xf3   : > { %v15514_v41 = vpop.f32.mrf.mxu0 }
  0xf4   : > { %v816_v48 = vadd.f32 %v15514_v41, %v14755_v44 }
  0xf5   : > { %v805_v43 = vpop.f32.mrf.mxu0 }
  0xf6   : > { %v806_v46 = vadd.f32 %v14755_v44, %v805_v43 }
  0xf7   : > { %v15525_v42 = vpop.f32.mrf.mxu1 }
  0xf8   : > { %v913_v53 = vadd.f32 %v15525_v42, %v816_v48 }
  0xf9   : > { %v906_v47 = vpop.f32.mrf.mxu1 }
  0xfa   : > { %v907_v51 = vadd.f32 %v906_v47, %v806_v46 }
  0xfd   : > { %v15536_v45 = vpop.f32.mrf.mxu0 }
  0xfe   : > { %v1000_v56 = vadd.f32 %v15536_v45, %v913_v53 }
  0xff   : > { %v992_v50 = vpop.f32.mrf.mxu0 }
 0x100   : > { %v15547_v49 = vpop.f32.mrf.mxu1  ;;  %v993_v54 = vadd.f32 %v992_v50, %v907_v51 }
 0x101   : > { %v1085_v61 = vadd.f32 %v15547_v49, %v1000_v56 }
 0x102   : > { %v1076_v55 = vpop.f32.mrf.mxu1 }
 0x103   : > { %v1077_v59 = vadd.f32 %v1076_v55, %v993_v54 }
 0x108   : > { %v15558_v57 = vpop.f32.mrf.mxu0 }
 0x109   : > { %v15569_v58 = vpop.f32.mrf.mxu1  ;;  %v1174_v0 = vadd.f32 %v15558_v57, %v1085_v61 }
 0x10a   : > { %v1167_v60 = vpop.f32.mrf.mxu0 }
 0x10b   : > { %v1168_v62 = vadd.f32 %v1167_v60, %v1077_v59  ;;  %v1248_v63 = vpop.f32.mrf.mxu1  ;;  %v17358_v2 = vadd.f32 %v15569_v58, %v1174_v0 }
 0x10d   : > { %v17354_v1 = vadd.f32 %v1248_v63, %v1168_v62  ;;  %v17368_v7 = vmul.f32 0.25, %v17358_v2 }
 0x10f   : > { %1265 = vrot.lane.b32.xlu0 %v17354_v1, %s19429_s26  ;;  %v17363_v3 = vmul.f32 0.25, %v17354_v1  ;;  %v1723_v9 = vsel %vm1267_vm2, %v17368_v7, 0 }
 0x110   : > { %v17373_v13 = vand.u32 4294901760, %v1723_v9 }
 0x111   : > { %v1269_v4 = vsel %vm1267_vm2, %v17363_v3, 0 }
 0x112   : > { %v1339_v5 = vand.u32 4294901760, %v1269_v4  ;;  %v1794_v19 = vsub.f32 %v1723_v9, %v17373_v13 }
 0x113   : > { %1720 = vrot.lane.b32.xlu0 %v17358_v2, %s19429_s26 }
 0x114   : > { %v1340_v6 = vsub.f32 %v1269_v4, %v1339_v5  ;;  %v1795_v23 = vand.u32 4294901760, %v1794_v19 }
 0x116   : > { %v1341_v8 = vand.u32 4294901760, %v1340_v6  ;;  %v1796_v26 = vsub.f32 %v1794_v19, %v1795_v23 }
 0x118   : > { %v1342_v12 = vsub.f32 %v1340_v6, %v1341_v8  ;;  %v1797_v28 = vand.u32 4294901760, %v1796_v26 }
 0x11a   : > { %v1343_v18 = vand.u32 4294901760, %v1342_v12 }
 0x181   : > { %v1266_v10 = vpop.permute.xlu0 %1265 }
 0x182   : > { %v1271_v11 = vsel %vm1267_vm2, %v1266_v10, 0 }
 0x183   : > { %v1304_v14 = vand.u32 4294901760, %v1271_v11 }
 0x185   : > { %v1381_v15 = vsub.f32 %v1271_v11, %v1304_v14  ;;  %15571 = vmatpush3.xpose.msra.mxu0 %v1304_v14  ;;  %v1721_v16 = vpop.permute.xlu0 %1720 }
 0x186   : > { %v1725_v17 = vsel %vm1267_vm2, %v1721_v16, 0  ;;  %15580 = vmatprep.subr.mxu0 %v19435_v52 }
 0x187   : > { %v1382_v20 = vand.u32 4294901760, %v1381_v15  ;;  %v1758_v21 = vand.u32 4294901760, %v1725_v17 }
 0x188   : > { %15573 = vmatmul.mubr.f32.vlgmr.msra.gmra.mxu0 %v1343_v18 }
 0x189   : > { %v1383_v22 = vsub.f32 %v1381_v15, %v1382_v20  ;;  %15581 = vmatpush3.xpose.msra.mxu0 %v1381_v15  ;;  %15582 = vmatprep.mubr.msk.f32.mxu0 %vm17082_vm1, %v19435_v52  ;;  %v1835_v25 = vsub.f32 %v1725_v17, %v1758_v21 }
 0x18a   : > { %15590 = vmatprep.subr.mxu0 %v19435_v52 }
 0x18b   : > { %v1384_v24 = vand.u32 4294901760, %v1383_v22  ;;  %v1836_v27 = vand.u32 4294901760, %v1835_v25 }
 0x18c   : > { %15583 = vmatmul.mubr.f32.vlgmr.msra.gmra.mxu0 %v1340_v6 }
 0x18d   : > { %15576 = vmatpush3.xpose.msra.mxu1 %v1384_v24  ;;  %15591 = vmatpush3.xpose.msra.mxu0 %v1382_v20  ;;  %v1837_v29 = vsub.f32 %v1835_v25, %v1836_v27 }
 0x18e   : > { %15592 = vmatprep.mubr.msk.f32.mxu0 %vm17082_vm1, %v19435_v52  ;;  %15585 = vmatprep.subr.mxu1 %v19435_v52 }
 0x18f   : > { %15600 = vmatprep.subr.mxu0 %v19435_v52  ;;  %v1838_v30 = vand.u32 4294901760, %v1837_v29 }
 0x190   : > { %15578 = vmatmul.mubr.f32.vlgmr.msra.gmra.mxu1 %v1339_v5  ;;  %15593 = vmatmul.mubr.f32.vlgmr.msra.gmra.mxu0 %v1339_v5 }
 0x191   : > { %15586 = vmatpush3.xpose.msra.mxu1 %v1304_v14  ;;  %15601 = vmatpush3.xpose.msra.mxu0 %v1758_v21 }
 0x192   : > { %15587 = vmatprep.mubr.msk.f32.mxu1 %vm17082_vm1, %v19435_v52  ;;  %15602 = vmatprep.mubr.msk.f32.mxu0 %vm17082_vm1, %v19435_v52 }
 0x193   : > { %15595 = vmatprep.subr.mxu1 %v19435_v52  ;;  %15610 = vmatprep.subr.mxu0 %v19435_v52 }
 0x194   : > { %15588 = vmatmul.mubr.f32.vlgmr.msra.gmra.mxu1 %v1341_v8  ;;  %15603 = vmatmul.mubr.f32.vlgmr.msra.gmra.mxu0 %v1797_v28 }
 0x195   : > { %15596 = vmatpush3.xpose.msra.mxu1 %v1304_v14  ;;  %15611 = vmatpush3.xpose.msra.mxu0 %v1835_v25 }
 0x196   : > { %15597 = vmatprep.mubr.msk.f32.mxu1 %vm17082_vm1, %v19435_v52  ;;  %15612 = vmatprep.mubr.msk.f32.mxu0 %vm17082_vm1, %v19435_v52 }
 0x197   : > { %15605 = vmatprep.subr.mxu1 %v19435_v52  ;;  %15620 = vmatprep.subr.mxu0 %v19435_v52 }
 0x198   : > { %15598 = vmatmul.mubr.f32.vlgmr.msra.gmra.mxu1 %v1339_v5  ;;  %15613 = vmatmul.mubr.f32.vlgmr.msra.gmra.mxu0 %v1794_v19 }
 0x199   : > { %15606 = vmatpush3.xpose.msra.mxu1 %v1838_v30  ;;  %15621 = vmatpush3.xpose.msra.mxu0 %v1836_v27 }
 0x19a   : > { %15607 = vmatprep.mubr.msk.f32.mxu1 %vm17082_vm1, %v19435_v52  ;;  %15622 = vmatprep.mubr.msk.f32.mxu0 %vm17082_vm1, %v19435_v52 }
 0x19b   : > { %15615 = vmatprep.subr.mxu1 %v19435_v52  ;;  %15630 = vmatprep.subr.mxu0 %v19435_v52 }
 0x19c   : > { %15608 = vmatmul.mubr.f32.vlgmr.msra.gmra.mxu1 %v17373_v13  ;;  %15623 = vmatmul.mubr.f32.vlgmr.msra.gmra.mxu0 %v17373_v13 }
 0x19d   : > { %15616 = vmatpush3.xpose.msra.mxu1 %v1758_v21  ;;  %15617 = vmatprep.mubr.msk.f32.mxu1 %vm17082_vm1, %v19435_v52 }
 0x19e   : > { %15625 = vmatprep.subr.mxu1 %v19435_v52  ;;  %15632 = vmatprep.mubr.msk.f32.mxu0 %vm17082_vm1, %v19435_v52 }
 0x1a0   : > { %15618 = vmatmul.mubr.f32.vlgmr.msra.gmra.mxu1 %v1795_v23 }
 0x1a1   : > { %15626 = vmatpush3.xpose.msra.mxu1 %v1758_v21  ;;  %15627 = vmatprep.mubr.msk.f32.mxu1 %vm17082_vm1, %v19435_v52 }
 0x1a2   : > { %15635 = vmatprep.subr.mxu1 %v19435_v52 }
 0x1a4   : > { %15628 = vmatmul.mubr.f32.vlgmr.msra.gmra.mxu1 %v17373_v13 }
 0x1a5   : > { %15637 = vmatprep.mubr.msk.f32.mxu1 %vm17082_vm1, %v19435_v52 }
 0x248   : > { %v1345_v31 = vpop.f32.mrf.mxu0 }
 0x24a   : > { %v15574_v32 = vpop.f32.mrf.mxu0 }
 0x24c   : > { %v1495_v33 = vpop.f32.mrf.mxu0 }
 0x24e   : > { %v15584_v34 = vpop.f32.mrf.mxu0 }
 0x250   : > { %v1421_v35 = vpop.f32.mrf.mxu1  ;;  %v1643_v36 = vpop.f32.mrf.mxu0 }
 0x251   : > { %v1422_v37 = vadd.f32 %v1421_v35, %v1345_v31 }
 0x252   : > { %v15579_v38 = vpop.f32.mrf.mxu1  ;;  %v15594_v39 = vpop.f32.mrf.mxu0 }
 0x253   : > { %v1496_v40 = vadd.f32 %v1495_v33, %v1422_v37 }
 0x254   : > { %v1569_v41 = vpop.f32.mrf.mxu1  ;;  %v1799_v42 = vpop.f32.mrf.mxu0 }
 0x255   : > { %v1570_v43 = vadd.f32 %v1569_v41, %v1496_v40 }
 0x256   : > { %v15589_v44 = vpop.f32.mrf.mxu1  ;;  %v15604_v45 = vpop.f32.mrf.mxu0 }
 0x257   : > { %v1644_v46 = vadd.f32 %v1643_v36, %v1570_v43 }
 0x258   : > { %v1715_v47 = vpop.f32.mrf.mxu1  ;;  %v1949_v48 = vpop.f32.mrf.mxu0 }
 0x259   : > { %v1716_v49 = vadd.f32 %v1715_v47, %v1644_v46 }
 0x25a   : > { %v15599_v50 = vpop.f32.mrf.mxu1  ;;  %v15614_v51 = vpop.f32.mrf.mxu0 }
 0x25b   : > { %v2174_v53 = vsel %vm2173_vm3, %v1716_v49, -inf }
 0x25c   : > { %v1875_v54 = vpop.f32.mrf.mxu1  ;;  %2175 = vmax.xlane.f32.xlu1 %v2174_v53  ;;  %v2097_v55 = vpop.f32.mrf.mxu0 }
 0x25d   : > { %v1876_v56 = vadd.f32 %v1875_v54, %v1799_v42 }
 0x25e   : > { %v15609_v57 = vpop.f32.mrf.mxu1  ;;  %v15624_v58 = vpop.f32.mrf.mxu0 }
 0x25f   : > { %v1950_v59 = vadd.f32 %v1949_v48, %v1876_v56 }
 0x260   : > { %v2023_v60 = vpop.f32.mrf.mxu1 }
 0x261   : > { %v2024_v61 = vadd.f32 %v2023_v60, %v1950_v59 }
 0x262   : > { %v15619_v62 = vpop.f32.mrf.mxu1 }
 0x263   : > { %v2098_v63 = vadd.f32 %v2097_v55, %v2024_v61 }
 0x264   : > { %v2169_v0 = vpop.f32.mrf.mxu1 }
 0x265   : > { %v2170_v4 = vadd.f32 %v2169_v0, %v2098_v63 }
 0x266   : > { %v15629_v5 = vpop.f32.mrf.mxu1 }
 0x267   : > { %v2177_v6 = vsel %vm2173_vm3, %v2170_v4, -inf }
 0x268   : > { %2178 = vmax.xlane.f32.xlu1 %v2177_v6 }
 0x279   : > { %2196 = vrot.lane.b32.xlu1 %v17354_v1, %s19427_s3 }
 0x27d   : > { %2648 = vrot.lane.b32.xlu1 %v17358_v2, %s19427_s3  ;;  %s19521_s3 = smov 112  }
 0x2e5   : > { %v2176_v8 = vpop.xlane.xlu1 %2175 }
 0x2e6   : > { %v2180_v9 = vsub.f32 %v1716_v49, %v2176_v8 }
 0x2e8   : > { %v2182_v10 = vmul.f32 1.442695, %v2180_v9 }
 0x2ea   : > { %16953 = vpow2.f32 %v2182_v10 }
 0x2f1   : > { %v2179_v11 = vpop.xlane.xlu1 %2178 }
 0x2f2   : > { %v2181_v12 = vsub.f32 %v2170_v4, %v2179_v11 }
 0x2f4   : > { %v2184_v13 = vmul.f32 1.442695, %v2181_v12 }
 0x2f5   : > { %v2197_v14 = vpop.permute.xlu1 %2196 }
 0x2f6   : > { %16955 = vpow2.f32 %v2184_v13  ;;  %v2233_v15 = vand.u32 4294901760, %v2197_v14 }
 0x2f7   : > { %v16954_v16 = vpop.eup %16953 }
 0x2f8   : > { %v17422_v17 = vsub.f32 %v2197_v14, %v2233_v15  ;;  %15631 = vmatpush3.msra.mxu0 %v2233_v15  ;;  %v2186_v18 = vsel %vm2173_vm3, %v16954_v16, 0.0 }
 0x2f9   : > { %2187 = vadd.xlane.f32.xlu0 %v2186_v18  ;;  %15640 = vmatprep.subr.mxu0 %v19435_v52  ;;  %v2649_v25 = vpop.permute.xlu1 %2648 }
 0x2fa   : > { %v2311_v19 = vand.u32 4294901760, %v17422_v17  ;;  %v2685_v26 = vand.u32 4294901760, %v2649_v25 }
 0x2fc   : > { %v2312_v20 = vsub.f32 %v17422_v17, %v2311_v19  ;;  %v17440_v29 = vsub.f32 %v2649_v25, %v2685_v26 }
 0x2fe   : > { %v2313_v21 = vand.u32 4294901760, %v2312_v20  ;;  %v2763_v34 = vand.u32 4294901760, %v17440_v29 }
 0x300   : > { %15636 = vmatpush3.msra.mxu1 %v2313_v21  ;;  %v2764_v36 = vsub.f32 %v17440_v29, %v2763_v34 }
 0x301   : > { %15645 = vmatprep.subr.mxu1 %v19435_v52 }
 0x302   : > { %v2765_v41 = vand.u32 4294901760, %v2764_v36 }
 0x303   : > { %v16956_v22 = vpop.eup %16955 }
 0x304   : > { %v2189_v23 = vsel %vm2173_vm3, %v16956_v22, 0.0 }
 0x305   : > { %2190 = vadd.xlane.f32.xlu1 %v2189_v23 }
 0x30f   : > { %3556 = vrot.lane.b32.xlu0 %v17358_v2, %s19425_s28 }
 0x316   : > { %3102 = vrot.lane.b32.xlu1 %v17354_v1, %s19425_s28  ;;  %s19522_s28 = smov 48  }
 0x31a   : > { %3100 = vrot.lane.b32.xlu1 %v17363_v3, %s19423_s30 }
 0x31e   : > { %3554 = vrot.lane.b32.xlu1 %v17368_v7, %s19423_s30  ;;  %s19493_s30 = sld [smem:[#allocation27_spill]] }
 0x382   : > { %v2188_v24 = vpop.xlane.xlu0 %2187 }
 0x383   : > { %16957 = vrcp.f32 %v2188_v24 }
 0x386   : > { %v3557_v45 = vpop.permute.xlu0 %3556 }
 0x387   : > { %v3560_v50 = vsel %vm1267_vm2, %v3557_v45, 0 }
 0x388   : > { %v17477_v55 = vand.u32 4294901760, %v3560_v50 }
 0x38a   : > { %v17490_v60 = vsub.f32 %v3560_v50, %v17477_v55 }
 0x38c   : > { %v3671_v0 = vand.u32 4294901760, %v17490_v60 }
 0x38e   : > { %v2191_v27 = vpop.xlane.xlu1 %2190  ;;  %v3672_v8 = vsub.f32 %v17490_v60, %v3671_v0 }
 0x38f   : > { %16959 = vrcp.f32 %v2191_v27 }
 0x390   : > { %v16958_v28 = vpop.eup %16957  ;;  %v3673_v11 = vand.u32 4294901760, %v3672_v8 }
 0x391   : > { %v2193_v30 = vmul.f32 %v16958_v28, %v16954_v16 }
 0x392   : > { %v3103_v31 = vpop.permute.xlu1 %3102 }
 0x393   : > { %v2200_v32 = vsel %vm2173_vm3, %v2193_v30, 0  ;;  %v3106_v3 = vsel %vm1267_vm2, %v3103_v31, 0 }
 0x394   : > { %v2268_v33 = vand.u32 4294901760, %v2200_v32  ;;  %v17451_v37 = vand.u32 4294901760, %v3106_v3 }
 0x396   : > { %v2269_v35 = vsub.f32 %v2200_v32, %v2268_v33  ;;  %15638 = vmatmul.mubr.f32.vlgmr.msra.gmra.mxu1 %v2268_v33  ;;  %v17457_v42 = vsub.f32 %v3106_v3, %v17451_v37  ;;  %v3101_v44 = vpop.permute.xlu1 %3100 }
 0x397   : > { %15646 = vmatpush3.msra.mxu1 %v2233_v15  ;;  %15647 = vmatprep.mubr.msk.f32.mxu1 %vm17082_vm1, %v19435_v52  ;;  %v3104_v49 = vsel %vm1267_vm2, %v3101_v44, 0 }
 0x398   : > { %15655 = vmatprep.subr.mxu1 %v19435_v52  ;;  %v2270_v7 = vand.u32 4294901760, %v2269_v35  ;;  %v3217_v48 = vand.u32 4294901760, %v17457_v42  ;;  %v17472_v53 = vand.u32 4294901760, %v3104_v49 }
 0x39a   : > { %15648 = vmatmul.mubr.f32.vlgmr.msra.gmra.mxu1 %v2270_v7  ;;  %v2271_v38 = vsub.f32 %v2269_v35, %v2270_v7  ;;  %v3218_v56 = vsub.f32 %v17457_v42, %v3217_v48  ;;  %v3175_v58 = vsub.f32 %v3104_v49, %v17472_v53  ;;  %v3555_v62 = vpop.permute.xlu1 %3554 }
 0x39b   : > { %15656 = vmatpush3.msra.mxu1 %v2233_v15  ;;  %15657 = vmatprep.mubr.msk.f32.mxu1 %vm17082_vm1, %v19435_v52  ;;  %v3558_v4 = vsel %vm1267_vm2, %v3555_v62, 0 }
 0x39c   : > { %v16960_v39 = vpop.eup %16959  ;;  %15665 = vmatprep.subr.mxu1 %v19435_v52  ;;  %v2272_v40 = vand.u32 4294901760, %v2271_v38  ;;  %v3219_v61 = vand.u32 4294901760, %v3218_v56  ;;  %v3176_v63 = vand.u32 4294901760, %v3175_v58  ;;  %v3628_v6 = vand.u32 4294901760, %v3558_v4 }
 0x39d   : > { %v2195_v43 = vmul.f32 %v16960_v39, %v16956_v22 }
 0x39e   : > { %15633 = vmatmul.mubr.f32.vlgmr.msra.gmra.mxu0 %v2272_v40  ;;  %15658 = vmatmul.mubr.f32.vlgmr.msra.gmra.mxu1 %v2268_v33  ;;  %v3177_v5 = vsub.f32 %v3175_v58, %v3176_v63  ;;  %v3629_v10 = vsub.f32 %v3558_v4, %v3628_v6 }
 0x39f   : > { %15641 = vmatpush3.msra.mxu0 %v17422_v17  ;;  %15666 = vmatpush3.msra.mxu1 %v2765_v41  ;;  %v2652_v46 = vsel %vm2173_vm3, %v2195_v43, 0 }
 0x3a0   : > { %15642 = vmatprep.mubr.msk.f32.mxu0 %vm17082_vm1, %v19435_v52  ;;  %15650 = vmatprep.subr.mxu0 %v19435_v52  ;;  %v2720_v47 = vand.u32 4294901760, %v2652_v46  ;;  %v3178_v9 = vand.u32 4294901760, %v3177_v5  ;;  %v3630_v12 = vand.u32 4294901760, %v3629_v10 }
 0x3a1   : > { %15667 = vmatprep.mubr.msk.f32.mxu1 %vm17082_vm1, %v19435_v52  ;;  %15675 = vmatprep.subr.mxu1 %v19435_v52 }
 0x3a2   : > { %15643 = vmatmul.mubr.f32.vlgmr.msra.gmra.mxu0 %v2269_v35  ;;  %v2721_v51 = vsub.f32 %v2652_v46, %v2720_v47  ;;  %15668 = vmatmul.mubr.f32.vlgmr.msra.gmra.mxu1 %v2720_v47  ;;  %v3631_v13 = vsub.f32 %v3629_v10, %v3630_v12 }
 0x3a3   : > { %15651 = vmatpush3.msra.mxu0 %v2311_v19  ;;  %15676 = vmatpush3.msra.mxu1 %v2685_v26 }
 0x3a4   : > { %15652 = vmatprep.mubr.msk.f32.mxu0 %vm17082_vm1, %v19435_v52  ;;  %15660 = vmatprep.subr.mxu0 %v19435_v52  ;;  %v2722_v54 = vand.u32 4294901760, %v2721_v51  ;;  %v3632_v14 = vand.u32 4294901760, %v3631_v13 }
 0x3a5   : > { %15677 = vmatprep.mubr.msk.f32.mxu1 %vm17082_vm1, %v19435_v52  ;;  %15685 = vmatprep.subr.mxu1 %v19435_v52 }
 0x3a6   : > { %15653 = vmatmul.mubr.f32.vlgmr.msra.gmra.mxu0 %v2268_v33  ;;  %15678 = vmatmul.mubr.f32.vlgmr.msra.gmra.mxu1 %v2722_v54  ;;  %v2723_v57 = vsub.f32 %v2721_v51, %v2722_v54 }
 0x3a7   : > { %15661 = vmatpush3.msra.mxu0 %v2685_v26  ;;  %15686 = vmatpush3.msra.mxu1 %v2685_v26 }
 0x3a8   : > { %15662 = vmatprep.mubr.msk.f32.mxu0 %vm17082_vm1, %v19435_v52  ;;  %15670 = vmatprep.subr.mxu0 %v19435_v52  ;;  %v2724_v59 = vand.u32 4294901760, %v2723_v57 }
 0x3a9   : > { %15687 = vmatprep.mubr.msk.f32.mxu1 %vm17082_vm1, %v19435_v52  ;;  %15695 = vmatprep.subr.mxu1 %v19435_v52 }
 0x3aa   : > { %15663 = vmatmul.mubr.f32.vlgmr.msra.gmra.mxu0 %v2724_v59  ;;  %15688 = vmatmul.mubr.f32.vlgmr.msra.gmra.mxu1 %v2720_v47 }
 0x3ab   : > { %15671 = vmatpush3.msra.mxu0 %v17440_v29  ;;  %15696 = vmatpush3.xpose.msra.mxu1 %v3219_v61 }
 0x3ac   : > { %15672 = vmatprep.mubr.msk.f32.mxu0 %vm17082_vm1, %v19435_v52  ;;  %15680 = vmatprep.subr.mxu0 %v19435_v52 }
 0x3ad   : > { %15697 = vmatprep.mubr.msk.f32.mxu1 %vm17082_vm1, %v19435_v52  ;;  %15705 = vmatprep.subr.mxu1 %v19435_v52 }
 0x3ae   : > { %15673 = vmatmul.mubr.f32.vlgmr.msra.gmra.mxu0 %v2721_v51  ;;  %15698 = vmatmul.mubr.f32.vlgmr.msra.gmra.mxu1 %v17472_v53 }
 0x3af   : > { %15681 = vmatpush3.msra.mxu0 %v2763_v34  ;;  %15706 = vmatpush3.xpose.msra.mxu1 %v17451_v37 }
 0x3b0   : > { %15682 = vmatprep.mubr.msk.f32.mxu0 %vm17082_vm1, %v19435_v52  ;;  %15690 = vmatprep.subr.mxu0 %v19435_v52 }
 0x3b1   : > { %15707 = vmatprep.mubr.msk.f32.mxu1 %vm17082_vm1, %v19435_v52  ;;  %15715 = vmatprep.subr.mxu1 %v19435_v52 }
 0x3b2   : > { %15683 = vmatmul.mubr.f32.vlgmr.msra.gmra.mxu0 %v2720_v47  ;;  %15708 = vmatmul.mubr.f32.vlgmr.msra.gmra.mxu1 %v3176_v63 }
 0x3b3   : > { %15691 = vmatpush3.xpose.msra.mxu0 %v17451_v37  ;;  %15716 = vmatpush3.xpose.msra.mxu1 %v17451_v37 }
 0x3b4   : > { %15692 = vmatprep.mubr.msk.f32.mxu0 %vm17082_vm1, %v19435_v52  ;;  %15700 = vmatprep.subr.mxu0 %v19435_v52 }
 0x3b5   : > { %15717 = vmatprep.mubr.msk.f32.mxu1 %vm17082_vm1, %v19435_v52  ;;  %15725 = vmatprep.subr.mxu1 %v19435_v52 }
 0x3b6   : > { %15693 = vmatmul.mubr.f32.vlgmr.msra.gmra.mxu0 %v3178_v9  ;;  %15718 = vmatmul.mubr.f32.vlgmr.msra.gmra.mxu1 %v17472_v53 }
 0x3b7   : > { %15701 = vmatpush3.xpose.msra.mxu0 %v17457_v42  ;;  %15726 = vmatpush3.xpose.msra.mxu1 %v3673_v11 }
 0x3b8   : > { %15702 = vmatprep.mubr.msk.f32.mxu0 %vm17082_vm1, %v19435_v52  ;;  %15710 = vmatprep.subr.mxu0 %v19435_v52 }
 0x3b9   : > { %15727 = vmatprep.mubr.msk.f32.mxu1 %vm17082_vm1, %v19435_v52  ;;  %15735 = vmatprep.subr.mxu1 %v19435_v52 }
 0x3ba   : > { %15703 = vmatmul.mubr.f32.vlgmr.msra.gmra.mxu0 %v3175_v58  ;;  %15728 = vmatmul.mubr.f32.vlgmr.msra.gmra.mxu1 %v3628_v6 }
 0x3bb   : > { %15711 = vmatpush3.xpose.msra.mxu0 %v3217_v48  ;;  %15736 = vmatpush3.xpose.msra.mxu1 %v17477_v55 }
 0x3bc   : > { %15712 = vmatprep.mubr.msk.f32.mxu0 %vm17082_vm1, %v19435_v52  ;;  %15720 = vmatprep.subr.mxu0 %v19435_v52 }
 0x3bd   : > { %15737 = vmatprep.mubr.msk.f32.mxu1 %vm17082_vm1, %v19435_v52  ;;  %15745 = vmatprep.subr.mxu1 %v19435_v52 }
 0x3be   : > { %15713 = vmatmul.mubr.f32.vlgmr.msra.gmra.mxu0 %v17472_v53  ;;  %15738 = vmatmul.mubr.f32.vlgmr.msra.gmra.mxu1 %v3630_v12 }
 0x3bf   : > { %15721 = vmatpush3.xpose.msra.mxu0 %v17477_v55  ;;  %15746 = vmatpush3.xpose.msra.mxu1 %v17477_v55 }
 0x3c0   : > { %15722 = vmatprep.mubr.msk.f32.mxu0 %vm17082_vm1, %v19435_v52  ;;  %15730 = vmatprep.subr.mxu0 %v19435_v52 }
 0x3c1   : > { %15747 = vmatprep.mubr.msk.f32.mxu1 %vm17082_vm1, %v19435_v52  ;;  %15755 = vmatprep.subr.mxu1 %v19435_v52 }
 0x3c2   : > { %15723 = vmatmul.mubr.f32.vlgmr.msra.gmra.mxu0 %v3632_v14  ;;  %15748 = vmatmul.mubr.f32.vlgmr.msra.gmra.mxu1 %v3628_v6 }
 0x3c3   : > { %15731 = vmatpush3.xpose.msra.mxu0 %v17490_v60  ;;  %15732 = vmatprep.mubr.msk.f32.mxu0 %vm17082_vm1, %v19435_v52 }
 0x3c4   : > { %15740 = vmatprep.subr.mxu0 %v19435_v52  ;;  %15757 = vmatprep.mubr.msk.f32.mxu1 %vm17082_vm1, %v19435_v52 }
 0x3c6   : > { %15733 = vmatmul.mubr.f32.vlgmr.msra.gmra.mxu0 %v3629_v10 }
 0x3c7   : > { %15741 = vmatpush3.xpose.msra.mxu0 %v3671_v0  ;;  %15742 = vmatprep.mubr.msk.f32.mxu0 %vm17082_vm1, %v19435_v52 }
 0x3c8   : > { %15750 = vmatprep.subr.mxu0 %v19435_v52 }
 0x3ca   : > { %15743 = vmatmul.mubr.f32.vlgmr.msra.gmra.mxu0 %v3628_v6 }
 0x3cb   : > { %15752 = vmatprep.mubr.msk.f32.mxu0 %vm17082_vm1, %v19435_v52 }
 0x456   : > { %v2350_v15 = vpop.f32.mrf.mxu1 }
 0x458   : > { %v15639_v16 = vpop.f32.mrf.mxu1 }
 0x45a   : > { %v2498_v17 = vpop.f32.mrf.mxu1 }
 0x45c   : > { %v15649_v18 = vpop.f32.mrf.mxu1 }
 0x45e   : > { %v2274_v19 = vpop.f32.mrf.mxu0  ;;  %v2644_v20 = vpop.f32.mrf.mxu1 }
 0x45f   : > { %v2351_v21 = vadd.f32 %v2350_v15, %v2274_v19 }
 0x460   : > { %v15634_v22 = vpop.f32.mrf.mxu0  ;;  %v15659_v23 = vpop.f32.mrf.mxu1 }
 0x462   : > { %v2424_v24 = vpop.f32.mrf.mxu0  ;;  %v2802_v25 = vpop.f32.mrf.mxu1 }
 0x463   : > { %v2425_v26 = vadd.f32 %v2424_v24, %v2351_v21 }
 0x464   : > { %v15644_v27 = vpop.f32.mrf.mxu0  ;;  %v15669_v28 = vpop.f32.mrf.mxu1 }
 0x465   : > { %v2499_v29 = vadd.f32 %v2498_v17, %v2425_v26 }
 0x466   : > { %v2572_v30 = vpop.f32.mrf.mxu0  ;;  %v2950_v31 = vpop.f32.mrf.mxu1 }
 0x467   : > { %v2573_v32 = vadd.f32 %v2572_v30, %v2499_v29 }
 0x468   : > { %v15654_v33 = vpop.f32.mrf.mxu0  ;;  %v15679_v34 = vpop.f32.mrf.mxu1 }
 0x469   : > { %v17560_v3 = vadd.f32 %v2644_v20, %v2573_v32 }
 0x46a   : > { %v2726_v35 = vpop.f32.mrf.mxu0  ;;  %v3096_v7 = vpop.f32.mrf.mxu1 }
 0x46b   : > { %v2803_v36 = vadd.f32 %v2802_v25, %v2726_v35 }
 0x46c   : > { %v15664_v37 = vpop.f32.mrf.mxu0  ;;  %v15689_v38 = vpop.f32.mrf.mxu1 }
 0x46e   : > { %v2876_v39 = vpop.f32.mrf.mxu0  ;;  %v3256_v40 = vpop.f32.mrf.mxu1 }
 0x46f   : > { %v2877_v41 = vadd.f32 %v2876_v39, %v2803_v36 }
 0x470   : > { %v15674_v42 = vpop.f32.mrf.mxu0  ;;  %v15699_v43 = vpop.f32.mrf.mxu1 }
 0x471   : > { %v2951_v44 = vadd.f32 %v2950_v31, %v2877_v41 }
 0x472   : > { %v3024_v45 = vpop.f32.mrf.mxu0  ;;  %v3404_v46 = vpop.f32.mrf.mxu1 }
 0x473   : > { %v3025_v47 = vadd.f32 %v3024_v45, %v2951_v44 }
 0x474   : > { %v15684_v48 = vpop.f32.mrf.mxu0  ;;  %v15709_v49 = vpop.f32.mrf.mxu1 }
 0x475   : > { %v17562_v50 = vadd.f32 %v3096_v7, %v3025_v47 }
 0x476   : > { %v3180_v51 = vpop.f32.mrf.mxu0  ;;  %v3550_v53 = vpop.f32.mrf.mxu1 }
 0x477   : > { %v3257_v56 = vadd.f32 %v3256_v40, %v3180_v51 }
 0x478   : > { %v15694_v54 = vpop.f32.mrf.mxu0  ;;  %v15719_v55 = vpop.f32.mrf.mxu1 }
 0x47a   : > { %v3330_v57 = vpop.f32.mrf.mxu0  ;;  %v3710_v58 = vpop.f32.mrf.mxu1 }
 0x47b   : > { %v3331_v59 = vadd.f32 %v3330_v57, %v3257_v56 }
 0x47c   : > { %v15704_v60 = vpop.f32.mrf.mxu0  ;;  %v15729_v61 = vpop.f32.mrf.mxu1 }
 0x47d   : > { %v3405_v62 = vadd.f32 %v3404_v46, %v3331_v59 }
 0x47e   : > { %v3478_v63 = vpop.f32.mrf.mxu0  ;;  %v3858_v0 = vpop.f32.mrf.mxu1 }
 0x47f   : > { %v3479_v4 = vadd.f32 %v3478_v63, %v3405_v62  ;;  %v1261_v63 = vld [vmem:[%s19493_s30 + $0x18] sm:$0xff] }
 0x480   : > { %v15714_v5 = vpop.f32.mrf.mxu0  ;;  %v15739_v6 = vpop.f32.mrf.mxu1 }
 0x481   : > { %v3551_v8 = vadd.f32 %v3550_v53, %v3479_v4  ;;  %v1260_v4 = vld [vmem:[%s19493_s30 + $0x10] sm:$0xff] }
 0x482   : > { %v3634_v9 = vpop.f32.mrf.mxu0  ;;  %v4004_v10 = vpop.f32.mrf.mxu1  ;;  %v17615_v6 = vand.u32 4294901760, %v1260_v4 }
 0x483   : > { %v4008_v11 = vsel %vm2173_vm3, %v3551_v8, -inf  ;;  %v3711_v14 = vadd.f32 %v3710_v58, %v3634_v9 }
 0x484   : > { %v15749_v12 = vpop.f32.mrf.mxu1  ;;  %4009 = vmax.xlane.f32.xlu1 %v4008_v11  ;;  %v15724_v13 = vpop.f32.mrf.mxu0  ;;  %v17623_v9 = vsub.f32 %v1260_v4, %v17615_v6 }
 0x486   : > { %v3784_v15 = vpop.f32.mrf.mxu0  ;;  %v17630_v11 = vand.u32 4294901760, %v17623_v9 }
 0x487   : > { %v3785_v16 = vadd.f32 %v3784_v15, %v3711_v14 }
 0x488   : > { %v15734_v17 = vpop.f32.mrf.mxu0  ;;  %v5066_v13 = vsub.f32 %v17623_v9, %v17630_v11 }
 0x489   : > { %v3859_v18 = vadd.f32 %v3858_v0, %v3785_v16  ;;  %v17607_v0 = vand.u32 4294901760, %v1261_v63 }
 0x48a   : > { %v3932_v19 = vpop.f32.mrf.mxu0  ;;  %v5067_v14 = vand.u32 4294901760, %v5066_v13 }
 0x48b   : > { %v3933_v20 = vadd.f32 %v3932_v19, %v3859_v18  ;;  %v17613_v5 = vsub.f32 %v1261_v63, %v17607_v0 }
 0x48c   : > { %v15744_v21 = vpop.f32.mrf.mxu0 }
 0x48d   : > { %v4005_v22 = vadd.f32 %v4004_v10, %v3933_v20 }
 0x48f   : > { %v4011_v23 = vsel %vm2173_vm3, %v4005_v22, -inf }
 0x490   : > { %4012 = vmax.xlane.f32.xlu0 %v4011_v23 }
 0x4a6   : > { %4482 = vrot.lane.b32.xlu0 %v17358_v2, %s19421_s0 }
 0x50d   : > { %v4010_v24 = vpop.xlane.xlu1 %4009 }
 0x50e   : > { %v4014_v25 = vsub.f32 %v3551_v8, %v4010_v24  ;;  %v17620_v8 = vand.u32 4294901760, %v17613_v5 }
 0x510   : > { %v4016_v26 = vmul.f32 1.442695, %v4014_v25  ;;  %v5059_v10 = vsub.f32 %v17613_v5, %v17620_v8 }
 0x512   : > { %16961 = vpow2.f32 %v4016_v26  ;;  %v5060_v12 = vand.u32 4294901760, %v5059_v10  ;;  %v5443_v10 = vsel %vm1267_vm2, %v17560_v3, 0 }
 0x519   : > { %v4013_v27 = vpop.xlane.xlu0 %4012 }
 0x51a   : > { %v4015_v28 = vsub.f32 %v4005_v22, %v4013_v27 }
 0x51c   : > { %v4018_v29 = vmul.f32 1.442695, %v4015_v28 }
 0x51d   : > { %v4483_v37 = vpop.permute.xlu0 %4482 }
 0x51e   : > { %16963 = vpow2.f32 %v4018_v29  ;;  %v4519_v42 = vand.u32 4294901760, %v4483_v37 }
 0x51f   : > { %v16962_v30 = vpop.eup %16961 }
 0x520   : > { %v4020_v31 = vsel %vm2173_vm3, %v16962_v30, 0.0  ;;  %v4596_v46 = vsub.f32 %v4483_v37, %v4519_v42 }
 0x521   : > { %4021 = vadd.xlane.f32.xlu1 %v4020_v31 }
 0x522   : > { %v4597_v54 = vand.u32 4294901760, %v4596_v46 }
 0x524   : > { %v4598_v57 = vsub.f32 %v4596_v46, %v4597_v54 }
 0x526   : > { %v4599_v60 = vand.u32 4294901760, %v4598_v57 }
 0x52b   : > { %v16964_v32 = vpop.eup %16963 }
 0x52c   : > { %v4023_v33 = vsel %vm2173_vm3, %v16964_v32, 0.0 }
 0x52d   : > { %4024 = vadd.xlane.f32.xlu1 %v4023_v33 }
 0x53e   : > { %4030 = vrot.lane.b32.xlu1 %v17354_v1, %s19421_s0  ;;  %s19494_s0 = sld [smem:[#allocation28_spill]] }
 0x5aa   : > { %v4022_v2 = vpop.xlane.xlu1 %4021 }
 0x5ab   : > { %16965 = vrcp.f32 %v4022_v2 }
 0x5b6   : > { %v4025_v34 = vpop.xlane.xlu1 %4024 }
 0x5b7   : > { %16967 = vrcp.f32 %v4025_v34 }
 0x5b8   : > { %v16966_v35 = vpop.eup %16965 }
 0x5b9   : > { %v4027_v7 = vmul.f32 %v16966_v35, %v16962_v30 }
 0x5ba   : > { %v4031_v36 = vpop.permute.xlu1 %4030 }
 0x5bb   : > { %v4067_v38 = vand.u32 4294901760, %v4031_v36  ;;  %v4034_v39 = vsel %vm2173_vm3, %v4027_v7, 0  ;;  %v1259_v7 = vld [vmem:[%s19493_s30 + $0x8] sm:$0xff] }
 0x5bc   : > { %v4102_v40 = vand.u32 4294901760, %v4034_v39 }
 0x5bd   : > { %v4144_v41 = vsub.f32 %v4031_v36, %v4067_v38  ;;  %15751 = vmatpush3.msra.mxu0 %v4067_v38 }
 0x5be   : > { %15760 = vmatprep.subr.mxu0 %v19435_v52  ;;  %v4103_v43 = vsub.f32 %v4034_v39, %v4102_v40 }
 0x5bf   : > { %v4145_v44 = vand.u32 4294901760, %v4144_v41 }
 0x5c0   : > { %v4104_v1 = vand.u32 4294901760, %v4103_v43 }
 0x5c1   : > { %v4146_v45 = vsub.f32 %v4144_v41, %v4145_v44 }
 0x5c2   : > { %v4105_v47 = vsub.f32 %v4103_v43, %v4104_v1 }
 0x5c3   : > { %v4147_v48 = vand.u32 4294901760, %v4146_v45 }
 0x5c4   : > { %v16968_v49 = vpop.eup %16967  ;;  %v4106_v51 = vand.u32 4294901760, %v4105_v47 }
 0x5c5   : > { %v4029_v53 = vmul.f32 %v16968_v49, %v16964_v32  ;;  %15756 = vmatpush3.msra.mxu1 %v4147_v48 }
 0x5c6   : > { %15753 = vmatmul.mubr.f32.vlgmr.msra.gmra.mxu0 %v4106_v51  ;;  %15758 = vmatmul.mubr.f32.vlgmr.msra.gmra.mxu1 %v4102_v40 }
 0x5c7   : > { %15761 = vmatpush3.msra.mxu0 %v4144_v41  ;;  %15765 = vmatprep.subr.mxu1 %v19435_v52  ;;  %v4486_v55 = vsel %vm2173_vm3, %v4029_v53, 0 }
 0x5c8   : > { %15766 = vmatpush3.msra.mxu1 %v4067_v38  ;;  %15762 = vmatprep.mubr.msk.f32.mxu0 %vm17082_vm1, %v19435_v52  ;;  %v4554_v56 = vand.u32 4294901760, %v4486_v55 }
 0x5c9   : > { %15767 = vmatprep.mubr.msk.f32.mxu1 %vm17082_vm1, %v19435_v52  ;;  %15770 = vmatprep.subr.mxu0 %v19435_v52 }
 0x5ca   : > { %15775 = vmatprep.subr.mxu1 %v19435_v52  ;;  %15763 = vmatmul.mubr.f32.vlgmr.msra.gmra.mxu0 %v4103_v43  ;;  %v4555_v58 = vsub.f32 %v4486_v55, %v4554_v56  ;;  %v1258_v43 = vld [vmem:[%s19493_s30] sm:$0xff] }
 0x5cb   : > { %15768 = vmatmul.mubr.f32.vlgmr.msra.gmra.mxu1 %v4104_v1  ;;  %15771 = vmatpush3.msra.mxu0 %v4145_v44  ;;  %v17649_v49 = vand.u32 4294901760, %v1258_v43 }
 0x5cc   : > { %15776 = vmatpush3.msra.mxu1 %v4067_v38  ;;  %15772 = vmatprep.mubr.msk.f32.mxu0 %vm17082_vm1, %v19435_v52  ;;  %v4556_v59 = vand.u32 4294901760, %v4555_v58 }
 0x5cd   : > { %15777 = vmatprep.mubr.msk.f32.mxu1 %vm17082_vm1, %v19435_v52  ;;  %15780 = vmatprep.subr.mxu0 %v19435_v52 }
 0x5ce   : > { %15785 = vmatprep.subr.mxu1 %v19435_v52  ;;  %15773 = vmatmul.mubr.f32.vlgmr.msra.gmra.mxu0 %v4102_v40  ;;  %v4557_v61 = vsub.f32 %v4555_v58, %v4556_v59 }
 0x5cf   : > { %15778 = vmatmul.mubr.f32.vlgmr.msra.gmra.mxu1 %v4102_v40  ;;  %15781 = vmatpush3.msra.mxu0 %v4519_v42 }
 0x5d0   : > { %15786 = vmatpush3.msra.mxu1 %v4599_v60  ;;  %15782 = vmatprep.mubr.msk.f32.mxu0 %vm17082_vm1, %v19435_v52  ;;  %v4558_v62 = vand.u32 4294901760, %v4557_v61 }
 0x5d1   : > { %15787 = vmatprep.mubr.msk.f32.mxu1 %vm17082_vm1, %v19435_v52  ;;  %15790 = vmatprep.subr.mxu0 %v19435_v52 }
 0x5d2   : > { %15795 = vmatprep.subr.mxu1 %v19435_v52  ;;  %15783 = vmatmul.mubr.f32.vlgmr.msra.gmra.mxu0 %v4558_v62 }
 0x5d3   : > { %15788 = vmatmul.mubr.f32.vlgmr.msra.gmra.mxu1 %v4554_v56  ;;  %15791 = vmatpush3.msra.mxu0 %v4596_v46 }
 0x5d4   : > { %15796 = vmatpush3.msra.mxu1 %v4519_v42  ;;  %15792 = vmatprep.mubr.msk.f32.mxu0 %vm17082_vm1, %v19435_v52 }
 0x5d5   : > { %15797 = vmatprep.mubr.msk.f32.mxu1 %vm17082_vm1, %v19435_v52  ;;  %15800 = vmatprep.subr.mxu0 %v19435_v52 }
 0x5d6   : > { %15805 = vmatprep.subr.mxu1 %v19435_v52  ;;  %15793 = vmatmul.mubr.f32.vlgmr.msra.gmra.mxu0 %v4555_v58 }
 0x5d7   : > { %15798 = vmatmul.mubr.f32.vlgmr.msra.gmra.mxu1 %v4556_v59  ;;  %15801 = vmatpush3.msra.mxu0 %v4597_v54  ;;  %v17655_v59 = vsub.f32 %v1258_v43, %v17649_v49 }
 0x5d8   : > { %15806 = vmatpush3.msra.mxu1 %v4519_v42  ;;  %15802 = vmatprep.mubr.msk.f32.mxu0 %vm17082_vm1, %v19435_v52  ;;  %v17644_v42 = vand.u32 4294901760, %v1259_v7 }
 0x5d9   : > { %15807 = vmatprep.mubr.msk.f32.mxu1 %vm17082_vm1, %v19435_v52  ;;  %15810 = vmatprep.subr.mxu0 %v17607_v0  ;;  %v17662_v4 = vand.u32 4294901760, %v17655_v59 }
 0x5da   : > { %15803 = vmatmul.mubr.f32.vlgmr.msra.gmra.mxu0 %v4554_v56  ;;  %15817 = vmatprep.subr.mxu1 %v5060_v12  ;;  %v17652_v54 = vsub.f32 %v1259_v7, %v17644_v42 }
 0x5db   : > { %15808 = vmatmul.mubr.f32.vlgmr.msra.gmra.mxu1 %v4554_v56  ;;  %15811 = vmatpush3.msra.mxu0 %v17607_v0 }
 0x5dc   : > { %15812 = vmatprep.subr.mxu0 %v17615_v6  ;;  %15818 = vmatpush3.msra.mxu1 %v5060_v12  ;;  %v17659_v61 = vand.u32 4294901760, %v17652_v54 }
 0x5dd   : > { %15813 = vmatpush3.msra.mxu0 %v17615_v6  ;;  %15819 = vmatprep.subr.mxu1 %v5067_v14 }
 0x5de   : > { %15824 = vmatprep.subr.mxu0 %v17613_v5  ;;  %15820 = vmatpush3.msra.mxu1 %v5067_v14  ;;  %v5567_v12 = vsub.f32 %v17652_v54, %v17659_v61  ;;  %v17671_v14 = vand.u32 4294901760, %v5443_v10 }
 0x5df   : > { %15831 = vmatprep.subr.mxu1 %v17607_v0 }
 0x686   : > { %v4108_v15 = vpop.f32.mrf.mxu0  ;;  %v4184_v16 = vpop.f32.mrf.mxu1 }
 0x687   : > { %v4185_v19 = vadd.f32 %v4184_v16, %v4108_v15  ;;  %v5446_v15 = vsel %vm1267_vm2, %v17562_v50, 0  ;;  %v5574_v16 = vsub.f32 %v17655_v59, %v17662_v4  ;;  %v5516_v50 = vsub.f32 %v5443_v10, %v17671_v14 }
 0x688   : > { %v15754_v17 = vpop.f32.mrf.mxu0  ;;  %v15759_v18 = vpop.f32.mrf.mxu1 }
 0x689   : > { %v5568_v17 = vand.u32 4294901760, %v5567_v12 }
 0x68a   : > { %v4258_v20 = vpop.f32.mrf.mxu0 }
 0x68b   : > { %v4259_v21 = vadd.f32 %v4258_v20, %v4185_v19  ;;  %v4332_v22 = vpop.f32.mrf.mxu1  ;;  %v5525_v19 = vand.u32 4294901760, %v5446_v15  ;;  %v5575_v20 = vand.u32 4294901760, %v5574_v16 }
 0x68c   : > { %v15764_v23 = vpop.f32.mrf.mxu0 }
 0x68d   : > { %v4333_v24 = vadd.f32 %v4332_v22, %v4259_v21  ;;  %v15769_v25 = vpop.f32.mrf.mxu1  ;;  %v5517_v21 = vand.u32 4294901760, %v5516_v50 }
 0x68e   : > { %v4406_v26 = vpop.f32.mrf.mxu0 }
 0x68f   : > { %v4407_v27 = vadd.f32 %v4406_v26, %v4333_v24  ;;  %v4478_v28 = vpop.f32.mrf.mxu1 }
 0x690   : > { %v15774_v29 = vpop.f32.mrf.mxu0 }
 0x691   : > { %v4479_v30 = vadd.f32 %v4478_v28, %v4407_v27  ;;  %v15779_v31 = vpop.f32.mrf.mxu1 }
 0x692   : > { %v4560_v32 = vpop.f32.mrf.mxu0 }
 0x693   : > { %v4935_v33 = vsel %vm1267_vm2, %v4479_v30, 0  ;;  %v4636_v2 = vpop.f32.mrf.mxu1 }
 0x694   : > { %v17637_v34 = vand.u32 4294901760, %v4935_v33  ;;  %v15784_v35 = vpop.f32.mrf.mxu0  ;;  %v4637_v36 = vadd.f32 %v4636_v2, %v4560_v32 }
 0x695   : > { %v15789_v37 = vpop.f32.mrf.mxu1 }
 0x696   : > { %v5008_v38 = vsub.f32 %v4935_v33, %v17637_v34  ;;  %v4710_v39 = vpop.f32.mrf.mxu0  ;;  %15821 = vmatprep.mubr.f32.mxu1 %v17637_v34 }
 0x697   : > { %v4711_v40 = vadd.f32 %v4710_v39, %v4637_v36  ;;  %v4784_v41 = vpop.f32.mrf.mxu1 }
 0x698   : > { %v15794_v44 = vpop.f32.mrf.mxu0  ;;  %v5009_v1 = vand.u32 4294901760, %v5008_v38 }
 0x699   : > { %v4785_v45 = vadd.f32 %v4784_v41, %v4711_v40  ;;  %v15799_v46 = vpop.f32.mrf.mxu1 }
 0x69a   : > { %v4858_v47 = vpop.f32.mrf.mxu0  ;;  %v5010_v48 = vsub.f32 %v5008_v38, %v5009_v1 }
 0x69b   : > { %v4859_v51 = vadd.f32 %v4858_v47, %v4785_v45  ;;  %v4930_v53 = vpop.f32.mrf.mxu1 }
 0x69c   : > { %v15804_v55 = vpop.f32.mrf.mxu0  ;;  %v5011_v56 = vand.u32 4294901760, %v5010_v48 }
 0x69d   : > { %v4931_v57 = vadd.f32 %v4930_v53, %v4859_v51  ;;  %v15809_v58 = vpop.f32.mrf.mxu1 }
 0x69e   : > { %15814 = vmatprep.mubr.f32.mxu0 %v5011_v56 }
 0x69f   : > { %v4938_v60 = vsel %vm1267_vm2, %v4931_v57, 0 }
 0x6a0   : > { %v5017_v62 = vand.u32 4294901760, %v4938_v60 }
 0x6a2   : > { %v5018_v63 = vsub.f32 %v4938_v60, %v5017_v62  ;;  %15822 = vmatmul.mubr.f32.vlgmr.msra.gmra.mxu1 %v5017_v62 }
 0x6a3   : > { %15832 = vmatpush3.msra.mxu1 %v17607_v0  ;;  %15835 = vmatprep.mubr.f32.mxu1 %v5009_v1 }
 0x6a4   : > { %15833 = vmatprep.subr.mxu1 %v17615_v6  ;;  %v5019_v13 = vand.u32 4294901760, %v5018_v63 }
 0x6a5   : > { %15834 = vmatpush3.msra.mxu1 %v17615_v6 }
 0x6a6   : > { %15836 = vmatmul.mubr.f32.vlgmr.msra.gmra.mxu1 %v5019_v13  ;;  %15845 = vmatprep.subr.mxu1 %v17607_v0  ;;  %v5020_v3 = vsub.f32 %v5018_v63, %v5019_v13 }
 0x6a7   : > { %15846 = vmatpush3.msra.mxu1 %v17607_v0  ;;  %15849 = vmatprep.mubr.f32.mxu1 %v17637_v34  ;;  %v5526_v0 = vsub.f32 %v5446_v15, %v5525_v19  ;;  %v17017_v15 = vld [vmem:[%s17307_s4 + $0x8] sm:$0xff] }
 0x6a8   : > { %15847 = vmatprep.subr.mxu1 %v17615_v6  ;;  %v5021_v18 = vand.u32 4294901760, %v5020_v3 }
 0x6a9   : > { %15848 = vmatpush3.msra.mxu1 %v17615_v6  ;;  %v5518_v6 = vsub.f32 %v5516_v50, %v5517_v21 }
 0x6aa   : > { %15815 = vmatmul.mubr.f32.vlgmr.msra.gmra.mxu0 %v5021_v18  ;;  %15850 = vmatmul.mubr.f32.vlgmr.msra.gmra.mxu1 %v5017_v62  ;;  %v17018_v18 = vld [vmem:[%s17307_s4] sm:$0xff]  ;;  %s19518_s4 = smov 96  }
 0x6ab   : > { %15859 = vmatprep.subr.mxu1 %v5568_v17  ;;  %15825 = vmatpush3.msra.mxu0 %v17613_v5  ;;  %v5527_v5 = vand.u32 4294901760, %v5526_v0 }
 0x6ac   : > { %15828 = vmatprep.mubr.f32.mxu0 %v5008_v38  ;;  %15860 = vmatpush3.msra.mxu1 %v5568_v17 }
 0x6ad   : > { %15863 = vmatprep.mubr.f32.mxu1 %v17671_v14  ;;  %15826 = vmatprep.subr.mxu0 %v17623_v9 }
 0x6ae   : > { %15861 = vmatprep.subr.mxu1 %v5575_v20  ;;  %15827 = vmatpush3.msra.mxu0 %v17623_v9  ;;  %v5528_v9 = vsub.f32 %v5526_v0, %v5527_v5 }
 0x6af   : > { %15862 = vmatpush3.msra.mxu1 %v5575_v20  ;;  %15829 = vmatmul.mubr.f32.vlgmr.msra.gmra.mxu0 %v5018_v63  ;;  %v14756_v63 = vld [vmem:[%s19494_s0] ss:$0 sm:$0xff] }
 0x6b0   : > { %15838 = vmatprep.subr.mxu0 %v17620_v8  ;;  %15864 = vmatmul.mubr.f32.vlgmr.msra.gmra.mxu1 %v5525_v19 }
 0x6b1   : > { %15873 = vmatprep.subr.mxu1 %v17644_v42  ;;  %15839 = vmatpush3.msra.mxu0 %v17620_v8  ;;  %v5519_v8 = vand.u32 4294901760, %v5518_v6 }
 0x6b2   : > { %15842 = vmatprep.mubr.f32.mxu0 %v17637_v34  ;;  %15874 = vmatpush3.msra.mxu1 %v17644_v42 }
 0x6b3   : > { %15877 = vmatprep.mubr.f32.mxu1 %v5517_v21  ;;  %15840 = vmatprep.subr.mxu0 %v17630_v11 }
 0x6b4   : > { %15875 = vmatprep.subr.mxu1 %v17649_v49  ;;  %15841 = vmatpush3.msra.mxu0 %v17630_v11  ;;  %v5529_v11 = vand.u32 4294901760, %v5528_v9 }
 0x6b5   : > { %15876 = vmatpush3.msra.mxu1 %v17649_v49  ;;  %15843 = vmatmul.mubr.f32.vlgmr.msra.gmra.mxu0 %v5017_v62 }
 0x6b6   : > { %15852 = vmatprep.subr.mxu0 %v17644_v42  ;;  %15878 = vmatmul.mubr.f32.vlgmr.msra.gmra.mxu1 %v5527_v5 }
 0x6b7   : > { %15887 = vmatprep.subr.mxu1 %v17644_v42  ;;  %15853 = vmatpush3.msra.mxu0 %v17644_v42 }
 0x6b8   : > { %15856 = vmatprep.mubr.f32.mxu0 %v5519_v8  ;;  %15888 = vmatpush3.msra.mxu1 %v17644_v42 }
 0x6b9   : > { %15891 = vmatprep.mubr.f32.mxu1 %v17671_v14  ;;  %15854 = vmatprep.subr.mxu0 %v17649_v49 }
 0x6ba   : > { %15889 = vmatprep.subr.mxu1 %v17649_v49  ;;  %15855 = vmatpush3.msra.mxu0 %v17649_v49 }
 0x6bb   : > { %15890 = vmatpush3.msra.mxu1 %v17649_v49  ;;  %15857 = vmatmul.mubr.f32.vlgmr.msra.gmra.mxu0 %v5529_v11 }
 0x6bc   : > { %15866 = vmatprep.subr.mxu0 %v17652_v54  ;;  %15892 = vmatmul.mubr.f32.vlgmr.msra.gmra.mxu1 %v5525_v19 }
 0x6bd   : > { %15867 = vmatpush3.msra.mxu0 %v17652_v54  ;;  %15870 = vmatprep.mubr.f32.mxu0 %v5516_v50 }
 0x6be   : > { %15868 = vmatprep.subr.mxu0 %v17655_v59 }
 0x6bf   : > { %15869 = vmatpush3.msra.mxu0 %v17655_v59 }
 0x6c0   : > { %15871 = vmatmul.mubr.f32.vlgmr.msra.gmra.mxu0 %v5526_v0  ;;  %15880 = vmatprep.subr.mxu0 %v17659_v61 }
 0x6c1   : > { %15881 = vmatpush3.msra.mxu0 %v17659_v61  ;;  %15884 = vmatprep.mubr.f32.mxu0 %v17671_v14 }
 0x6c2   : > { %15882 = vmatprep.subr.mxu0 %v17662_v4 }
 0x6c3   : > { %15883 = vmatpush3.msra.mxu0 %v17662_v4 }
 0x6c4   : > { %15885 = vmatmul.mubr.f32.vlgmr.msra.gmra.mxu0 %v5525_v19 }
 0x762   : > { %v15823_v22 = vpop.f32.mrf.mxu1 }
 0x764   : > { %v5104_v23 = vpop.f32.mrf.mxu1 }
 0x766   : > { %v15837_v24 = vpop.f32.mrf.mxu1 }
 0x768   : > { %v5268_v25 = vpop.f32.mrf.mxu1 }
 0x76a   : > { %v15816_v26 = vpop.f32.mrf.mxu0  ;;  %v15851_v27 = vpop.f32.mrf.mxu1 }
 0x76b   : > { %v5111_v29 = vadd.f32 %v15823_v22, %v15816_v26  ;;  %v6007_v26 = vld [vmem:[%s19403_s10 + $0x8] sm:$0xff] }
 0x76c   : > { %v5013_v28 = vpop.f32.mrf.mxu0  ;;  %v5432_v32 = vpop.f32.mrf.mxu1 }
 0x76d   : > { %v5105_v31 = vadd.f32 %v5104_v23, %v5013_v28 }
 0x76f   : > { %v15830_v30 = vpop.f32.mrf.mxu0 }
 0x770   : > { %v5194_v33 = vadd.f32 %v15830_v30, %v5111_v29  ;;  %v15865_v7 = vpop.f32.mrf.mxu1  ;;  %v17736_v29 = vand.u32 4294901760, %v6007_v26  ;;  %v6006_v30 = vld [vmem:[%s19403_s10] sm:$0xff] }
 0x771   : > { %v5186_v2 = vpop.f32.mrf.mxu0 }
 0x772   : > { %v5187_v34 = vadd.f32 %v5186_v2, %v5105_v31  ;;  %v5277_v35 = vadd.f32 %v15837_v24, %v5194_v33  ;;  %v5612_v40 = vpop.f32.mrf.mxu1  ;;  %v6009_v24 = vld [vmem:[%s19403_s10 + $0x18] sm:$0xff]  ;;  %v17741_v31 = vand.u32 4294901760, %v6006_v30  ;;  %v17750_v2 = vsub.f32 %v6007_v26, %v17736_v29 }
 0x774   : > { %v5269_v36 = vadd.f32 %v5268_v25, %v5187_v34  ;;  %v6008_v25 = vld [vmem:[%s19403_s10 + $0x10] sm:$0xff]  ;;  %v17754_v34 = vsub.f32 %v6006_v30, %v17741_v31 }
 0x775   : > { %v15844_v37 = vpop.f32.mrf.mxu0  ;;  %v17734_v28 = vand.u32 4294901760, %v6008_v25 }
 0x776   : > { %v5360_v38 = vadd.f32 %v15844_v37, %v5277_v35  ;;  %v15879_v1 = vpop.f32.mrf.mxu1  ;;  %v17768_v37 = vand.u32 4294901760, %v17754_v34 }
 0x777   : > { %v5353_v39 = vpop.f32.mrf.mxu0  ;;  %v17747_v33 = vsub.f32 %v6008_v25, %v17734_v28 }
 0x778   : > { %v5354_v41 = vadd.f32 %v5353_v39, %v5269_v36  ;;  %v5439_v42 = vadd.f32 %v15851_v27, %v5360_v38  ;;  %v5776_v49 = vpop.f32.mrf.mxu1  ;;  %v17732_v27 = vand.u32 4294901760, %v6009_v24  ;;  %v17764_v36 = vand.u32 4294901760, %v17750_v2 }
 0x77a   : > { %v5433_v43 = vadd.f32 %v5432_v32, %v5354_v41  ;;  %v17744_v32 = vsub.f32 %v6009_v24, %v17732_v27  ;;  %15894 = vmatprep.subr.mxu0 %v17732_v27 }
 0x77b   : > { %v15858_v44 = vpop.f32.mrf.mxu0  ;;  %15895 = vmatpush3.msra.mxu0 %v17732_v27 }
 0x77c   : > { %v5532_v45 = vadd.f32 %v15858_v44, %v5439_v42  ;;  %v15893_v58 = vpop.f32.mrf.mxu1  ;;  %v17758_v35 = vand.u32 4294901760, %v17744_v32  ;;  %15896 = vmatprep.subr.mxu0 %v17734_v28 }
 0x77d   : > { %v5521_v46 = vpop.f32.mrf.mxu0  ;;  %15897 = vmatpush3.msra.mxu0 %v17734_v28 }
 0x77e   : > { %v5522_v47 = vadd.f32 %v5521_v46, %v5433_v43  ;;  %v5619_v48 = vadd.f32 %v15865_v7, %v5532_v45  ;;  %v5940_v12 = vpop.f32.mrf.mxu1  ;;  %v17761_v7 = vand.u32 4294901760, %v17747_v33  ;;  %v6140_v38 = vsub.f32 %v17744_v32, %v17758_v35  ;;  %15898 = vmatprep.subr.mxu0 %v17736_v29 }
 0x77f   : > { %15899 = vmatpush3.msra.mxu0 %v17736_v29  ;;  %v6161_v43 = vsub.f32 %v17754_v34, %v17768_v37 }
 0x780   : > { %v15872_v51 = vpop.f32.mrf.mxu0  ;;  %v5613_v53 = vadd.f32 %v5612_v40, %v5522_v47  ;;  %v6147_v39 = vsub.f32 %v17747_v33, %v17761_v7  ;;  %v6154_v40 = vsub.f32 %v17750_v2, %v17764_v36  ;;  %v6141_v41 = vand.u32 4294901760, %v6140_v38  ;;  %15900 = vmatprep.subr.mxu0 %v17741_v31 }
 0x781   : > { %v5702_v54 = vadd.f32 %v15872_v51, %v5619_v48  ;;  %15901 = vmatpush3.msra.mxu0 %v17741_v31 }
 0x782   : > { %v5694_v55 = vpop.f32.mrf.mxu0  ;;  %v6148_v42 = vand.u32 4294901760, %v6147_v39  ;;  %15905 = vmatprep.subr.mxu1 %v6141_v41  ;;  %v6155_v44 = vand.u32 4294901760, %v6154_v40  ;;  %15916 = vmatprep.subr.mxu0 %v17744_v32 }
 0x783   : > { %v5695_v56 = vadd.f32 %v5694_v55, %v5613_v53  ;;  %v5785_v57 = vadd.f32 %v15879_v1, %v5702_v54  ;;  %15906 = vmatpush3.msra.mxu1 %v6141_v41  ;;  %v6162_v1 = vand.u32 4294901760, %v6161_v43  ;;  %v14757_v54 = vld [vmem:[%s19495_s27] ss:$0 sm:$0xff] }
 0x784   : > { %v15886_v59 = vpop.f32.mrf.mxu0  ;;  %15907 = vmatprep.subr.mxu1 %v6148_v42  ;;  %v6561_v43 = vld [vmem:[%s19405_s12 + $0x40] sm:$0xff] }
 0x785   : > { %v5868_v60 = vadd.f32 %v15886_v59, %v5785_v57  ;;  %v5777_v61 = vadd.f32 %v5776_v49, %v5695_v56  ;;  %15908 = vmatpush3.msra.mxu1 %v6148_v42  ;;  %v14758_v57 = vld [vmem:[%s19496_s7] ss:$0 sm:$0xff] }
 0x786   : > { %v5861_v62 = vpop.f32.mrf.mxu0  ;;  %15909 = vmatprep.subr.mxu1 %v6155_v44 }
 0x787   : > { %v5947_v4 = vadd.f32 %v15893_v58, %v5868_v60  ;;  %v5862_v10 = vadd.f32 %v5861_v62, %v5777_v61  ;;  %15910 = vmatpush3.msra.mxu1 %v6155_v44 }
 0x788   : > { %15911 = vmatprep.subr.mxu1 %v6162_v1 }
 0x789   : > { %v5941_v13 = vadd.f32 %v5940_v12, %v5862_v10  ;;  %v5958_v14 = vadd.f32 %v14756_v63, %v5947_v4  ;;  %15912 = vmatpush3.msra.mxu1 %v6162_v1 }
 0x78a   : > { %15927 = vmatprep.subr.mxu1 %v17732_v27 }
 0x78b   : > { %v5960_v3 = vadd.f32 %v17017_v15, %v5958_v14  ;;  %v5957_v16 = vadd.f32 %v14756_v63, %v5941_v13 }
 0x78d   : > { %v5966_v17 = vsel %vm723_vm0, %v5960_v3, 0.0  ;;  %v5959_v19 = vadd.f32 %v17018_v18, %v5957_v16 }
 0x78e   : > { %5967 = vadd.xlane.f32.xlu0 %v5966_v17 }
 0x78f   : > { %v5963_v50 = vsel %vm723_vm0, %v5959_v19, 0.0 }
 0x790   : > { %5964 = vadd.xlane.f32.xlu1 %v5963_v50  ;;  %v6568_v50 = vld [vmem:[%s19405_s12 + $0x78] sm:$0xff] }
 0x817   : > { %v5968_v20 = vpop.xlane.xlu0 %5967 }
 0x818   : > { %v5971_v0 = vmul.f32 0.03125, %v5968_v20  ;;  %v17832_v20 = vand.u32 4294901760, %v6568_v50 }
 0x819   : > { %v5965_v21 = vpop.xlane.xlu1 %5964 }
 0x81a   : > { %v5973_v5 = vsub.f32 %v5960_v3, %v5971_v0  ;;  %v5970_v6 = vmul.f32 0.03125, %v5965_v21  ;;  %v6567_v0 = vld [vmem:[%s19405_s12 + $0x70] sm:$0xff]  ;;  %v17838_v21 = vsub.f32 %v6568_v50, %v17832_v20 }
 0x81c   : > { %v5972_v9 = vsub.f32 %v5959_v19, %v5970_v6  ;;  %v5975_v8 = vmul.f32 %v5973_v5, %v5973_v5  ;;  %v6566_v6 = vld [vmem:[%s19405_s12 + $0x68] sm:$0xff] }
 0x81e   : > { %v5979_v11 = vsel %vm723_vm0, %v5975_v8, 0.0  ;;  %v5974_v22 = vmul.f32 %v5972_v9, %v5972_v9 }
 0x81f   : > { %5980 = vadd.xlane.f32.xlu0 %v5979_v11  ;;  %v17853_v11 = vand.u32 4294901760, %v6566_v6 }
 0x820   : > { %v5976_v23 = vsel %vm723_vm0, %v5974_v22, 0.0  ;;  %v6565_v22 = vld [vmem:[%s19405_s12 + $0x60] sm:$0xff] }
 0x821   : > { %5977 = vadd.xlane.f32.xlu1 %v5976_v23  ;;  %v17866_v25 = vsub.f32 %v6566_v6, %v17853_v11  ;;  %v17868_v26 = vand.u32 4294901760, %v6565_v22 }
 0x823   : > { %v17878_v30 = vand.u32 4294901760, %v17866_v25 }
 0x8a8   : > { %v5981_v45 = vpop.xlane.xlu0 %5980 }
 0x8a9   : > { %v5983_v46 = vmul.f32 0.03125, %v5981_v45 }
 0x8aa   : > { %v5978_v47 = vpop.xlane.xlu1 %5977 }
 0x8ab   : > { %v5985_v48 = vadd.f32 1e-05, %v5983_v46  ;;  %v5982_v49 = vmul.f32 0.03125, %v5978_v47  ;;  %v17925_v46 = vand.u32 4294901760, %v6561_v43 }
 0x8ad   : > { %16969 = vrsqrt.f32 %v5985_v48  ;;  %v5984_v51 = vadd.f32 1e-05, %v5982_v49  ;;  %v6560_v48 = vld [vmem:[%s19405_s12 + $0x38] sm:$0xff] }
 0x8af   : > { %16971 = vrsqrt.f32 %v5984_v51 }
 0x8ba   : > { %v16970_v53 = vpop.eup %16969 }
 0x8bb   : > { %v5989_v55 = vmul.f32 %v16970_v53, %v5973_v5  ;;  %v17840_v5 = vand.u32 4294901760, %v6567_v0  ;;  %v17940_v53 = vsub.f32 %v6561_v43, %v17925_v46 }
 0x8bc   : > { %v16972_v56 = vpop.eup %16971 }
 0x8bd   : > { %v5988_v58 = vmul.f32 %v16972_v56, %v5972_v9  ;;  %v5997_v59 = vmul.f32 %v14757_v54, %v5989_v55  ;;  %v17848_v9 = vand.u32 4294901760, %v17838_v21  ;;  %v17851_v8 = vsub.f32 %v6567_v0, %v17840_v5  ;;  %v6559_v56 = vld [vmem:[%s19405_s12 + $0x30] sm:$0xff]  ;;  %v6556_v0 = vld [vmem:[%s19405_s12 + $0x18] sm:$0xff] }
 0x8bf   : > { %v5996_v60 = vmul.f32 %v14757_v54, %v5988_v58  ;;  %v17791_v61 = vadd.f32 %v14758_v57, %v5997_v59  ;;  %v6681_v23 = vsub.f32 %v17838_v21, %v17848_v9  ;;  %v17863_v24 = vand.u32 4294901760, %v17851_v8 }
 0x8c0   : > { %v17942_v54 = vand.u32 4294901760, %v6560_v48  ;;  %v17952_v59 = vand.u32 4294901760, %v17940_v53 }
 0x8c1   : > { %19497 = vst [vmem:[#allocation13_spill] sm:$0xff] %v17791_v61  ;;  %v17793_v62 = vadd.f32 %v14758_v57, %v5996_v60  ;;  %v6021_v63 = vsel %vm723_vm0, %v17791_v61, 0 }
 0x8c2   : > { %v6102_v4 = vand.u32 4294901760, %v6021_v63  ;;  %v17955_v60 = vsub.f32 %v6560_v48, %v17942_v54 }
 0x8c3   : > { %19498 = vst [vmem:[#allocation14_spill] sm:$0xff] %v17793_v62  ;;  %v6018_v10 = vsel %vm723_vm0, %v17793_v62, 0 }
 0x8c4   : > { %v6092_v12 = vand.u32 4294901760, %v6018_v10  ;;  %v6103_v13 = vsub.f32 %v6021_v63, %v6102_v4  ;;  %v17958_v63 = vand.u32 4294901760, %v6559_v56 }
 0x8c6   : > { %15913 = vmatprep.mubr.f32.mxu1 %v6092_v12  ;;  %v6093_v14 = vsub.f32 %v6018_v10, %v6092_v12  ;;  %v6104_v15 = vand.u32 4294901760, %v6103_v13 }
 0x8c7   : > { %15914 = vmatmul.mubr.f32.vlgmr.msra.gmra.mxu1 %v6102_v4 }
 0x8c8   : > { %15928 = vmatpush3.msra.mxu1 %v17732_v27  ;;  %v6094_v3 = vand.u32 4294901760, %v6093_v14  ;;  %v6105_v17 = vsub.f32 %v6103_v13, %v6104_v15 }
 0x8c9   : > { %15929 = vmatprep.subr.mxu1 %v17734_v28 }
 0x8ca   : > { %15930 = vmatpush3.msra.mxu1 %v17734_v28  ;;  %15935 = vmatprep.mubr.f32.mxu1 %v6094_v3  ;;  %v6095_v16 = vsub.f32 %v6093_v14, %v6094_v3  ;;  %v6106_v19 = vand.u32 4294901760, %v6105_v17  ;;  %v6557_v3 = vld [vmem:[%s19405_s12 + $0x20] sm:$0xff] }
 0x8cb   : > { %15931 = vmatprep.subr.mxu1 %v17736_v29 }
 0x8cc   : > { %15932 = vmatpush3.msra.mxu1 %v17736_v29  ;;  %v6096_v18 = vand.u32 4294901760, %v6095_v16 }
 0x8cd   : > { %15933 = vmatprep.subr.mxu1 %v17741_v31 }
 0x8ce   : > { %15934 = vmatpush3.msra.mxu1 %v17741_v31  ;;  %15902 = vmatprep.mubr.f32.mxu0 %v6096_v18 }
 0x8cf   : > { %15936 = vmatmul.mubr.f32.vlgmr.msra.gmra.mxu1 %v6104_v15  ;;  %15949 = vmatprep.subr.mxu1 %v17732_v27  ;;  %v17973_v15 = vsub.f32 %v6559_v56, %v17958_v63 }
 0x8d0   : > { %15903 = vmatmul.mubr.f32.vlgmr.msra.gmra.mxu0 %v6106_v19  ;;  %15950 = vmatpush3.msra.mxu1 %v17732_v27  ;;  %v6564_v27 = vld [vmem:[%s19405_s12 + $0x58] sm:$0xff]  ;;  %v17984_v19 = vand.u32 4294901760, %v6557_v3 }
 0x8d1   : > { %15917 = vmatpush3.msra.mxu0 %v17744_v32  ;;  %15957 = vmatprep.mubr.f32.mxu1 %v6092_v12  ;;  %v17884_v32 = vand.u32 4294901760, %v6564_v27  ;;  %v17988_v50 = vand.u32 4294901760, %v17973_v15 }
 0x8d2   : > { %15918 = vmatprep.subr.mxu0 %v17747_v33  ;;  %15924 = vmatprep.mubr.f32.mxu0 %v6093_v14 }
 0x8d3   : > { %15951 = vmatprep.subr.mxu1 %v17734_v28  ;;  %15919 = vmatpush3.msra.mxu0 %v17747_v33  ;;  %v6563_v33 = vld [vmem:[%s19405_s12 + $0x50] sm:$0xff]  ;;  %19500 = vst [vmem:[#allocation16_spill] sm:$0xff] %v17988_v50 }
 0x8d4   : > { %15952 = vmatpush3.msra.mxu1 %v17734_v28  ;;  %15920 = vmatprep.subr.mxu0 %v17750_v2  ;;  %v6682_v28 = vand.u32 4294901760, %v6681_v23  ;;  %v17998_v23 = vsub.f32 %v6557_v3, %v17984_v19 }
 0x8d5   : > { %15953 = vmatprep.subr.mxu1 %v17736_v29  ;;  %15921 = vmatpush3.msra.mxu0 %v17750_v2 }
 0x8d6   : > { %15954 = vmatpush3.msra.mxu1 %v17736_v29  ;;  %15922 = vmatprep.subr.mxu0 %v17754_v34  ;;  %v6688_v29 = vsub.f32 %v17851_v8, %v17863_v24 }
 0x8d7   : > { %15955 = vmatprep.subr.mxu1 %v17741_v31  ;;  %15923 = vmatpush3.msra.mxu0 %v17754_v34  ;;  %v6695_v34 = vsub.f32 %v17866_v25, %v17878_v30 }
 0x8d8   : > { %15956 = vmatpush3.msra.mxu1 %v17741_v31  ;;  %15925 = vmatmul.mubr.f32.vlgmr.msra.gmra.mxu0 %v6103_v13  ;;  %v17881_v31 = vsub.f32 %v6565_v22, %v17868_v26  ;;  %v6689_v2 = vand.u32 4294901760, %v6688_v29  ;;  %v17967_v13 = vand.u32 4294901760, %v17955_v60  ;;  %v6555_v29 = vld [vmem:[%s19405_s12 + $0x10] sm:$0xff] }
 0x8d9   : > { %15938 = vmatprep.subr.mxu0 %v17758_v35  ;;  %15958 = vmatmul.mubr.f32.vlgmr.msra.gmra.mxu1 %v6102_v4  ;;  %v6696_v38 = vand.u32 4294901760, %v6695_v34 }
 0x8da   : > { %15939 = vmatpush3.msra.mxu0 %v17758_v35  ;;  %15946 = vmatprep.mubr.f32.mxu0 %v6092_v12  ;;  %v17893_v35 = vand.u32 4294901760, %v17881_v31  ;;  %v6730_v12 = vsub.f32 %v17940_v53, %v17952_v59  ;;  %19499 = vst [vmem:[#allocation15_spill] sm:$0xff] %v17967_v13  ;;  %v6737_v17 = vsub.f32 %v17955_v60, %v17967_v13 }
 0x8db   : > { %15940 = vmatprep.subr.mxu0 %v17761_v7  ;;  %15995 = vmatprep.subr.mxu1 %v6682_v28 }
 0x8dc   : > { %15941 = vmatpush3.msra.mxu0 %v17761_v7  ;;  %v17895_v7 = vand.u32 4294901760, %v6563_v33  ;;  %15996 = vmatpush3.msra.mxu1 %v6682_v28  ;;  %v6702_v39 = vsub.f32 %v17881_v31, %v17893_v35  ;;  %v6731_v16 = vand.u32 4294901760, %v6730_v12  ;;  %v6738_v6 = vand.u32 4294901760, %v6737_v17 }
 0x8dd   : > { %15942 = vmatprep.subr.mxu0 %v17764_v36  ;;  %15997 = vmatprep.subr.mxu1 %v6689_v2  ;;  %v6744_v28 = vsub.f32 %v17973_v15, %v17988_v50 }
 0x8de   : > { %15943 = vmatpush3.msra.mxu0 %v17764_v36  ;;  %v17898_v36 = vsub.f32 %v6564_v27, %v17884_v32  ;;  %v17907_v40 = vsub.f32 %v6563_v33, %v17895_v7  ;;  %15998 = vmatpush3.msra.mxu1 %v6689_v2  ;;  %v6703_v44 = vand.u32 4294901760, %v6702_v39  ;;  %v18000_v27 = vand.u32 4294901760, %v6556_v0  ;;  %v6554_v39 = vld [vmem:[%s19405_s12 + $0x8] sm:$0xff] }
 0x8df   : > { %15944 = vmatprep.subr.mxu0 %v17768_v37  ;;  %15999 = vmatprep.subr.mxu1 %v6696_v38  ;;  %v18012_v2 = vand.u32 4294901760, %v17998_v23 }
 0x8e0   : > { %15945 = vmatpush3.msra.mxu0 %v17768_v37  ;;  %v6562_v37 = vld [vmem:[%s19405_s12 + $0x48] sm:$0xff]  ;;  %v17913_v42 = vand.u32 4294901760, %v17898_v36  ;;  %v17920_v1 = vand.u32 4294901760, %v17907_v40  ;;  %16000 = vmatpush3.msra.mxu1 %v6696_v38  ;;  %v18015_v34 = vsub.f32 %v6556_v0, %v18000_v27  ;;  %v6745_v38 = vand.u32 4294901760, %v6744_v28 }
 0x8e1   : > { %15947 = vmatmul.mubr.f32.vlgmr.msra.gmra.mxu0 %v6102_v4  ;;  %15960 = vmatprep.subr.mxu0 %v17832_v20  ;;  %v17909_v41 = vand.u32 4294901760, %v6562_v37  ;;  %v6558_v4 = vld [vmem:[%s19405_s12 + $0x28] sm:$0xff]  ;;  %19502 = vst [vmem:[#allocation18_spill] sm:$0xff] %v18012_v2 }
 0x8e2   : > { %15961 = vmatpush3.msra.mxu0 %v17832_v20  ;;  %v6709_v47 = vsub.f32 %v17898_v36, %v17913_v42  ;;  %16001 = vmatprep.subr.mxu1 %v6703_v44  ;;  %v6716_v49 = vsub.f32 %v17907_v40, %v17920_v1  ;;  %v17969_v14 = vand.u32 4294901760, %v6558_v4 }
 0x8e3   : > { %15962 = vmatprep.subr.mxu0 %v17840_v5  ;;  %v17923_v45 = vsub.f32 %v6562_v37, %v17909_v41  ;;  %16002 = vmatpush3.msra.mxu1 %v6703_v44  ;;  %v18017_v37 = vand.u32 4294901760, %v6555_v29  ;;  %v6758_v44 = vsub.f32 %v17998_v23, %v18012_v2 }
 0x8e4   : > { %15963 = vmatpush3.msra.mxu0 %v17840_v5  ;;  %v6710_v55 = vand.u32 4294901760, %v6709_v47  ;;  %v6717_v57 = vand.u32 4294901760, %v6716_v49  ;;  %v17982_v18 = vsub.f32 %v6558_v4, %v17969_v14  ;;  %v18027_v47 = vand.u32 4294901760, %v18015_v34 }
 0x8e5   : > { %15964 = vmatprep.subr.mxu0 %v17853_v11  ;;  %v17937_v51 = vand.u32 4294901760, %v17923_v45  ;;  %v18030_v48 = vsub.f32 %v6555_v29, %v18017_v37  ;;  %v18033_v49 = vand.u32 4294901760, %v6554_v39  ;;  %v6759_v56 = vand.u32 4294901760, %v6758_v44 }
 0x8e6   : > { %15965 = vmatpush3.msra.mxu0 %v17853_v11  ;;  %16003 = vmatprep.subr.mxu1 %v6710_v55  ;;  %v17995_v22 = vand.u32 4294901760, %v17982_v18  ;;  %19503 = vst [vmem:[#allocation19_spill] sm:$0xff] %v18027_v47 }
 0x8e7   : > { %15966 = vmatprep.subr.mxu0 %v17868_v26  ;;  %v6723_v58 = vsub.f32 %v17923_v45, %v17937_v51  ;;  %16004 = vmatpush3.msra.mxu1 %v6710_v55  ;;  %v6553_v55 = vld [vmem:[%s19405_s12] sm:$0xff] }
 0x8e8   : > { %15967 = vmatpush3.msra.mxu0 %v17868_v26  ;;  %16005 = vmatprep.subr.mxu1 %v6717_v57  ;;  %19501 = vst [vmem:[#allocation17_spill] sm:$0xff] %v17995_v22  ;;  %v6751_v33 = vsub.f32 %v17982_v18, %v17995_v22  ;;  %v18044_v4 = vand.u32 4294901760, %v6553_v55 }
 0x8e9   : > { %15968 = vmatprep.subr.mxu0 %v17884_v32  ;;  %v6724_v10 = vand.u32 4294901760, %v6723_v58  ;;  %16006 = vmatpush3.msra.mxu1 %v6717_v57  ;;  %v6765_v57 = vsub.f32 %v18015_v34, %v18027_v47  ;;  %v18042_v58 = vand.u32 4294901760, %v18030_v48 }
 0x8ea   : > { %15969 = vmatpush3.msra.mxu0 %v17884_v32  ;;  %v6752_v43 = vand.u32 4294901760, %v6751_v33 }
 0x8eb   : > { %15970 = vmatprep.subr.mxu0 %v17895_v7  ;;  %16007 = vmatprep.subr.mxu1 %v6724_v10  ;;  %19504 = vst [vmem:[#allocation20_spill] sm:$0xff] %v18042_v58  ;;  %v6766_v12 = vand.u32 4294901760, %v6765_v57  ;;  %v6772_v3 = vsub.f32 %v18030_v48, %v18042_v58 }
 0x8ec   : > { %15971 = vmatpush3.msra.mxu0 %v17895_v7  ;;  %16008 = vmatpush3.msra.mxu1 %v6724_v10  ;;  %v18048_v10 = vsub.f32 %v6554_v39, %v18033_v49 }
 0x8ed   : > { %15972 = vmatprep.subr.mxu0 %v17909_v41  ;;  %16009 = vmatprep.subr.mxu1 %v6731_v16  ;;  %v6773_v0 = vand.u32 4294901760, %v6772_v3 }
 0x8ee   : > { %15973 = vmatpush3.msra.mxu0 %v17909_v41  ;;  %16010 = vmatpush3.msra.mxu1 %v6731_v16  ;;  %v18054_v16 = vsub.f32 %v6553_v55, %v18044_v4  ;;  %v18058_v17 = vand.u32 4294901760, %v18048_v10 }
 0x8ef   : > { %15974 = vmatprep.subr.mxu0 %v17925_v46  ;;  %16011 = vmatprep.subr.mxu1 %v6738_v6 }
 0x8f0   : > { %15975 = vmatpush3.msra.mxu0 %v17925_v46  ;;  %16012 = vmatpush3.msra.mxu1 %v6738_v6  ;;  %19505 = vst [vmem:[#allocation21_spill] sm:$0xff] %v18058_v17  ;;  %v18062_v6 = vand.u32 4294901760, %v18054_v16  ;;  %v6779_v28 = vsub.f32 %v18048_v10, %v18058_v17 }
 0x8f1   : > { %15976 = vmatprep.subr.mxu0 %v17942_v54  ;;  %16013 = vmatprep.subr.mxu1 %v6745_v38 }
 0x8f2   : > { %15977 = vmatpush3.msra.mxu0 %v17942_v54  ;;  %16014 = vmatpush3.msra.mxu1 %v6745_v38  ;;  %19506 = vst [vmem:[#allocation22_spill] sm:$0xff] %v18062_v6  ;;  %v6786_v29 = vsub.f32 %v18054_v16, %v18062_v6  ;;  %v6780_v33 = vand.u32 4294901760, %v6779_v28 }
 0x8f3   : > { %15978 = vmatprep.subr.mxu0 %v17958_v63  ;;  %16015 = vmatprep.subr.mxu1 %v6752_v43 }
 0x8f4   : > { %15979 = vmatpush3.msra.mxu0 %v17958_v63  ;;  %16016 = vmatpush3.msra.mxu1 %v6752_v43  ;;  %v6787_v38 = vand.u32 4294901760, %v6786_v29  ;;  %v14759_v43 = vld [vmem:[%s19404_s11] ss:$0 sm:$0xff] }
 0x8f5   : > { %15980 = vmatprep.subr.mxu0 %v17969_v14  ;;  %16017 = vmatprep.subr.mxu1 %v6759_v56 }
 0x8f6   : > { %15981 = vmatpush3.msra.mxu0 %v17969_v14  ;;  %16018 = vmatpush3.msra.mxu1 %v6759_v56 }
 0x8f7   : > { %15982 = vmatprep.subr.mxu0 %v17984_v19  ;;  %16019 = vmatprep.subr.mxu1 %v6766_v12 }
 0x8f8   : > { %15983 = vmatpush3.msra.mxu0 %v17984_v19  ;;  %16020 = vmatpush3.msra.mxu1 %v6766_v12 }
 0x8f9   : > { %15984 = vmatprep.subr.mxu0 %v18000_v27  ;;  %16021 = vmatprep.subr.mxu1 %v6773_v0 }
 0x8fa   : > { %15985 = vmatpush3.msra.mxu0 %v18000_v27  ;;  %16022 = vmatpush3.msra.mxu1 %v6773_v0 }
 0x8fb   : > { %15986 = vmatprep.subr.mxu0 %v18017_v37  ;;  %16023 = vmatprep.subr.mxu1 %v6780_v33 }
 0x8fc   : > { %15987 = vmatpush3.msra.mxu0 %v18017_v37  ;;  %16024 = vmatpush3.msra.mxu1 %v6780_v33 }
 0x8fd   : > { %15988 = vmatprep.subr.mxu0 %v18033_v49  ;;  %16025 = vmatprep.subr.mxu1 %v6787_v38 }
 0x8fe   : > { %15989 = vmatpush3.msra.mxu0 %v18033_v49  ;;  %16026 = vmatpush3.msra.mxu1 %v6787_v38 }
 0x8ff   : > { %15990 = vmatprep.subr.mxu0 %v18044_v4  ;;  %16065 = vmatprep.subr.mxu1 %v17832_v20 }
 0x900   : > { %15991 = vmatpush3.msra.mxu0 %v18044_v4 }
 0x901   : > { %16030 = vmatprep.subr.mxu0 %v17838_v21 }
 0x987   : > { %v15915_v44 = vpop.f32.mrf.mxu1 }
 0x989   : > { %v6199_v3 = vpop.f32.mrf.mxu1 }
 0x98f   : > { %v15937_v0 = vpop.f32.mrf.mxu1 }
 0x990   : > { %v15904_v39 = vpop.f32.mrf.mxu0 }
 0x991   : > { %v6109_v56 = vadd.f32 %v15904_v39, %v14759_v43  ;;  %v6369_v38 = vpop.f32.mrf.mxu1 }
 0x992   : > { %v6098_v55 = vpop.f32.mrf.mxu0 }
 0x993   : > { %v6099_v57 = vadd.f32 %v14759_v43, %v6098_v55  ;;  %v6206_v28 = vadd.f32 %v15915_v44, %v6109_v56 }
 0x995   : > { %v6200_v33 = vadd.f32 %v6199_v3, %v6099_v57 }
 0x998   : > { %v15926_v12 = vpop.f32.mrf.mxu0 }
 0x999   : > { %v6293_v52 = vadd.f32 %v15926_v12, %v6206_v28  ;;  %v15959_v6 = vpop.f32.mrf.mxu1 }
 0x99a   : > { %v6285_v29 = vpop.f32.mrf.mxu0 }
 0x99b   : > { %v6286_v62 = vadd.f32 %v6285_v29, %v6200_v33  ;;  %v6378_v61 = vadd.f32 %v15937_v0, %v6293_v52  ;;  %v6541_v13 = vpop.f32.mrf.mxu1  ;;  %v14766_v33 = vld [vmem:[%s19490_s29 + $0x38] sm:$0xff] }
 0x99d   : > { %v6370_v47 = vadd.f32 %v6369_v38, %v6286_v62  ;;  %v14765_v38 = vld [vmem:[%s19490_s29 + $0x30] sm:$0xff] }
 0x9a1   : > { %v15948_v17 = vpop.f32.mrf.mxu0 }
 0x9a2   : > { %v6467_v58 = vadd.f32 %v15948_v17, %v6378_v61 }
 0x9a3   : > { %v6460_v2 = vpop.f32.mrf.mxu0 }
 0x9a4   : > { %v6548_v22 = vadd.f32 %v15959_v6, %v6467_v58  ;;  %v6461_v50 = vadd.f32 %v6460_v2, %v6370_v47  ;;  %v19515_v2 = vld [vmem:[#allocation13_spill] sm:$0xff]  ;;  %v19516_v47 = vld [vmem:[#allocation14_spill] sm:$0xff] }
 0x9a6   : > { %v6552_v39 = vmax.f32 %v6548_v22, 0.0  ;;  %v6542_v43 = vadd.f32 %v6541_v13, %v6461_v50 }
 0x9a8   : > { %v18074_v55 = vand.u32 4294901760, %v6552_v39  ;;  %v6551_v44 = vmax.f32 %v6542_v43, 0.0  ;;  %v18239_v43 = vand.u32 4294901760, %v14766_v33 }
 0x9aa   : > { %v18077_v56 = vsub.f32 %v6552_v39, %v18074_v55  ;;  %v18079_v57 = vand.u32 4294901760, %v6551_v44  ;;  %v14764_v39 = vld [vmem:[%s19490_s29 + $0x28] sm:$0xff] }
 0x9ac   : > { %v6669_v52 = vand.u32 4294901760, %v18077_v56  ;;  %v6658_v12 = vsub.f32 %v6551_v44, %v18079_v57  ;;  %16027 = vmatprep.mubr.f32.mxu1 %v18079_v57  ;;  %v18243_v44 = vand.u32 4294901760, %v14764_v39 }
 0x9ad   : > { %16028 = vmatmul.mubr.f32.vlgmr.msra.gmra.mxu1 %v18074_v55 }
 0x9ae   : > { %16066 = vmatpush3.msra.mxu1 %v17832_v20  ;;  %v6659_v61 = vand.u32 4294901760, %v6658_v12  ;;  %v6670_v62 = vsub.f32 %v18077_v56, %v6669_v52 }
 0x9af   : > { %16067 = vmatprep.subr.mxu1 %v17840_v5 }
 0x9b0   : > { %16068 = vmatpush3.msra.mxu1 %v17840_v5  ;;  %16097 = vmatprep.mubr.f32.mxu1 %v6659_v61  ;;  %v6660_v13 = vsub.f32 %v6658_v12, %v6659_v61  ;;  %v6671_v22 = vand.u32 4294901760, %v6670_v62  ;;  %v18257_v61 = vsub.f32 %v14764_v39, %v18243_v44 }
 0x9b1   : > { %16069 = vmatprep.subr.mxu1 %v17853_v11 }
 0x9b2   : > { %16070 = vmatpush3.msra.mxu1 %v17853_v11  ;;  %v6661_v50 = vand.u32 4294901760, %v6660_v13 }
 0x9b3   : > { %16071 = vmatprep.subr.mxu1 %v17868_v26 }
 0x9b4   : > { %16072 = vmatpush3.msra.mxu1 %v17868_v26  ;;  %15992 = vmatprep.mubr.f32.mxu0 %v6661_v50 }
 0x9b5   : > { %16073 = vmatprep.subr.mxu1 %v17884_v32  ;;  %15993 = vmatmul.mubr.f32.vlgmr.msra.gmra.mxu0 %v6671_v22  ;;  %v18271_v22 = vand.u32 4294901760, %v18257_v61 }
 0x9b6   : > { %16031 = vmatpush3.msra.mxu0 %v17838_v21  ;;  %16074 = vmatpush3.msra.mxu1 %v17884_v32  ;;  %v19508_v21 = vld [vmem:[#allocation16_spill] sm:$0xff] }
 0x9b7   : > { %16032 = vmatprep.subr.mxu0 %v17851_v8  ;;  %16062 = vmatprep.mubr.f32.mxu0 %v6658_v12 }
 0x9b8   : > { %16075 = vmatprep.subr.mxu1 %v17895_v7  ;;  %16033 = vmatpush3.msra.mxu0 %v17851_v8  ;;  %v19511_v8 = vld [vmem:[#allocation19_spill] sm:$0xff] }
 0x9b9   : > { %16076 = vmatpush3.msra.mxu1 %v17895_v7  ;;  %16034 = vmatprep.subr.mxu0 %v17866_v25 }
 0x9ba   : > { %16077 = vmatprep.subr.mxu1 %v17909_v41  ;;  %16035 = vmatpush3.msra.mxu0 %v17866_v25  ;;  %v19514_v25 = vld [vmem:[#allocation22_spill] sm:$0xff] }
 0x9bb   : > { %16078 = vmatpush3.msra.mxu1 %v17909_v41  ;;  %16036 = vmatprep.subr.mxu0 %v17881_v31 }
 0x9bc   : > { %16079 = vmatprep.subr.mxu1 %v17925_v46  ;;  %16037 = vmatpush3.msra.mxu0 %v17881_v31 }
 0x9bd   : > { %16080 = vmatpush3.msra.mxu1 %v17925_v46  ;;  %16038 = vmatprep.subr.mxu0 %v17898_v36 }
 0x9be   : > { %16081 = vmatprep.subr.mxu1 %v17942_v54  ;;  %16039 = vmatpush3.msra.mxu0 %v17898_v36 }
 0x9bf   : > { %16082 = vmatpush3.msra.mxu1 %v17942_v54  ;;  %16040 = vmatprep.subr.mxu0 %v17907_v40 }
 0x9c0   : > { %16083 = vmatprep.subr.mxu1 %v17958_v63  ;;  %16041 = vmatpush3.msra.mxu0 %v17907_v40 }
 0x9c1   : > { %16084 = vmatpush3.msra.mxu1 %v17958_v63  ;;  %16042 = vmatprep.subr.mxu0 %v17923_v45 }
 0x9c2   : > { %16085 = vmatprep.subr.mxu1 %v17969_v14  ;;  %16043 = vmatpush3.msra.mxu0 %v17923_v45 }
 0x9c3   : > { %16086 = vmatpush3.msra.mxu1 %v17969_v14  ;;  %16044 = vmatprep.subr.mxu0 %v17940_v53 }
 0x9c4   : > { %16087 = vmatprep.subr.mxu1 %v17984_v19  ;;  %16045 = vmatpush3.msra.mxu0 %v17940_v53 }
 0x9c5   : > { %16088 = vmatpush3.msra.mxu1 %v17984_v19  ;;  %16046 = vmatprep.subr.mxu0 %v17955_v60 }
 0x9c6   : > { %16089 = vmatprep.subr.mxu1 %v18000_v27  ;;  %16047 = vmatpush3.msra.mxu0 %v17955_v60 }
 0x9c7   : > { %16090 = vmatpush3.msra.mxu1 %v18000_v27  ;;  %16048 = vmatprep.subr.mxu0 %v17973_v15 }
 0x9c8   : > { %16091 = vmatprep.subr.mxu1 %v18017_v37  ;;  %16049 = vmatpush3.msra.mxu0 %v17973_v15 }
 0x9c9   : > { %16092 = vmatpush3.msra.mxu1 %v18017_v37  ;;  %16050 = vmatprep.subr.mxu0 %v17982_v18 }
 0x9ca   : > { %16093 = vmatprep.subr.mxu1 %v18033_v49  ;;  %16051 = vmatpush3.msra.mxu0 %v17982_v18 }
 0x9cb   : > { %16094 = vmatpush3.msra.mxu1 %v18033_v49  ;;  %16052 = vmatprep.subr.mxu0 %v17998_v23 }
 0x9cc   : > { %16095 = vmatprep.subr.mxu1 %v18044_v4  ;;  %16053 = vmatpush3.msra.mxu0 %v17998_v23 }
 0x9cd   : > { %16096 = vmatpush3.msra.mxu1 %v18044_v4  ;;  %16054 = vmatprep.subr.mxu0 %v18015_v34 }
 0x9ce   : > { %16098 = vmatmul.mubr.f32.vlgmr.msra.gmra.mxu1 %v6669_v52  ;;  %16135 = vmatprep.subr.mxu1 %v17832_v20  ;;  %v18251_v52 = vsub.f32 %v14766_v33, %v18239_v43 }
 0x9cf   : > { %16055 = vmatpush3.msra.mxu0 %v18015_v34  ;;  %16136 = vmatpush3.msra.mxu1 %v17832_v20  ;;  %v19507_v20 = vld [vmem:[#allocation15_spill] sm:$0xff] }
 0x9d0   : > { %16167 = vmatprep.mubr.f32.mxu1 %v18079_v57  ;;  %16056 = vmatprep.subr.mxu0 %v18030_v48  ;;  %v18265_v13 = vand.u32 4294901760, %v18251_v52 }
 0x9d1   : > { %16137 = vmatprep.subr.mxu1 %v17840_v5  ;;  %16057 = vmatpush3.msra.mxu0 %v18030_v48 }
 0x9d2   : > { %16138 = vmatpush3.msra.mxu1 %v17840_v5  ;;  %16058 = vmatprep.subr.mxu0 %v18048_v10  ;;  %v19509_v5 = vld [vmem:[#allocation17_spill] sm:$0xff] }
 0x9d3   : > { %16139 = vmatprep.subr.mxu1 %v17853_v11  ;;  %16059 = vmatpush3.msra.mxu0 %v18048_v10 }
 0x9d4   : > { %16140 = vmatpush3.msra.mxu1 %v17853_v11  ;;  %16060 = vmatprep.subr.mxu0 %v18054_v16  ;;  %v19512_v11 = vld [vmem:[#allocation20_spill] sm:$0xff] }
 0x9d5   : > { %16141 = vmatprep.subr.mxu1 %v17868_v26  ;;  %16061 = vmatpush3.msra.mxu0 %v18054_v16 }
 0x9d6   : > { %16142 = vmatpush3.msra.mxu1 %v17868_v26  ;;  %16063 = vmatmul.mubr.f32.vlgmr.msra.gmra.mxu0 %v18077_v56  ;;  %v14763_v56 = vld [vmem:[%s19490_s29 + $0x20] sm:$0xff] }
 0x9d7   : > { %16100 = vmatprep.subr.mxu0 %v17848_v9  ;;  %16143 = vmatprep.subr.mxu1 %v17884_v32 }
 0x9d8   : > { %16101 = vmatpush3.msra.mxu0 %v17848_v9  ;;  %16132 = vmatprep.mubr.f32.mxu0 %v18079_v57  ;;  %v19510_v9 = vld [vmem:[#allocation18_spill] sm:$0xff]  ;;  %v18248_v57 = vand.u32 4294901760, %v14763_v56 }
 0x9d9   : > { %16144 = vmatpush3.msra.mxu1 %v17884_v32  ;;  %16102 = vmatprep.subr.mxu0 %v17863_v24 }
 0x9da   : > { %16145 = vmatprep.subr.mxu1 %v17895_v7  ;;  %16103 = vmatpush3.msra.mxu0 %v17863_v24  ;;  %v19513_v24 = vld [vmem:[#allocation21_spill] sm:$0xff]  ;;  %v18261_v62 = vsub.f32 %v14763_v56, %v18248_v57 }
 0x9db   : > { %16146 = vmatpush3.msra.mxu1 %v17895_v7  ;;  %16104 = vmatprep.subr.mxu0 %v17878_v30 }
 0x9dc   : > { %16147 = vmatprep.subr.mxu1 %v17909_v41  ;;  %16105 = vmatpush3.msra.mxu0 %v17878_v30  ;;  %v14760_v30 = vld [vmem:[%s19406_s13] ss:$0 sm:$0xff] }
 0x9dd   : > { %16148 = vmatpush3.msra.mxu1 %v17909_v41  ;;  %16106 = vmatprep.subr.mxu0 %v17893_v35 }
 0x9de   : > { %16149 = vmatprep.subr.mxu1 %v17925_v46  ;;  %16107 = vmatpush3.msra.mxu0 %v17893_v35 }
 0x9df   : > { %16150 = vmatpush3.msra.mxu1 %v17925_v46  ;;  %16108 = vmatprep.subr.mxu0 %v17913_v42 }
 0x9e0   : > { %16151 = vmatprep.subr.mxu1 %v17942_v54  ;;  %16109 = vmatpush3.msra.mxu0 %v17913_v42 }
 0x9e1   : > { %16152 = vmatpush3.msra.mxu1 %v17942_v54  ;;  %16110 = vmatprep.subr.mxu0 %v17920_v1 }
 0x9e2   : > { %16153 = vmatprep.subr.mxu1 %v17958_v63  ;;  %16111 = vmatpush3.msra.mxu0 %v17920_v1 }
 0x9e3   : > { %16154 = vmatpush3.msra.mxu1 %v17958_v63  ;;  %16112 = vmatprep.subr.mxu0 %v17937_v51 }
 0x9e4   : > { %16155 = vmatprep.subr.mxu1 %v17969_v14  ;;  %16113 = vmatpush3.msra.mxu0 %v17937_v51 }
 0x9e5   : > { %16156 = vmatpush3.msra.mxu1 %v17969_v14  ;;  %16114 = vmatprep.subr.mxu0 %v17952_v59 }
 0x9e6   : > { %16157 = vmatprep.subr.mxu1 %v17984_v19  ;;  %16115 = vmatpush3.msra.mxu0 %v17952_v59 }
 0x9e7   : > { %16158 = vmatpush3.msra.mxu1 %v17984_v19  ;;  %16116 = vmatprep.subr.mxu0 %v19507_v20 }
 0x9e8   : > { %16159 = vmatprep.subr.mxu1 %v18000_v27  ;;  %16117 = vmatpush3.msra.mxu0 %v19507_v20  ;;  %v18275_v20 = vand.u32 4294901760, %v18261_v62 }
 0x9e9   : > { %16160 = vmatpush3.msra.mxu1 %v18000_v27  ;;  %16118 = vmatprep.subr.mxu0 %v19508_v21 }
 0x9ea   : > { %16161 = vmatprep.subr.mxu1 %v18017_v37  ;;  %16119 = vmatpush3.msra.mxu0 %v19508_v21  ;;  %v7442_v21 = vsub.f32 %v18251_v52, %v18265_v13 }
 0x9eb   : > { %16162 = vmatpush3.msra.mxu1 %v18017_v37  ;;  %16120 = vmatprep.subr.mxu0 %v19509_v5 }
 0x9ec   : > { %16163 = vmatprep.subr.mxu1 %v18033_v49  ;;  %16121 = vmatpush3.msra.mxu0 %v19509_v5 }
 0x9ed   : > { %16164 = vmatpush3.msra.mxu1 %v18033_v49  ;;  %16122 = vmatprep.subr.mxu0 %v19510_v9 }
 0x9ee   : > { %16165 = vmatprep.subr.mxu1 %v18044_v4  ;;  %16123 = vmatpush3.msra.mxu0 %v19510_v9  ;;  %v7456_v9 = vsub.f32 %v18257_v61, %v18271_v22 }
 0x9ef   : > { %16166 = vmatpush3.msra.mxu1 %v18044_v4  ;;  %16124 = vmatprep.subr.mxu0 %v19511_v8 }
 0x9f0   : > { %16168 = vmatmul.mubr.f32.vlgmr.msra.gmra.mxu1 %v18074_v55  ;;  %16125 = vmatpush3.msra.mxu0 %v19511_v8  ;;  %v7443_v8 = vand.u32 4294901760, %v7442_v21 }
 0x9f1   : > { %16126 = vmatprep.subr.mxu0 %v19512_v11 }
 0x9f2   : > { %16127 = vmatpush3.msra.mxu0 %v19512_v11  ;;  %16181 = vmatprep.subr.mxu1 %v7443_v8 }
 0x9f3   : > { %16128 = vmatprep.subr.mxu0 %v19513_v24  ;;  %16182 = vmatpush3.msra.mxu1 %v7443_v8 }
 0x9f4   : > { %16129 = vmatpush3.msra.mxu0 %v19513_v24  ;;  %v7463_v24 = vsub.f32 %v18261_v62, %v18275_v20 }
 0x9f5   : > { %16130 = vmatprep.subr.mxu0 %v19514_v25 }
 0x9f6   : > { %16131 = vmatpush3.msra.mxu0 %v19514_v25  ;;  %v7457_v25 = vand.u32 4294901760, %v7456_v9 }
 0x9f7   : > { %16133 = vmatmul.mubr.f32.vlgmr.msra.gmra.mxu0 %v18074_v55  ;;  %v18241_v55 = vand.u32 4294901760, %v14765_v38  ;;  %16170 = vmatprep.subr.mxu0 %v18239_v43 }
 0x9f8   : > { %16171 = vmatpush3.msra.mxu0 %v18239_v43 }
 0x9f9   : > { %v18254_v12 = vsub.f32 %v14765_v38, %v18241_v55  ;;  %16172 = vmatprep.subr.mxu0 %v18241_v55 }
 0x9fa   : > { %16173 = vmatpush3.msra.mxu0 %v18241_v55 }
 0x9fb   : > { %v18268_v50 = vand.u32 4294901760, %v18254_v12  ;;  %16174 = vmatprep.subr.mxu0 %v18243_v44 }
 0x9fc   : > { %16175 = vmatpush3.msra.mxu0 %v18243_v44 }
 0x9fd   : > { %v7449_v5 = vsub.f32 %v18254_v12, %v18268_v50  ;;  %16176 = vmatprep.subr.mxu0 %v18248_v57 }
 0x9fe   : > { %16177 = vmatpush3.msra.mxu0 %v18248_v57 }
 0x9ff   : > { %v7450_v11 = vand.u32 4294901760, %v7449_v5  ;;  %16192 = vmatprep.subr.mxu0 %v18251_v52 }
 0xa01   : > { %16183 = vmatprep.subr.mxu1 %v7450_v11 }
 0xa02   : > { %16184 = vmatpush3.msra.mxu1 %v7450_v11 }
 0xa03   : > { %16185 = vmatprep.subr.mxu1 %v7457_v25 }
 0xa04   : > { %16186 = vmatpush3.msra.mxu1 %v7457_v25 }
 0xa6d   : > { %v16029_v31 = vpop.f32.mrf.mxu1 }
 0xa6f   : > { %v6824_v40 = vpop.f32.mrf.mxu1 }
 0xa75   : > { %v15994_v26 = vpop.f32.mrf.mxu0 }
 0xa76   : > { %v6674_v35 = vadd.f32 %v15994_v26, %v14760_v30  ;;  %v7464_v26 = vand.u32 4294901760, %v7463_v24 }
 0xa77   : > { %v6663_v32 = vpop.f32.mrf.mxu0 }
 0xa78   : > { %v6664_v36 = vadd.f32 %v14760_v30, %v6663_v32  ;;  %v6831_v41 = vadd.f32 %v16029_v31, %v6674_v35  ;;  %16187 = vmatprep.subr.mxu1 %v7464_v26 }
 0xa79   : > { %16188 = vmatpush3.msra.mxu1 %v7464_v26 }
 0xa7a   : > { %v6825_v46 = vadd.f32 %v6824_v40, %v6664_v36  ;;  %16203 = vmatprep.subr.mxu1 %v18239_v43 }
 0xa8e   : > { %v16099_v42 = vpop.f32.mrf.mxu1 }
 0xa90   : > { %v7030_v53 = vpop.f32.mrf.mxu1 }
 0xa96   : > { %v16064_v7 = vpop.f32.mrf.mxu0 }
 0xa97   : > { %v6942_v45 = vadd.f32 %v16064_v7, %v6831_v41  ;;  %v14761_v41 = vld [vmem:[%s19401_s8] ss:$0 sm:$0xff] }
 0xa98   : > { %v6934_v1 = vpop.f32.mrf.mxu0 }
 0xa99   : > { %v6935_v51 = vadd.f32 %v6934_v1, %v6825_v46  ;;  %v7039_v54 = vadd.f32 %v16099_v42, %v6942_v45  ;;  %v14762_v45 = vld [vmem:[%s19402_s9] ss:$0 sm:$0xff] }
 0xa9b   : > { %v7031_v14 = vadd.f32 %v7030_v53, %v6935_v51 }
 0xab0   : > { %v16169_v59 = vpop.f32.mrf.mxu1 }
 0xab2   : > { %v7250_v23 = vpop.f32.mrf.mxu1 }
 0xab7   : > { %v16134_v60 = vpop.f32.mrf.mxu0 }
 0xab8   : > { %v7164_v63 = vadd.f32 %v16134_v60, %v7039_v54 }
 0xab9   : > { %v7157_v15 = vpop.f32.mrf.mxu0 }
 0xaba   : > { %v7257_v18 = vadd.f32 %v16169_v59, %v7164_v63  ;;  %v7158_v19 = vadd.f32 %v7157_v15, %v7031_v14 }
 0xabc   : > { %v7251_v27 = vadd.f32 %v7250_v23, %v7158_v19  ;;  %v7261_v34 = vadd.f32 %v7257_v18, %v19515_v2 }
 0xabe   : > { %v7267_v37 = vsel %vm723_vm0, %v7261_v34, 0.0  ;;  %v7260_v48 = vadd.f32 %v7251_v27, %v19516_v47 }
 0xabf   : > { %7268 = vadd.xlane.f32.xlu0 %v7267_v37 }
 0xac0   : > { %v7264_v49 = vsel %vm723_vm0, %v7260_v48, 0.0 }
 0xac1   : > { %7265 = vadd.xlane.f32.xlu1 %v7264_v49 }
 0xb48   : > { %v7269_v58 = vpop.xlane.xlu0 %7268 }
 0xb49   : > { %v7271_v4 = vmul.f32 0.03125, %v7269_v58  ;;  %v14768_v58 = vld [vmem:[%s19492_s25 + $0x1] ss:$0 sm:$0xff] }
 0xb4a   : > { %v7266_v10 = vpop.xlane.xlu1 %7265 }
 0xb4b   : > { %v7273_v16 = vsub.f32 %v7261_v34, %v7271_v4  ;;  %v7270_v17 = vmul.f32 0.03125, %v7266_v10 }
 0xb4d   : > { %v7272_v6 = vsub.f32 %v7260_v48, %v7270_v17  ;;  %v7275_v3 = vmul.f32 %v7273_v16, %v7273_v16  ;;  %v19517_v48 = vmov 0.0  }
 0xb4f   : > { %v7279_v28 = vsel %vm723_vm0, %v7275_v3, 0.0  ;;  %v7274_v0 = vmul.f32 %v7272_v6, %v7272_v6 }
 0xb50   : > { %7280 = vadd.xlane.f32.xlu0 %v7279_v28 }
 0xb51   : > { %v7276_v29 = vsel %vm723_vm0, %v7274_v0, 0.0 }
 0xb52   : > { %7277 = vadd.xlane.f32.xlu1 %v7276_v29 }
 0xbd9   : > { %v7281_v30 = vpop.xlane.xlu0 %7280 }
 0xbda   : > { %v7283_v31 = vmul.f32 0.03125, %v7281_v30 }
 0xbdb   : > { %v7278_v32 = vpop.xlane.xlu1 %7277 }
 0xbdc   : > { %v7285_v35 = vadd.f32 1e-05, %v7283_v31  ;;  %v7282_v7 = vmul.f32 0.03125, %v7278_v32 }
 0xbde   : > { %16973 = vrsqrt.f32 %v7285_v35  ;;  %v7284_v36 = vadd.f32 1e-05, %v7282_v7 }
 0xbe0   : > { %16975 = vrsqrt.f32 %v7284_v36 }
 0xbeb   : > { %v16974_v40 = vpop.eup %16973 }
 0xbec   : > { %v7289_v42 = vmul.f32 %v16974_v40, %v7273_v16 }
 0xbed   : > { %v16976_v1 = vpop.eup %16975 }
 0xbee   : > { %v7288_v46 = vmul.f32 %v16976_v1, %v7272_v6  ;;  %v7297_v51 = vmul.f32 %v14761_v41, %v7289_v42 }
 0xbf0   : > { %v7296_v53 = vmul.f32 %v14761_v41, %v7288_v46  ;;  %v18298_v54 = vadd.f32 %v14762_v45, %v7297_v51 }
 0xbf2   : > { %v18300_v59 = vadd.f32 %v14762_v45, %v7296_v53  ;;  %v7323_v60 = vsel %vm723_vm0, %v18298_v54, 0 }
 0xbf3   : > { %v7404_v63 = vand.u32 4294901760, %v7323_v60 }
 0xbf4   : > { %v7320_v14 = vsel %vm723_vm0, %v18300_v59, 0 }
 0xbf5   : > { %v7394_v15 = vand.u32 4294901760, %v7320_v14  ;;  %v7405_v18 = vsub.f32 %v7323_v60, %v7404_v63 }
 0xbf7   : > { %16189 = vmatprep.mubr.f32.mxu1 %v7394_v15  ;;  %v7395_v19 = vsub.f32 %v7320_v14, %v7394_v15  ;;  %v7406_v23 = vand.u32 4294901760, %v7405_v18 }
 0xbf8   : > { %16190 = vmatmul.mubr.f32.vlgmr.msra.gmra.mxu1 %v7404_v63 }
 0xbf9   : > { %16204 = vmatpush3.msra.mxu1 %v18239_v43  ;;  %v7396_v27 = vand.u32 4294901760, %v7395_v19  ;;  %v7407_v34 = vsub.f32 %v7405_v18, %v7406_v23 }
 0xbfa   : > { %16205 = vmatprep.subr.mxu1 %v18241_v55 }
 0xbfb   : > { %16206 = vmatpush3.msra.mxu1 %v18241_v55  ;;  %16211 = vmatprep.mubr.f32.mxu1 %v7396_v27  ;;  %v7397_v2 = vsub.f32 %v7395_v19, %v7396_v27  ;;  %v7408_v47 = vand.u32 4294901760, %v7407_v34 }
 0xbfc   : > { %16207 = vmatprep.subr.mxu1 %v18243_v44 }
 0xbfd   : > { %16208 = vmatpush3.msra.mxu1 %v18243_v44  ;;  %v7398_v37 = vand.u32 4294901760, %v7397_v2 }
 0xbfe   : > { %16209 = vmatprep.subr.mxu1 %v18248_v57 }
 0xbff   : > { %16210 = vmatpush3.msra.mxu1 %v18248_v57  ;;  %16178 = vmatprep.mubr.f32.mxu0 %v7398_v37 }
 0xc00   : > { %16212 = vmatmul.mubr.f32.vlgmr.msra.gmra.mxu1 %v7406_v23  ;;  %16225 = vmatprep.subr.mxu1 %v18239_v43 }
 0xc01   : > { %16179 = vmatmul.mubr.f32.vlgmr.msra.gmra.mxu0 %v7408_v47  ;;  %16226 = vmatpush3.msra.mxu1 %v18239_v43 }
 0xc02   : > { %16193 = vmatpush3.msra.mxu0 %v18251_v52  ;;  %16233 = vmatprep.mubr.f32.mxu1 %v7394_v15 }
 0xc03   : > { %16194 = vmatprep.subr.mxu0 %v18254_v12  ;;  %16200 = vmatprep.mubr.f32.mxu0 %v7395_v19 }
 0xc04   : > { %16227 = vmatprep.subr.mxu1 %v18241_v55  ;;  %16195 = vmatpush3.msra.mxu0 %v18254_v12 }
 0xc05   : > { %16228 = vmatpush3.msra.mxu1 %v18241_v55  ;;  %16196 = vmatprep.subr.mxu0 %v18257_v61 }
 0xc06   : > { %16229 = vmatprep.subr.mxu1 %v18243_v44  ;;  %16197 = vmatpush3.msra.mxu0 %v18257_v61 }
 0xc07   : > { %16230 = vmatpush3.msra.mxu1 %v18243_v44  ;;  %16198 = vmatprep.subr.mxu0 %v18261_v62 }
 0xc08   : > { %16231 = vmatprep.subr.mxu1 %v18248_v57  ;;  %16199 = vmatpush3.msra.mxu0 %v18261_v62 }
 0xc09   : > { %16232 = vmatpush3.msra.mxu1 %v18248_v57  ;;  %16201 = vmatmul.mubr.f32.vlgmr.msra.gmra.mxu0 %v7405_v18 }
 0xc0a   : > { %16214 = vmatprep.subr.mxu0 %v18265_v13  ;;  %16234 = vmatmul.mubr.f32.vlgmr.msra.gmra.mxu1 %v7404_v63 }
 0xc0b   : > { %16215 = vmatpush3.msra.mxu0 %v18265_v13  ;;  %16222 = vmatprep.mubr.f32.mxu0 %v7394_v15 }
 0xc0c   : > { %16216 = vmatprep.subr.mxu0 %v18268_v50  ;;  %16241 = vmatprep.subr.mxu1 %v19517_v48 }
 0xc0d   : > { %16217 = vmatpush3.msra.mxu0 %v18268_v50  ;;  %16243 = vmatprep.mubr.msk.f32.mxu1 %vm17082_vm1, %v19517_v48 }
 0xc0e   : > { %16218 = vmatprep.subr.mxu0 %v18271_v22 }
 0xc0f   : > { %16219 = vmatpush3.msra.mxu0 %v18271_v22 }
 0xc10   : > { %16220 = vmatprep.subr.mxu0 %v18275_v20 }
 0xc11   : > { %16221 = vmatpush3.msra.mxu0 %v18275_v20 }
 0xc12   : > { %16223 = vmatmul.mubr.f32.vlgmr.msra.gmra.mxu0 %v7404_v63  ;;  %16236 = vmatprep.subr.mxu0 %v19517_v48 }
 0xc13   : > { %16238 = vmatprep.mubr.msk.f32.mxu0 %vm17082_vm1, %v19517_v48 }
 0xcb8   : > { %v16191_v4 = vpop.f32.mrf.mxu1 }
 0xcba   : > { %v7501_v3 = vpop.f32.mrf.mxu1 }
 0xcc0   : > { %v16213_v0 = vpop.f32.mrf.mxu1 }
 0xcc1   : > { %v16180_v49 = vpop.f32.mrf.mxu0 }
 0xcc2   : > { %v7411_v16 = vadd.f32 %v16180_v49, %v14768_v58  ;;  %v7671_v43 = vpop.f32.mrf.mxu1 }
 0xcc3   : > { %v7400_v10 = vpop.f32.mrf.mxu0 }
 0xcc4   : > { %v7401_v17 = vadd.f32 %v14768_v58, %v7400_v10  ;;  %v7508_v28 = vadd.f32 %v16191_v4, %v7411_v16 }
 0xcc6   : > { %v7502_v38 = vadd.f32 %v7501_v3, %v7401_v17 }
 0xcc9   : > { %v16202_v6 = vpop.f32.mrf.mxu0 }
 0xcca   : > { %v7595_v33 = vadd.f32 %v16202_v6, %v7508_v28  ;;  %v16235_v44 = vpop.f32.mrf.mxu1 }
 0xccb   : > { %v7587_v29 = vpop.f32.mrf.mxu0 }
 0xccc   : > { %v7588_v39 = vadd.f32 %v7587_v29, %v7502_v38  ;;  %v7680_v55 = vadd.f32 %v16213_v0, %v7595_v33  ;;  %v7843_v13 = vpop.f32.mrf.mxu1 }
 0xcce   : > { %v7672_v52 = vadd.f32 %v7671_v43, %v7588_v39 }
 0xcd2   : > { %v16224_v56 = vpop.f32.mrf.mxu0 }
 0xcd3   : > { %v7769_v57 = vadd.f32 %v16224_v56, %v7680_v55 }
 0xcd4   : > { %v7762_v12 = vpop.f32.mrf.mxu0 }
 0xcd5   : > { %v18345_v61 = vadd.f32 %v16235_v44, %v7769_v57  ;;  %v7763_v62 = vadd.f32 %v7762_v12, %v7672_v52 }
 0xcd7   : > { %v18347_v50 = vadd.f32 %v7843_v13, %v7763_v62  ;;  %8315 = vrot.lane.b32.xlu0 %v18345_v61, %s19518_s4  ;;  %v18359_v9 = vmul.f32 0.25, %v18345_v61 }
 0xcd9   : > { %7861 = vrot.lane.b32.xlu1 %v18347_v50, %s19518_s4  ;;  %v18354_v22 = vmul.f32 0.25, %v18347_v50  ;;  %v8318_v11 = vsel %vm1267_vm2, %v18359_v9, 0  ;;  %s14819_s4 = sshll.u32 %s17237_s16, 5 }
 0xcda   : > { %v8388_v31 = vand.u32 4294901760, %v8318_v11 }
 0xcdb   : > { %v7864_v20 = vsel %vm1267_vm2, %v18354_v22, 0 }
 0xcdc   : > { %v7934_v21 = vand.u32 4294901760, %v7864_v20  ;;  %v8389_v40 = vsub.f32 %v8318_v11, %v8388_v31 }
 0xcde   : > { %v7935_v5 = vsub.f32 %v7864_v20, %v7934_v21  ;;  %v8390_v45 = vand.u32 4294901760, %v8389_v40 }
 0xce0   : > { %v7936_v8 = vand.u32 4294901760, %v7935_v5  ;;  %v8391_v53 = vsub.f32 %v8389_v40, %v8390_v45 }
 0xce2   : > { %v7937_v30 = vsub.f32 %v7935_v5, %v7936_v8  ;;  %v8392_v63 = vand.u32 4294901760, %v8391_v53 }
 0xce4   : > { %v7938_v36 = vand.u32 4294901760, %v7937_v30 }
 0xd49   : > { %v8316_v24 = vpop.permute.xlu0 %8315 }
 0xd4a   : > { %v8320_v35 = vsel %vm1267_vm2, %v8316_v24, 0 }
 0xd4b   : > { %v7862_v25 = vpop.permute.xlu1 %7861  ;;  %v8353_v41 = vand.u32 4294901760, %v8320_v35 }
 0xd4c   : > { %v7866_v26 = vsel %vm1267_vm2, %v7862_v25, 0 }
 0xd4d   : > { %v7899_v32 = vand.u32 4294901760, %v7866_v26  ;;  %v8430_v46 = vsub.f32 %v8320_v35, %v8353_v41 }
 0xd4f   : > { %v7976_v7 = vsub.f32 %v7866_v26, %v7899_v32  ;;  %16237 = vmatpush3.xpose.msra.mxu0 %v7899_v32  ;;  %v8431_v60 = vand.u32 4294901760, %v8430_v46 }
 0xd50   : > { %16246 = vmatprep.subr.mxu0 %v19517_v48 }
 0xd51   : > { %v7977_v42 = vand.u32 4294901760, %v7976_v7  ;;  %v8432_v14 = vsub.f32 %v8430_v46, %v8431_v60 }
 0xd52   : > { %16239 = vmatmul.mubr.f32.vlgmr.msra.gmra.mxu0 %v7938_v36 }
 0xd53   : > { %v7978_v1 = vsub.f32 %v7976_v7, %v7977_v42  ;;  %16247 = vmatpush3.xpose.msra.mxu0 %v7976_v7  ;;  %16248 = vmatprep.mubr.msk.f32.mxu0 %vm17082_vm1, %v19517_v48  ;;  %v8433_v15 = vand.u32 4294901760, %v8432_v14 }
 0xd54   : > { %16256 = vmatprep.subr.mxu0 %v19517_v48 }
 0xd55   : > { %v7979_v51 = vand.u32 4294901760, %v7978_v1 }
 0xd56   : > { %16249 = vmatmul.mubr.f32.vlgmr.msra.gmra.mxu0 %v7935_v5 }
 0xd57   : > { %16242 = vmatpush3.xpose.msra.mxu1 %v7979_v51  ;;  %16257 = vmatpush3.xpose.msra.mxu0 %v7977_v42 }
 0xd58   : > { %16258 = vmatprep.mubr.msk.f32.mxu0 %vm17082_vm1, %v19517_v48  ;;  %16251 = vmatprep.subr.mxu1 %v19517_v48 }
 0xd59   : > { %16266 = vmatprep.subr.mxu0 %v19517_v48 }
 0xd5a   : > { %16244 = vmatmul.mubr.f32.vlgmr.msra.gmra.mxu1 %v7934_v21  ;;  %16259 = vmatmul.mubr.f32.vlgmr.msra.gmra.mxu0 %v7934_v21 }
 0xd5b   : > { %16252 = vmatpush3.xpose.msra.mxu1 %v7899_v32  ;;  %16267 = vmatpush3.xpose.msra.mxu0 %v8353_v41 }
 0xd5c   : > { %16253 = vmatprep.mubr.msk.f32.mxu1 %vm17082_vm1, %v19517_v48  ;;  %16268 = vmatprep.mubr.msk.f32.mxu0 %vm17082_vm1, %v19517_v48 }
 0xd5d   : > { %16261 = vmatprep.subr.mxu1 %v19517_v48  ;;  %16276 = vmatprep.subr.mxu0 %v19517_v48 }
 0xd5e   : > { %16254 = vmatmul.mubr.f32.vlgmr.msra.gmra.mxu1 %v7936_v8  ;;  %16269 = vmatmul.mubr.f32.vlgmr.msra.gmra.mxu0 %v8392_v63 }
 0xd5f   : > { %16262 = vmatpush3.xpose.msra.mxu1 %v7899_v32  ;;  %16277 = vmatpush3.xpose.msra.mxu0 %v8430_v46 }
 0xd60   : > { %16263 = vmatprep.mubr.msk.f32.mxu1 %vm17082_vm1, %v19517_v48  ;;  %16278 = vmatprep.mubr.msk.f32.mxu0 %vm17082_vm1, %v19517_v48 }
 0xd61   : > { %16271 = vmatprep.subr.mxu1 %v19517_v48  ;;  %16286 = vmatprep.subr.mxu0 %v19517_v48 }
 0xd62   : > { %16264 = vmatmul.mubr.f32.vlgmr.msra.gmra.mxu1 %v7934_v21  ;;  %16279 = vmatmul.mubr.f32.vlgmr.msra.gmra.mxu0 %v8389_v40 }
 0xd63   : > { %16272 = vmatpush3.xpose.msra.mxu1 %v8433_v15  ;;  %16287 = vmatpush3.xpose.msra.mxu0 %v8431_v60 }
 0xd64   : > { %16273 = vmatprep.mubr.msk.f32.mxu1 %vm17082_vm1, %v19517_v48  ;;  %16288 = vmatprep.mubr.msk.f32.mxu0 %vm17082_vm1, %v19517_v48 }
 0xd65   : > { %16281 = vmatprep.subr.mxu1 %v19517_v48  ;;  %16296 = vmatprep.subr.mxu0 %v19517_v48 }
 0xd66   : > { %16274 = vmatmul.mubr.f32.vlgmr.msra.gmra.mxu1 %v8388_v31  ;;  %16289 = vmatmul.mubr.f32.vlgmr.msra.gmra.mxu0 %v8388_v31 }
 0xd67   : > { %16282 = vmatpush3.xpose.msra.mxu1 %v8353_v41  ;;  %16283 = vmatprep.mubr.msk.f32.mxu1 %vm17082_vm1, %v19517_v48 }
 0xd68   : > { %16291 = vmatprep.subr.mxu1 %v19517_v48  ;;  %16298 = vmatprep.mubr.msk.f32.mxu0 %vm17082_vm1, %v19517_v48 }
 0xd6a   : > { %16284 = vmatmul.mubr.f32.vlgmr.msra.gmra.mxu1 %v8390_v45 }
 0xd6b   : > { %16292 = vmatpush3.xpose.msra.mxu1 %v8353_v41  ;;  %16293 = vmatprep.mubr.msk.f32.mxu1 %vm17082_vm1, %v19517_v48 }
 0xd6c   : > { %16301 = vmatprep.subr.mxu1 %v19517_v48 }
 0xd6e   : > { %16294 = vmatmul.mubr.f32.vlgmr.msra.gmra.mxu1 %v8388_v31 }
 0xd6f   : > { %16303 = vmatprep.mubr.msk.f32.mxu1 %vm17082_vm1, %v19517_v48 }
 0xe12   : > { %v7940_v18 = vpop.f32.mrf.mxu0 }
 0xe14   : > { %v16240_v19 = vpop.f32.mrf.mxu0 }
 0xe16   : > { %v8090_v23 = vpop.f32.mrf.mxu0 }
 0xe18   : > { %v16250_v27 = vpop.f32.mrf.mxu0 }
 0xe1a   : > { %v8016_v2 = vpop.f32.mrf.mxu1  ;;  %v8238_v34 = vpop.f32.mrf.mxu0 }
 0xe1b   : > { %v8017_v37 = vadd.f32 %v8016_v2, %v7940_v18 }
 0xe1c   : > { %v16245_v47 = vpop.f32.mrf.mxu1  ;;  %v16260_v49 = vpop.f32.mrf.mxu0 }
 0xe1d   : > { %v8091_v58 = vadd.f32 %v8090_v23, %v8017_v37 }
 0xe1e   : > { %v8164_v4 = vpop.f32.mrf.mxu1  ;;  %v8394_v10 = vpop.f32.mrf.mxu0 }
 0xe1f   : > { %v8165_v16 = vadd.f32 %v8164_v4, %v8091_v58 }
 0xe20   : > { %v16255_v17 = vpop.f32.mrf.mxu1  ;;  %v16270_v6 = vpop.f32.mrf.mxu0 }
 0xe21   : > { %v8239_v3 = vadd.f32 %v8238_v34, %v8165_v16 }
 0xe22   : > { %v8310_v28 = vpop.f32.mrf.mxu1  ;;  %v8544_v0 = vpop.f32.mrf.mxu0 }
 0xe23   : > { %v8311_v29 = vadd.f32 %v8310_v28, %v8239_v3 }
 0xe24   : > { %v16265_v33 = vpop.f32.mrf.mxu1  ;;  %v16280_v38 = vpop.f32.mrf.mxu0 }
 0xe25   : > { %v8768_v39 = vsel %vm2173_vm3, %v8311_v29, -inf }
 0xe26   : > { %v8470_v43 = vpop.f32.mrf.mxu1  ;;  %8769 = vmax.xlane.f32.xlu1 %v8768_v39  ;;  %v8692_v55 = vpop.f32.mrf.mxu0 }
 0xe27   : > { %v8471_v44 = vadd.f32 %v8470_v43, %v8394_v10 }
 0xe28   : > { %v16275_v56 = vpop.f32.mrf.mxu1  ;;  %v16290_v57 = vpop.f32.mrf.mxu0 }
 0xe29   : > { %v8545_v52 = vadd.f32 %v8544_v0, %v8471_v44 }
 0xe2a   : > { %v8618_v12 = vpop.f32.mrf.mxu1 }
 0xe2b   : > { %v8619_v62 = vadd.f32 %v8618_v12, %v8545_v52 }
 0xe2c   : > { %v16285_v13 = vpop.f32.mrf.mxu1 }
 0xe2d   : > { %v8693_v20 = vadd.f32 %v8692_v55, %v8619_v62 }
 0xe2e   : > { %v8764_v21 = vpop.f32.mrf.mxu1 }
 0xe2f   : > { %v8765_v5 = vadd.f32 %v8764_v21, %v8693_v20 }
 0xe30   : > { %v16295_v8 = vpop.f32.mrf.mxu1 }
 0xe31   : > { %v8771_v11 = vsel %vm2173_vm3, %v8765_v5, -inf }
 0xe32   : > { %8772 = vmax.xlane.f32.xlu0 %v8771_v11 }
 0xeaf   : > { %v8770_v24 = vpop.xlane.xlu1 %8769 }
 0xeb0   : > { %v8774_v25 = vsub.f32 %v8311_v29, %v8770_v24 }
 0xeb2   : > { %v8776_v26 = vmul.f32 1.442695, %v8774_v25 }
 0xeb4   : > { %16977 = vpow2.f32 %v8776_v26 }
 0xebb   : > { %v8773_v30 = vpop.xlane.xlu0 %8772 }
 0xebc   : > { %v8775_v31 = vsub.f32 %v8765_v5, %v8773_v30 }
 0xebe   : > { %v8778_v32 = vmul.f32 1.442695, %v8775_v31 }
 0xec0   : > { %16979 = vpow2.f32 %v8778_v32 }
 0xec1   : > { %v16978_v35 = vpop.eup %16977 }
 0xec2   : > { %v8780_v7 = vsel %vm2173_vm3, %v16978_v35, 0.0 }
 0xec3   : > { %8781 = vadd.xlane.f32.xlu1 %v8780_v7 }
 0xecd   : > { %v16980_v36 = vpop.eup %16979 }
 0xece   : > { %v8783_v40 = vsel %vm2173_vm3, %v16980_v36, 0.0 }
 0xecf   : > { %8784 = vadd.xlane.f32.xlu0 %v8783_v40 }
 0xed4   : > { %8790 = vrot.lane.b32.xlu1 %v18347_v50, %s19519_s17 }
 0xed8   : > { %9696 = vrot.lane.b32.xlu1 %v18347_v50, %s19520_s23 }
 0xedc   : > { %9694 = vrot.lane.b32.xlu1 %v18354_v22, %s19521_s3 }
 0xee0   : > { %10148 = vrot.lane.b32.xlu1 %v18359_v9, %s19521_s3 }
 0xee5   : > { %9242 = vrot.lane.b32.xlu0 %v18345_v61, %s19519_s17  ;;  %s19543_s17 = sld [smem:[#allocation24_spill]] }
 0xee9   : > { %10150 = vrot.lane.b32.xlu0 %v18345_v61, %s19520_s23 }
 0xeeb   : > { %s707_s23 = scalar_lea.vmem %s19543_s17, %s19552_s6  ;;  %s695_s6 = sand.u32 1, %s17071_s1  }
 0xeec   : > { %s14751_s3 = sshll.u32 %s695_s6, 1  ;;  %s19353_s5 = scalar_lea.sflag [#allocation6], %s695_s6 }
 0xeed   : > { %s697_s17 = scalar_lea.vmem [#allocation5], %s14751_s3  ;;  %s17089_s3 = smov [#allocation5]  }
 0xeee   : > { %s17023_s24 = sshll.u32 %s17089_s3, 4  ;;  %s17024_s24 = int_to_ptr.vmem [resolvable:$false] %s17023_s24 }
 0xf4c   : > { %v8782_v41 = vpop.xlane.xlu1 %8781 }
 0xf4d   : > { %16981 = vrcp.f32 %v8782_v41 }
 0xf50   : > { %v8791_v42 = vpop.permute.xlu1 %8790 }
 0xf51   : > { %v8827_v1 = vand.u32 4294901760, %v8791_v42 }
 0xf53   : > { %v8904_v45 = vsub.f32 %v8791_v42, %v8827_v1  ;;  %16297 = vmatpush3.msra.mxu0 %v8827_v1 }
 0xf54   : > { %16306 = vmatprep.subr.mxu0 %v19517_v48  ;;  %v9697_v14 = vpop.permute.xlu1 %9696 }
 0xf55   : > { %v8905_v46 = vand.u32 4294901760, %v8904_v45  ;;  %v9700_v27 = vsel %vm1267_vm2, %v9697_v14, 0 }
 0xf56   : > { %v18427_v47 = vand.u32 4294901760, %v9700_v27 }
 0xf57   : > { %v8906_v51 = vsub.f32 %v8904_v45, %v8905_v46 }
 0xf58   : > { %v8785_v22 = vpop.xlane.xlu0 %8784  ;;  %v18436_v17 = vsub.f32 %v9700_v27, %v18427_v47  ;;  %v9695_v3 = vpop.permute.xlu1 %9694 }
 0xf59   : > { %v8907_v53 = vand.u32 4294901760, %v8906_v51  ;;  %16983 = vrcp.f32 %v8785_v22  ;;  %v9698_v38 = vsel %vm1267_vm2, %v9695_v3, 0 }
 0xf5a   : > { %v16982_v9 = vpop.eup %16981  ;;  %v9811_v33 = vand.u32 4294901760, %v18436_v17  ;;  %v18448_v55 = vand.u32 4294901760, %v9698_v38 }
 0xf5b   : > { %16302 = vmatpush3.msra.mxu1 %v8907_v53  ;;  %v8787_v60 = vmul.f32 %v16982_v9, %v16978_v35 }
 0xf5c   : > { %v9243_v63 = vpop.permute.xlu0 %9242  ;;  %16311 = vmatprep.subr.mxu1 %v19517_v48  ;;  %v9812_v56 = vsub.f32 %v18436_v17, %v9811_v33  ;;  %v9769_v12 = vsub.f32 %v9698_v38, %v18448_v55  ;;  %v10149_v21 = vpop.permute.xlu1 %10148 }
 0xf5d   : > { %v9279_v15 = vand.u32 4294901760, %v9243_v63  ;;  %v8794_v18 = vsel %vm2173_vm3, %v8787_v60, 0  ;;  %v10152_v8 = vsel %vm1267_vm2, %v10149_v21, 0 }
 0xf5e   : > { %v8862_v19 = vand.u32 4294901760, %v8794_v18  ;;  %v9813_v13 = vand.u32 4294901760, %v9812_v56  ;;  %v9770_v5 = vand.u32 4294901760, %v9769_v12  ;;  %v10222_v25 = vand.u32 4294901760, %v10152_v8 }
 0xf5f   : > { %v18420_v23 = vsub.f32 %v9243_v63, %v9279_v15 }
 0xf60   : > { %v8863_v2 = vsub.f32 %v8794_v18, %v8862_v19  ;;  %16304 = vmatmul.mubr.f32.vlgmr.msra.gmra.mxu1 %v8862_v19  ;;  %v10151_v28 = vpop.permute.xlu0 %10150  ;;  %v9771_v24 = vsub.f32 %v9769_v12, %v9770_v5  ;;  %v10223_v31 = vsub.f32 %v10152_v8, %v10222_v25 }
 0xf61   : > { %v9357_v34 = vand.u32 4294901760, %v18420_v23  ;;  %16312 = vmatpush3.msra.mxu1 %v8827_v1  ;;  %16313 = vmatprep.mubr.msk.f32.mxu1 %vm17082_vm1, %v19517_v48  ;;  %v10154_v39 = vsel %vm1267_vm2, %v10151_v28, 0 }
 0xf62   : > { %16321 = vmatprep.subr.mxu1 %v19517_v48  ;;  %v8864_v37 = vand.u32 4294901760, %v8863_v2  ;;  %v18456_v57 = vand.u32 4294901760, %v10154_v39  ;;  %v9772_v30 = vand.u32 4294901760, %v9771_v24  ;;  %v10224_v35 = vand.u32 4294901760, %v10223_v31 }
 0xf63   : > { %v9358_v49 = vsub.f32 %v18420_v23, %v9357_v34 }
 0xf64   : > { %16314 = vmatmul.mubr.f32.vlgmr.msra.gmra.mxu1 %v8864_v37  ;;  %v8865_v58 = vsub.f32 %v8863_v2, %v8864_v37  ;;  %v18466_v20 = vsub.f32 %v10154_v39, %v18456_v57  ;;  %v10225_v7 = vsub.f32 %v10223_v31, %v10224_v35 }
 0xf65   : > { %v9359_v4 = vand.u32 4294901760, %v9358_v49  ;;  %16322 = vmatpush3.msra.mxu1 %v8827_v1  ;;  %16323 = vmatprep.mubr.msk.f32.mxu1 %vm17082_vm1, %v19517_v48 }
 0xf66   : > { %v16984_v10 = vpop.eup %16983  ;;  %16331 = vmatprep.subr.mxu1 %v19517_v48  ;;  %v8866_v16 = vand.u32 4294901760, %v8865_v58  ;;  %v10265_v11 = vand.u32 4294901760, %v18466_v20 }
 0xf67   : > { %v8789_v6 = vmul.f32 %v16984_v10, %v16980_v36  ;;  %v10226_v36 = vand.u32 4294901760, %v10225_v7 }
 0xf68   : > { %16299 = vmatmul.mubr.f32.vlgmr.msra.gmra.mxu0 %v8866_v16  ;;  %16324 = vmatmul.mubr.f32.vlgmr.msra.gmra.mxu1 %v8862_v19  ;;  %v10266_v26 = vsub.f32 %v18466_v20, %v10265_v11 }
 0xf69   : > { %16307 = vmatpush3.msra.mxu0 %v8904_v45  ;;  %16332 = vmatpush3.msra.mxu1 %v9359_v4  ;;  %v9246_v0 = vsel %vm2173_vm3, %v8789_v6, 0 }
 0xf6a   : > { %16308 = vmatprep.mubr.msk.f32.mxu0 %vm17082_vm1, %v19517_v48  ;;  %16316 = vmatprep.subr.mxu0 %v19517_v48  ;;  %v9314_v29 = vand.u32 4294901760, %v9246_v0  ;;  %v10267_v32 = vand.u32 4294901760, %v10266_v26 }
 0xf6b   : > { %16333 = vmatprep.mubr.msk.f32.mxu1 %vm17082_vm1, %v19517_v48  ;;  %16341 = vmatprep.subr.mxu1 %v19517_v48 }
 0xf6c   : > { %16309 = vmatmul.mubr.f32.vlgmr.msra.gmra.mxu0 %v8863_v2  ;;  %v9315_v43 = vsub.f32 %v9246_v0, %v9314_v29  ;;  %16334 = vmatmul.mubr.f32.vlgmr.msra.gmra.mxu1 %v9314_v29 }
 0xf6d   : > { %16317 = vmatpush3.msra.mxu0 %v8905_v46  ;;  %16342 = vmatpush3.msra.mxu1 %v9279_v15 }
 0xf6e   : > { %16318 = vmatprep.mubr.msk.f32.mxu0 %vm17082_vm1, %v19517_v48  ;;  %16326 = vmatprep.subr.mxu0 %v19517_v48  ;;  %v9316_v44 = vand.u32 4294901760, %v9315_v43 }
 0xf6f   : > { %16343 = vmatprep.mubr.msk.f32.mxu1 %vm17082_vm1, %v19517_v48  ;;  %16351 = vmatprep.subr.mxu1 %v19517_v48 }
 0xf70   : > { %16319 = vmatmul.mubr.f32.vlgmr.msra.gmra.mxu0 %v8862_v19  ;;  %16344 = vmatmul.mubr.f32.vlgmr.msra.gmra.mxu1 %v9316_v44  ;;  %v9317_v52 = vsub.f32 %v9315_v43, %v9316_v44 }
 0xf71   : > { %16327 = vmatpush3.msra.mxu0 %v9279_v15  ;;  %16352 = vmatpush3.msra.mxu1 %v9279_v15 }
 0xf72   : > { %16328 = vmatprep.mubr.msk.f32.mxu0 %vm17082_vm1, %v19517_v48  ;;  %16336 = vmatprep.subr.mxu0 %v19517_v48  ;;  %v9318_v62 = vand.u32 4294901760, %v9317_v52 }
 0xf73   : > { %16353 = vmatprep.mubr.msk.f32.mxu1 %vm17082_vm1, %v19517_v48  ;;  %16361 = vmatprep.subr.mxu1 %v19517_v48 }
 0xf74   : > { %16329 = vmatmul.mubr.f32.vlgmr.msra.gmra.mxu0 %v9318_v62  ;;  %16354 = vmatmul.mubr.f32.vlgmr.msra.gmra.mxu1 %v9314_v29 }
 0xf75   : > { %16337 = vmatpush3.msra.mxu0 %v18420_v23  ;;  %16362 = vmatpush3.xpose.msra.mxu1 %v9813_v13 }
 0xf76   : > { %16338 = vmatprep.mubr.msk.f32.mxu0 %vm17082_vm1, %v19517_v48  ;;  %16346 = vmatprep.subr.mxu0 %v19517_v48 }
 0xf77   : > { %16363 = vmatprep.mubr.msk.f32.mxu1 %vm17082_vm1, %v19517_v48  ;;  %16371 = vmatprep.subr.mxu1 %v19517_v48 }
 0xf78   : > { %16339 = vmatmul.mubr.f32.vlgmr.msra.gmra.mxu0 %v9315_v43  ;;  %16364 = vmatmul.mubr.f32.vlgmr.msra.gmra.mxu1 %v18448_v55 }
 0xf79   : > { %16347 = vmatpush3.msra.mxu0 %v9357_v34  ;;  %16372 = vmatpush3.xpose.msra.mxu1 %v18427_v47 }
 0xf7a   : > { %16348 = vmatprep.mubr.msk.f32.mxu0 %vm17082_vm1, %v19517_v48  ;;  %16356 = vmatprep.subr.mxu0 %v19517_v48 }
 0xf7b   : > { %16373 = vmatprep.mubr.msk.f32.mxu1 %vm17082_vm1, %v19517_v48  ;;  %16381 = vmatprep.subr.mxu1 %v19517_v48 }
 0xf7c   : > { %16349 = vmatmul.mubr.f32.vlgmr.msra.gmra.mxu0 %v9314_v29  ;;  %16374 = vmatmul.mubr.f32.vlgmr.msra.gmra.mxu1 %v9770_v5 }
 0xf7d   : > { %16357 = vmatpush3.xpose.msra.mxu0 %v18427_v47  ;;  %16382 = vmatpush3.xpose.msra.mxu1 %v18427_v47 }
 0xf7e   : > { %16358 = vmatprep.mubr.msk.f32.mxu0 %vm17082_vm1, %v19517_v48  ;;  %16366 = vmatprep.subr.mxu0 %v19517_v48 }
 0xf7f   : > { %16383 = vmatprep.mubr.msk.f32.mxu1 %vm17082_vm1, %v19517_v48  ;;  %16391 = vmatprep.subr.mxu1 %v19517_v48 }
 0xf80   : > { %16359 = vmatmul.mubr.f32.vlgmr.msra.gmra.mxu0 %v9772_v30  ;;  %16384 = vmatmul.mubr.f32.vlgmr.msra.gmra.mxu1 %v18448_v55 }
 0xf81   : > { %16367 = vmatpush3.xpose.msra.mxu0 %v18436_v17  ;;  %16392 = vmatpush3.xpose.msra.mxu1 %v10267_v32 }
 0xf82   : > { %16368 = vmatprep.mubr.msk.f32.mxu0 %vm17082_vm1, %v19517_v48  ;;  %16376 = vmatprep.subr.mxu0 %v19517_v48 }
 0xf83   : > { %16393 = vmatprep.mubr.msk.f32.mxu1 %vm17082_vm1, %v19517_v48  ;;  %16401 = vmatprep.subr.mxu1 %v19517_v48 }
 0xf84   : > { %16369 = vmatmul.mubr.f32.vlgmr.msra.gmra.mxu0 %v9769_v12  ;;  %16394 = vmatmul.mubr.f32.vlgmr.msra.gmra.mxu1 %v10222_v25 }
 0xf85   : > { %16377 = vmatpush3.xpose.msra.mxu0 %v9811_v33  ;;  %16402 = vmatpush3.xpose.msra.mxu1 %v18456_v57 }
 0xf86   : > { %16378 = vmatprep.mubr.msk.f32.mxu0 %vm17082_vm1, %v19517_v48  ;;  %16386 = vmatprep.subr.mxu0 %v19517_v48 }
 0xf87   : > { %16403 = vmatprep.mubr.msk.f32.mxu1 %vm17082_vm1, %v19517_v48  ;;  %16411 = vmatprep.subr.mxu1 %v19517_v48 }
 0xf88   : > { %16379 = vmatmul.mubr.f32.vlgmr.msra.gmra.mxu0 %v18448_v55  ;;  %16404 = vmatmul.mubr.f32.vlgmr.msra.gmra.mxu1 %v10224_v35 }
 0xf89   : > { %16387 = vmatpush3.xpose.msra.mxu0 %v18456_v57  ;;  %16412 = vmatpush3.xpose.msra.mxu1 %v18456_v57 }
 0xf8a   : > { %16388 = vmatprep.mubr.msk.f32.mxu0 %vm17082_vm1, %v19517_v48  ;;  %16396 = vmatprep.subr.mxu0 %v19517_v48 }
 0xf8b   : > { %16413 = vmatprep.mubr.msk.f32.mxu1 %vm17082_vm1, %v19517_v48  ;;  %16421 = vmatprep.subr.mxu1 %v19517_v48 }
 0xf8c   : > { %16389 = vmatmul.mubr.f32.vlgmr.msra.gmra.mxu0 %v10226_v36  ;;  %16414 = vmatmul.mubr.f32.vlgmr.msra.gmra.mxu1 %v10222_v25 }
 0xf8d   : > { %16397 = vmatpush3.xpose.msra.mxu0 %v18466_v20  ;;  %16398 = vmatprep.mubr.msk.f32.mxu0 %vm17082_vm1, %v19517_v48 }
 0xf8e   : > { %16406 = vmatprep.subr.mxu0 %v19517_v48  ;;  %16423 = vmatprep.mubr.msk.f32.mxu1 %vm17082_vm1, %v19517_v48 }
 0xf90   : > { %16399 = vmatmul.mubr.f32.vlgmr.msra.gmra.mxu0 %v10223_v31 }
 0xf91   : > { %16407 = vmatpush3.xpose.msra.mxu0 %v10265_v11  ;;  %16408 = vmatprep.mubr.msk.f32.mxu0 %vm17082_vm1, %v19517_v48 }
 0xf92   : > { %16416 = vmatprep.subr.mxu0 %v19517_v48 }
 0xf94   : > { %16409 = vmatmul.mubr.f32.vlgmr.msra.gmra.mxu0 %v10222_v25 }
 0xf95   : > { %16418 = vmatprep.mubr.msk.f32.mxu0 %vm17082_vm1, %v19517_v48 }
0x1020   : > { %v8944_v40 = vpop.f32.mrf.mxu1 }
0x1022   : > { %v16305_v41 = vpop.f32.mrf.mxu1 }
0x1024   : > { %v9092_v42 = vpop.f32.mrf.mxu1 }
0x1026   : > { %v16315_v1 = vpop.f32.mrf.mxu1 }
0x1028   : > { %v8868_v45 = vpop.f32.mrf.mxu0  ;;  %v9238_v46 = vpop.f32.mrf.mxu1 }
0x1029   : > { %v8945_v51 = vadd.f32 %v8944_v40, %v8868_v45 }
0x102a   : > { %v16300_v22 = vpop.f32.mrf.mxu0  ;;  %v16325_v53 = vpop.f32.mrf.mxu1 }
0x102c   : > { %v9018_v9 = vpop.f32.mrf.mxu0  ;;  %v9396_v60 = vpop.f32.mrf.mxu1 }
0x102d   : > { %v9019_v63 = vadd.f32 %v9018_v9, %v8945_v51 }
0x102e   : > { %v16310_v14 = vpop.f32.mrf.mxu0  ;;  %v16335_v15 = vpop.f32.mrf.mxu1 }
0x102f   : > { %v9093_v18 = vadd.f32 %v9092_v42, %v9019_v63 }
0x1030   : > { %v9166_v19 = vpop.f32.mrf.mxu0  ;;  %v9544_v23 = vpop.f32.mrf.mxu1 }
0x1031   : > { %v9167_v27 = vadd.f32 %v9166_v19, %v9093_v18 }
0x1032   : > { %v16320_v2 = vpop.f32.mrf.mxu0  ;;  %v16345_v34 = vpop.f32.mrf.mxu1 }
0x1033   : > { %v18536_v37 = vadd.f32 %v9238_v46, %v9167_v27 }
0x1034   : > { %v9320_v47 = vpop.f32.mrf.mxu0  ;;  %v9690_v49 = vpop.f32.mrf.mxu1 }
0x1035   : > { %v9397_v58 = vadd.f32 %v9396_v60, %v9320_v47 }
0x1036   : > { %v16330_v4 = vpop.f32.mrf.mxu0  ;;  %v16355_v10 = vpop.f32.mrf.mxu1 }
0x1038   : > { %v9470_v16 = vpop.f32.mrf.mxu0  ;;  %v9850_v17 = vpop.f32.mrf.mxu1 }
0x1039   : > { %v9471_v6 = vadd.f32 %v9470_v16, %v9397_v58 }
0x103a   : > { %v16340_v3 = vpop.f32.mrf.mxu0  ;;  %v16365_v28 = vpop.f32.mrf.mxu1 }
0x103b   : > { %v9545_v0 = vadd.f32 %v9544_v23, %v9471_v6 }
0x103c   : > { %v9618_v29 = vpop.f32.mrf.mxu0  ;;  %v9998_v33 = vpop.f32.mrf.mxu1 }
0x103d   : > { %v9619_v38 = vadd.f32 %v9618_v29, %v9545_v0 }
0x103e   : > { %v16350_v39 = vpop.f32.mrf.mxu0  ;;  %v16375_v43 = vpop.f32.mrf.mxu1 }
0x103f   : > { %v18538_v55 = vadd.f32 %v9690_v49, %v9619_v38 }
0x1040   : > { %v9774_v44 = vpop.f32.mrf.mxu0  ;;  %v10144_v56 = vpop.f32.mrf.mxu1 }
0x1041   : > { %v9851_v12 = vadd.f32 %v9850_v17, %v9774_v44 }
0x1042   : > { %v16360_v57 = vpop.f32.mrf.mxu0  ;;  %v16385_v52 = vpop.f32.mrf.mxu1 }
0x1044   : > { %v9924_v62 = vpop.f32.mrf.mxu0  ;;  %v10304_v13 = vpop.f32.mrf.mxu1 }
0x1045   : > { %v9925_v20 = vadd.f32 %v9924_v62, %v9851_v12 }
0x1046   : > { %v16370_v21 = vpop.f32.mrf.mxu0  ;;  %v16395_v5 = vpop.f32.mrf.mxu1 }
0x1047   : > { %v9999_v8 = vadd.f32 %v9998_v33, %v9925_v20 }
0x1048   : > { %v10072_v11 = vpop.f32.mrf.mxu0  ;;  %v10452_v24 = vpop.f32.mrf.mxu1 }
0x1049   : > { %v10073_v25 = vadd.f32 %v10072_v11, %v9999_v8 }
0x104a   : > { %v16380_v26 = vpop.f32.mrf.mxu0  ;;  %v16405_v30 = vpop.f32.mrf.mxu1 }
0x104b   : > { %v10145_v31 = vadd.f32 %v10144_v56, %v10073_v25  ;;  %v14772_v25 = vld [vmem:[%s19493_s30 + $0x38] sm:$0xff]  ;;  %v14771_v30 = vld [vmem:[%s19493_s30 + $0x30] sm:$0xff] }
0x104c   : > { %v10228_v32 = vpop.f32.mrf.mxu0  ;;  %v10598_v35 = vpop.f32.mrf.mxu1  ;;  %v18583_v26 = vand.u32 4294901760, %v14772_v25 }
0x104d   : > { %v10602_v7 = vsel %vm2173_vm3, %v10145_v31, -inf  ;;  %v10305_v41 = vadd.f32 %v10304_v13, %v10228_v32  ;;  %v18591_v32 = vand.u32 4294901760, %v14771_v30 }
0x104e   : > { %v16415_v36 = vpop.f32.mrf.mxu1  ;;  %10603 = vmax.xlane.f32.xlu0 %v10602_v7  ;;  %v16390_v40 = vpop.f32.mrf.mxu0 }
0x1050   : > { %v10378_v42 = vpop.f32.mrf.mxu0 }
0x1051   : > { %v10379_v1 = vadd.f32 %v10378_v42, %v10305_v41 }
0x1052   : > { %v16400_v45 = vpop.f32.mrf.mxu0 }
0x1053   : > { %v10453_v46 = vadd.f32 %v10452_v24, %v10379_v1 }
0x1054   : > { %v10526_v51 = vpop.f32.mrf.mxu0 }
0x1055   : > { %v10527_v22 = vadd.f32 %v10526_v51, %v10453_v46 }
0x1056   : > { %v16410_v53 = vpop.f32.mrf.mxu0 }
0x1057   : > { %v10599_v9 = vadd.f32 %v10598_v35, %v10527_v22  ;;  %v18599_v35 = vsub.f32 %v14771_v30, %v18591_v32 }
0x1059   : > { %v10605_v60 = vsel %vm2173_vm3, %v10599_v9, -inf  ;;  %v18606_v36 = vand.u32 4294901760, %v18599_v35 }
0x105a   : > { %10606 = vmax.xlane.f32.xlu1 %v10605_v60 }
0x105b   : > { %v11660_v41 = vsub.f32 %v18599_v35, %v18606_v36 }
0x105d   : > { %v11661_v42 = vand.u32 4294901760, %v11660_v41 }
0x106b   : > { %10624 = vrot.lane.b32.xlu1 %v18347_v50, %s19522_s28 }
0x10d7   : > { %v10604_v63 = vpop.xlane.xlu0 %10603 }
0x10d8   : > { %v10608_v14 = vsub.f32 %v10145_v31, %v10604_v63  ;;  %v18589_v31 = vsub.f32 %v14772_v25, %v18583_v26 }
0x10da   : > { %v10610_v15 = vmul.f32 1.442695, %v10608_v14 }
0x10dc   : > { %16985 = vpow2.f32 %v10610_v15 }
0x10e3   : > { %v10607_v18 = vpop.xlane.xlu1 %10606 }
0x10e4   : > { %v10609_v19 = vsub.f32 %v10599_v9, %v10607_v18 }
0x10e6   : > { %v10612_v23 = vmul.f32 1.442695, %v10609_v19 }
0x10e7   : > { %v10625_v27 = vpop.permute.xlu1 %10624 }
0x10e8   : > { %16987 = vpow2.f32 %v10612_v23  ;;  %v10661_v2 = vand.u32 4294901760, %v10625_v27 }
0x10e9   : > { %v16986_v34 = vpop.eup %16985 }
0x10ea   : > { %v10738_v47 = vsub.f32 %v10625_v27, %v10661_v2  ;;  %16417 = vmatpush3.msra.mxu0 %v10661_v2  ;;  %v10614_v49 = vsel %vm2173_vm3, %v16986_v34, 0.0 }
0x10eb   : > { %10615 = vadd.xlane.f32.xlu0 %v10614_v49  ;;  %16426 = vmatprep.subr.mxu0 %v19517_v48 }
0x10ec   : > { %v10739_v58 = vand.u32 4294901760, %v10738_v47 }
0x10ee   : > { %v10740_v50 = vsub.f32 %v10738_v47, %v10739_v58 }
0x10f0   : > { %v10741_v4 = vand.u32 4294901760, %v10740_v50 }
0x10f2   : > { %16422 = vmatpush3.msra.mxu1 %v10741_v4 }
0x10f3   : > { %16431 = vmatprep.subr.mxu1 %v19517_v48 }
0x10f5   : > { %v16988_v10 = vpop.eup %16987 }
0x10f6   : > { %v10617_v16 = vsel %vm2173_vm3, %v16988_v10, 0.0 }
0x10f7   : > { %10618 = vadd.xlane.f32.xlu0 %v10617_v16 }
0x110d   : > { %11076 = vrot.lane.b32.xlu0 %v18345_v61, %s19522_s28  ;;  %s19349_s28 = scalar_lea.hbm %s19413_s22, %s14819_s4 }
0x1174   : > { %v10616_v17 = vpop.xlane.xlu0 %10615 }
0x1175   : > { %16989 = vrcp.f32 %v10616_v17 }
0x1180   : > { %v10619_v6 = vpop.xlane.xlu0 %10618 }
0x1181   : > { %16991 = vrcp.f32 %v10619_v6 }
0x1182   : > { %v16990_v3 = vpop.eup %16989 }
0x1183   : > { %v10621_v28 = vmul.f32 %v16990_v3, %v16986_v34 }
0x1184   : > { %v11077_v0 = vpop.permute.xlu0 %11076 }
0x1185   : > { %v11113_v29 = vand.u32 4294901760, %v11077_v0  ;;  %v10628_v33 = vsel %vm2173_vm3, %v10621_v28, 0  ;;  %v14770_v28 = vld [vmem:[%s19493_s30 + $0x28] sm:$0xff] }
0x1186   : > { %v10696_v38 = vand.u32 4294901760, %v10628_v33 }
0x1187   : > { %v11190_v39 = vsub.f32 %v11077_v0, %v11113_v29 }
0x1188   : > { %v10697_v43 = vsub.f32 %v10628_v33, %v10696_v38  ;;  %16424 = vmatmul.mubr.f32.vlgmr.msra.gmra.mxu1 %v10696_v38 }
0x1189   : > { %v11191_v44 = vand.u32 4294901760, %v11190_v39  ;;  %16432 = vmatpush3.msra.mxu1 %v10661_v2  ;;  %16433 = vmatprep.mubr.msk.f32.mxu1 %vm17082_vm1, %v19517_v48 }
0x118a   : > { %16441 = vmatprep.subr.mxu1 %v19517_v48  ;;  %v10698_v61 = vand.u32 4294901760, %v10697_v43 }
0x118b   : > { %v11192_v56 = vsub.f32 %v11190_v39, %v11191_v44 }
0x118c   : > { %16434 = vmatmul.mubr.f32.vlgmr.msra.gmra.mxu1 %v10698_v61  ;;  %v10699_v57 = vsub.f32 %v10697_v43, %v10698_v61 }
0x118d   : > { %v11193_v52 = vand.u32 4294901760, %v11192_v56  ;;  %16442 = vmatpush3.msra.mxu1 %v10661_v2  ;;  %16443 = vmatprep.mubr.msk.f32.mxu1 %vm17082_vm1, %v19517_v48 }
0x118e   : > { %v16992_v12 = vpop.eup %16991  ;;  %16451 = vmatprep.subr.mxu1 %v19517_v48  ;;  %v10700_v62 = vand.u32 4294901760, %v10699_v57 }
0x118f   : > { %v10623_v13 = vmul.f32 %v16992_v12, %v16988_v10 }
0x1190   : > { %16419 = vmatmul.mubr.f32.vlgmr.msra.gmra.mxu0 %v10700_v62  ;;  %16444 = vmatmul.mubr.f32.vlgmr.msra.gmra.mxu1 %v10696_v38 }
0x1191   : > { %16427 = vmatpush3.msra.mxu0 %v10738_v47  ;;  %16452 = vmatpush3.msra.mxu1 %v11193_v52  ;;  %v11080_v20 = vsel %vm2173_vm3, %v10623_v13, 0 }
0x1192   : > { %16428 = vmatprep.mubr.msk.f32.mxu0 %vm17082_vm1, %v19517_v48  ;;  %16436 = vmatprep.subr.mxu0 %v19517_v48  ;;  %v11148_v21 = vand.u32 4294901760, %v11080_v20 }
0x1193   : > { %16453 = vmatprep.mubr.msk.f32.mxu1 %vm17082_vm1, %v19517_v48  ;;  %16461 = vmatprep.subr.mxu1 %v19517_v48 }
0x1194   : > { %16429 = vmatmul.mubr.f32.vlgmr.msra.gmra.mxu0 %v10697_v43  ;;  %v11149_v5 = vsub.f32 %v11080_v20, %v11148_v21  ;;  %16454 = vmatmul.mubr.f32.vlgmr.msra.gmra.mxu1 %v11148_v21  ;;  %v14769_v43 = vld [vmem:[%s19493_s30 + $0x20] sm:$0xff] }
0x1195   : > { %16437 = vmatpush3.msra.mxu0 %v10739_v58  ;;  %16462 = vmatpush3.msra.mxu1 %v11113_v29  ;;  %v18625_v12 = vand.u32 4294901760, %v14769_v43 }
0x1196   : > { %16438 = vmatprep.mubr.msk.f32.mxu0 %vm17082_vm1, %v19517_v48  ;;  %16446 = vmatprep.subr.mxu0 %v19517_v48  ;;  %v11150_v8 = vand.u32 4294901760, %v11149_v5 }
0x1197   : > { %16463 = vmatprep.mubr.msk.f32.mxu1 %vm17082_vm1, %v19517_v48  ;;  %16471 = vmatprep.subr.mxu1 %v19517_v48 }
0x1198   : > { %16439 = vmatmul.mubr.f32.vlgmr.msra.gmra.mxu0 %v10696_v38  ;;  %16464 = vmatmul.mubr.f32.vlgmr.msra.gmra.mxu1 %v11150_v8  ;;  %v11151_v11 = vsub.f32 %v11149_v5, %v11150_v8  ;;  %v18631_v8 = vsub.f32 %v14769_v43, %v18625_v12 }
0x1199   : > { %16447 = vmatpush3.msra.mxu0 %v11113_v29  ;;  %16472 = vmatpush3.msra.mxu1 %v11113_v29 }
0x119a   : > { %16448 = vmatprep.mubr.msk.f32.mxu0 %vm17082_vm1, %v19517_v48  ;;  %16456 = vmatprep.subr.mxu0 %v19517_v48  ;;  %v11152_v24 = vand.u32 4294901760, %v11151_v11 }
0x119b   : > { %16473 = vmatprep.mubr.msk.f32.mxu1 %vm17082_vm1, %v19517_v48 }
0x119c   : > { %16449 = vmatmul.mubr.f32.vlgmr.msra.gmra.mxu0 %v11152_v24  ;;  %16474 = vmatmul.mubr.f32.vlgmr.msra.gmra.mxu1 %v11148_v21 }
0x119d   : > { %16457 = vmatpush3.msra.mxu0 %v11190_v39  ;;  %16458 = vmatprep.mubr.msk.f32.mxu0 %vm17082_vm1, %v19517_v48  ;;  %v18620_v39 = vand.u32 4294901760, %v14770_v28 }
0x119e   : > { %16466 = vmatprep.subr.mxu0 %v19517_v48 }
0x119f   : > { %v18628_v13 = vsub.f32 %v14770_v28, %v18620_v39 }
0x11a0   : > { %16459 = vmatmul.mubr.f32.vlgmr.msra.gmra.mxu0 %v11149_v5 }
0x11a1   : > { %16467 = vmatpush3.msra.mxu0 %v11191_v44  ;;  %16468 = vmatprep.mubr.msk.f32.mxu0 %vm17082_vm1, %v19517_v48  ;;  %v18596_v48 = vand.u32 4294901760, %v18589_v31  ;;  %v18635_v24 = vand.u32 4294901760, %v18628_v13 }
0x11a2   : > { %16476 = vmatprep.subr.mxu0 %v18583_v26 }
0x11a3   : > { %v11653_v7 = vsub.f32 %v18589_v31, %v18596_v48  ;;  %v12161_v41 = vsub.f32 %v18628_v13, %v18635_v24 }
0x11a4   : > { %16469 = vmatmul.mubr.f32.vlgmr.msra.gmra.mxu0 %v11148_v21 }
0x11a5   : > { %16477 = vmatpush3.msra.mxu0 %v18583_v26  ;;  %v11654_v40 = vand.u32 4294901760, %v11653_v7  ;;  %v18638_v7 = vand.u32 4294901760, %v18631_v8 }
0x11a6   : > { %16478 = vmatprep.subr.mxu0 %v18591_v32 }
0x11a7   : > { %16479 = vmatpush3.msra.mxu0 %v18591_v32  ;;  %16483 = vmatprep.subr.mxu1 %v11654_v40 }
0x11a8   : > { %16490 = vmatprep.subr.mxu0 %v18589_v31  ;;  %16484 = vmatpush3.msra.mxu1 %v11654_v40  ;;  %v12037_v40 = vsel %vm1267_vm2, %v18536_v37, 0  ;;  %v12168_v37 = vsub.f32 %v18631_v8, %v18638_v7 }
0x11a9   : > { %16485 = vmatprep.subr.mxu1 %v11661_v42 }
0x11aa   : > { %16486 = vmatpush3.msra.mxu1 %v11661_v42 }
0x11ab   : > { %16497 = vmatprep.subr.mxu1 %v18583_v26 }
0x1248   : > { %v10778_v1 = vpop.f32.mrf.mxu1 }
0x124a   : > { %v16425_v45 = vpop.f32.mrf.mxu1 }
0x124b   : > { %v12040_v45 = vsel %vm1267_vm2, %v18538_v55, 0 }
0x124c   : > { %v10926_v46 = vpop.f32.mrf.mxu1 }
0x124e   : > { %v16435_v51 = vpop.f32.mrf.mxu1 }
0x124f   : > { %v12162_v51 = vand.u32 4294901760, %v12161_v41 }
0x1250   : > { %v10702_v22 = vpop.f32.mrf.mxu0  ;;  %v11072_v53 = vpop.f32.mrf.mxu1 }
0x1251   : > { %v10779_v63 = vadd.f32 %v10778_v1, %v10702_v22  ;;  %v18647_v1 = vand.u32 4294901760, %v12037_v40 }
0x1252   : > { %v16420_v9 = vpop.f32.mrf.mxu0  ;;  %v16445_v60 = vpop.f32.mrf.mxu1 }
0x1253   : > { %v12110_v55 = vsub.f32 %v12037_v40, %v18647_v1  ;;  %v12169_v9 = vand.u32 4294901760, %v12168_v37 }
0x1254   : > { %v10852_v14 = vpop.f32.mrf.mxu0  ;;  %v11230_v15 = vpop.f32.mrf.mxu1 }
0x1255   : > { %v10853_v18 = vadd.f32 %v10852_v14, %v10779_v63  ;;  %v12111_v60 = vand.u32 4294901760, %v12110_v55 }
0x1256   : > { %v16430_v19 = vpop.f32.mrf.mxu0  ;;  %v16455_v23 = vpop.f32.mrf.mxu1 }
0x1257   : > { %v10927_v27 = vadd.f32 %v10926_v46, %v10853_v18 }
0x1258   : > { %v11000_v2 = vpop.f32.mrf.mxu0  ;;  %v11378_v34 = vpop.f32.mrf.mxu1 }
0x1259   : > { %v11001_v47 = vadd.f32 %v11000_v2, %v10927_v27 }
0x125a   : > { %v16440_v49 = vpop.f32.mrf.mxu0  ;;  %v16465_v58 = vpop.f32.mrf.mxu1 }
0x125b   : > { %v11073_v50 = vadd.f32 %v11072_v53, %v11001_v47  ;;  %v12119_v53 = vand.u32 4294901760, %v12040_v45 }
0x125c   : > { %v11154_v4 = vpop.f32.mrf.mxu0  ;;  %v11524_v10 = vpop.f32.mrf.mxu1 }
0x125d   : > { %v11529_v16 = vsel %vm1267_vm2, %v11073_v50, 0  ;;  %v11231_v0 = vadd.f32 %v11230_v15, %v11154_v4 }
0x125e   : > { %v18613_v17 = vand.u32 4294901760, %v11529_v16  ;;  %v16450_v6 = vpop.f32.mrf.mxu0  ;;  %v16475_v3 = vpop.f32.mrf.mxu1 }
0x1260   : > { %v11602_v29 = vsub.f32 %v11529_v16, %v18613_v17  ;;  %v11304_v33 = vpop.f32.mrf.mxu0  ;;  %16487 = vmatprep.mubr.f32.mxu1 %v18613_v17 }
0x1261   : > { %v11305_v38 = vadd.f32 %v11304_v33, %v11231_v0 }
0x1262   : > { %v16460_v44 = vpop.f32.mrf.mxu0  ;;  %v11603_v61 = vand.u32 4294901760, %v11602_v29 }
0x1263   : > { %v11379_v56 = vadd.f32 %v11378_v34, %v11305_v38 }
0x1264   : > { %v11452_v57 = vpop.f32.mrf.mxu0  ;;  %v11604_v52 = vsub.f32 %v11602_v29, %v11603_v61 }
0x1265   : > { %v11453_v62 = vadd.f32 %v11452_v57, %v11379_v56 }
0x1266   : > { %v16470_v20 = vpop.f32.mrf.mxu0  ;;  %v11605_v21 = vand.u32 4294901760, %v11604_v52 }
0x1267   : > { %v11525_v5 = vadd.f32 %v11524_v10, %v11453_v62 }
0x1268   : > { %16480 = vmatprep.mubr.f32.mxu0 %v11605_v21 }
0x1269   : > { %v11532_v11 = vsel %vm1267_vm2, %v11525_v5, 0 }
0x126a   : > { %v11611_v25 = vand.u32 4294901760, %v11532_v11 }
0x126c   : > { %v11612_v30 = vsub.f32 %v11532_v11, %v11611_v25  ;;  %16488 = vmatmul.mubr.f32.vlgmr.msra.gmra.mxu1 %v11611_v25 }
0x126d   : > { %16498 = vmatpush3.msra.mxu1 %v18583_v26  ;;  %16501 = vmatprep.mubr.f32.mxu1 %v11603_v61 }
0x126e   : > { %v11613_v42 = vand.u32 4294901760, %v11612_v30  ;;  %16499 = vmatprep.subr.mxu1 %v18591_v32 }
0x126f   : > { %16500 = vmatpush3.msra.mxu1 %v18591_v32 }
0x1270   : > { %v11614_v46 = vsub.f32 %v11612_v30, %v11613_v42  ;;  %16502 = vmatmul.mubr.f32.vlgmr.msra.gmra.mxu1 %v11613_v42  ;;  %16511 = vmatprep.subr.mxu1 %v18583_v26 }
0x1271   : > { %16512 = vmatpush3.msra.mxu1 %v18583_v26  ;;  %16515 = vmatprep.mubr.f32.mxu1 %v18613_v17  ;;  %v12120_v26 = vsub.f32 %v12040_v45, %v12119_v53 }
0x1272   : > { %v11615_v22 = vand.u32 4294901760, %v11614_v46  ;;  %16513 = vmatprep.subr.mxu1 %v18591_v32 }
0x1273   : > { %16514 = vmatpush3.msra.mxu1 %v18591_v32  ;;  %v12121_v32 = vand.u32 4294901760, %v12120_v26 }
0x1274   : > { %16481 = vmatmul.mubr.f32.vlgmr.msra.gmra.mxu0 %v11615_v22  ;;  %16516 = vmatmul.mubr.f32.vlgmr.msra.gmra.mxu1 %v11611_v25 }
0x1275   : > { %16525 = vmatprep.subr.mxu1 %v12162_v51  ;;  %16491 = vmatpush3.msra.mxu0 %v18589_v31  ;;  %v12112_v31 = vsub.f32 %v12110_v55, %v12111_v60 }
0x1276   : > { %16494 = vmatprep.mubr.f32.mxu0 %v11602_v29  ;;  %16526 = vmatpush3.msra.mxu1 %v12162_v51 }
0x1277   : > { %16529 = vmatprep.mubr.f32.mxu1 %v18647_v1  ;;  %16492 = vmatprep.subr.mxu0 %v18599_v35 }
0x1278   : > { %16527 = vmatprep.subr.mxu1 %v12169_v9  ;;  %16493 = vmatpush3.msra.mxu0 %v18599_v35  ;;  %v12122_v35 = vsub.f32 %v12120_v26, %v12121_v32 }
0x1279   : > { %16528 = vmatpush3.msra.mxu1 %v12169_v9  ;;  %16495 = vmatmul.mubr.f32.vlgmr.msra.gmra.mxu0 %v11612_v30 }
0x127a   : > { %16504 = vmatprep.subr.mxu0 %v18596_v48  ;;  %16530 = vmatmul.mubr.f32.vlgmr.msra.gmra.mxu1 %v12119_v53  ;;  %v12123_v63 = vand.u32 4294901760, %v12122_v35 }
0x127b   : > { %16539 = vmatprep.subr.mxu1 %v18620_v39  ;;  %16505 = vmatpush3.msra.mxu0 %v18596_v48  ;;  %v12113_v48 = vand.u32 4294901760, %v12112_v31 }
0x127c   : > { %16508 = vmatprep.mubr.f32.mxu0 %v18613_v17  ;;  %16540 = vmatpush3.msra.mxu1 %v18620_v39 }
0x127d   : > { %16543 = vmatprep.mubr.f32.mxu1 %v12111_v60  ;;  %16506 = vmatprep.subr.mxu0 %v18606_v36 }
0x127e   : > { %16541 = vmatprep.subr.mxu1 %v18625_v12  ;;  %16507 = vmatpush3.msra.mxu0 %v18606_v36 }
0x127f   : > { %16542 = vmatpush3.msra.mxu1 %v18625_v12  ;;  %16509 = vmatmul.mubr.f32.vlgmr.msra.gmra.mxu0 %v11611_v25 }
0x1280   : > { %16518 = vmatprep.subr.mxu0 %v18620_v39  ;;  %16544 = vmatmul.mubr.f32.vlgmr.msra.gmra.mxu1 %v12121_v32 }
0x1281   : > { %16553 = vmatprep.subr.mxu1 %v18620_v39  ;;  %16519 = vmatpush3.msra.mxu0 %v18620_v39 }
0x1282   : > { %16522 = vmatprep.mubr.f32.mxu0 %v12113_v48  ;;  %16554 = vmatpush3.msra.mxu1 %v18620_v39 }
0x1283   : > { %16557 = vmatprep.mubr.f32.mxu1 %v18647_v1  ;;  %16520 = vmatprep.subr.mxu0 %v18625_v12 }
0x1284   : > { %16555 = vmatprep.subr.mxu1 %v18625_v12  ;;  %16521 = vmatpush3.msra.mxu0 %v18625_v12 }
0x1285   : > { %16556 = vmatpush3.msra.mxu1 %v18625_v12  ;;  %16523 = vmatmul.mubr.f32.vlgmr.msra.gmra.mxu0 %v12123_v63 }
0x1286   : > { %16532 = vmatprep.subr.mxu0 %v18628_v13  ;;  %16558 = vmatmul.mubr.f32.vlgmr.msra.gmra.mxu1 %v12119_v53 }
0x1287   : > { %16533 = vmatpush3.msra.mxu0 %v18628_v13  ;;  %16536 = vmatprep.mubr.f32.mxu0 %v12110_v55 }
0x1288   : > { %16534 = vmatprep.subr.mxu0 %v18631_v8 }
0x1289   : > { %16535 = vmatpush3.msra.mxu0 %v18631_v8 }
0x128a   : > { %16537 = vmatmul.mubr.f32.vlgmr.msra.gmra.mxu0 %v12120_v26  ;;  %16546 = vmatprep.subr.mxu0 %v18635_v24 }
0x128b   : > { %16547 = vmatpush3.msra.mxu0 %v18635_v24  ;;  %16550 = vmatprep.mubr.f32.mxu0 %v18647_v1 }
0x128c   : > { %16548 = vmatprep.subr.mxu0 %v18638_v7 }
0x128d   : > { %16549 = vmatpush3.msra.mxu0 %v18638_v7  ;;  %v14774_v7 = vld [vmem:[%s19494_s0 + $0x1] ss:$0 sm:$0xff] }
0x128e   : > { %16551 = vmatmul.mubr.f32.vlgmr.msra.gmra.mxu0 %v12119_v53 }
0x132c   : > { %v16489_v36 = vpop.f32.mrf.mxu1 }
0x132e   : > { %v11698_v14 = vpop.f32.mrf.mxu1 }
0x1330   : > { %v16503_v15 = vpop.f32.mrf.mxu1 }
0x1332   : > { %v11862_v18 = vpop.f32.mrf.mxu1 }
0x1334   : > { %v16482_v19 = vpop.f32.mrf.mxu0  ;;  %v16517_v23 = vpop.f32.mrf.mxu1 }
0x1335   : > { %v11705_v2 = vadd.f32 %v16489_v36, %v16482_v19  ;;  %v14780_v19 = vld [vmem:[%s19403_s10 + $0x28] sm:$0xff] }
0x1336   : > { %v11607_v27 = vpop.f32.mrf.mxu0  ;;  %v12026_v49 = vpop.f32.mrf.mxu1 }
0x1337   : > { %v11699_v47 = vadd.f32 %v11698_v14, %v11607_v27  ;;  %v14781_v14 = vld [vmem:[%s19403_s10 + $0x30] sm:$0xff] }
0x1339   : > { %v16496_v34 = vpop.f32.mrf.mxu0 }
0x133a   : > { %v11788_v58 = vadd.f32 %v16496_v34, %v11705_v2  ;;  %v16531_v16 = vpop.f32.mrf.mxu1  ;;  %v18723_v2 = vand.u32 4294901760, %v14780_v19  ;;  %v14779_v34 = vld [vmem:[%s19403_s10 + $0x20] sm:$0xff] }
0x133b   : > { %v11780_v50 = vpop.f32.mrf.mxu0 }
0x133c   : > { %v11781_v4 = vadd.f32 %v11780_v50, %v11699_v47  ;;  %v11871_v10 = vadd.f32 %v16503_v15, %v11788_v58  ;;  %v12206_v0 = vpop.f32.mrf.mxu1  ;;  %v18736_v58 = vsub.f32 %v14780_v19, %v18723_v2  ;;  %v18738_v50 = vand.u32 4294901760, %v14779_v34 }
0x133e   : > { %v11863_v17 = vadd.f32 %v11862_v18, %v11781_v4  ;;  %v18710_v18 = vand.u32 4294901760, %v14781_v14 }
0x133f   : > { %v16510_v6 = vpop.f32.mrf.mxu0 }
0x1340   : > { %v11954_v3 = vadd.f32 %v16510_v6, %v11871_v10  ;;  %v16545_v43 = vpop.f32.mrf.mxu1  ;;  %v18721_v27 = vsub.f32 %v14781_v14, %v18710_v18  ;;  %v14796_v14 = vld [vmem:[%s19405_s12 + $0xd8] sm:$0xff] }
0x1341   : > { %v11947_v28 = vpop.f32.mrf.mxu0 }
0x1342   : > { %v11948_v29 = vadd.f32 %v11947_v28, %v11863_v17  ;;  %v12033_v33 = vadd.f32 %v16517_v23, %v11954_v3  ;;  %v12370_v52 = vpop.f32.mrf.mxu1  ;;  %v18748_v17 = vsub.f32 %v14779_v34, %v18738_v50 }
0x1344   : > { %v12027_v38 = vadd.f32 %v12026_v49, %v11948_v29  ;;  %v18733_v49 = vand.u32 4294901760, %v18721_v27  ;;  %v18755_v28 = vand.u32 4294901760, %v18748_v17 }
0x1345   : > { %v16524_v39 = vpop.f32.mrf.mxu0 }
0x1346   : > { %v12126_v44 = vadd.f32 %v16524_v39, %v12033_v33  ;;  %v16559_v8 = vpop.f32.mrf.mxu1  ;;  %v12745_v10 = vsub.f32 %v18721_v27, %v18733_v49  ;;  %v12759_v29 = vsub.f32 %v18748_v17, %v18755_v28 }
0x1347   : > { %v12115_v61 = vpop.f32.mrf.mxu0 }
0x1348   : > { %v12116_v56 = vadd.f32 %v12115_v61, %v12027_v38  ;;  %v12213_v57 = vadd.f32 %v16531_v16, %v12126_v44  ;;  %v12534_v42 = vpop.f32.mrf.mxu1  ;;  %v18745_v16 = vand.u32 4294901760, %v18736_v58  ;;  %v12746_v6 = vand.u32 4294901760, %v12745_v10 }
0x1349   : > { %v12760_v33 = vand.u32 4294901760, %v12759_v29 }
0x134a   : > { %v16538_v12 = vpop.f32.mrf.mxu0  ;;  %v12207_v62 = vadd.f32 %v12206_v0, %v12116_v56  ;;  %v12752_v3 = vsub.f32 %v18736_v58, %v18745_v16 }
0x134b   : > { %v12296_v13 = vadd.f32 %v16538_v12, %v12213_v57 }
0x134c   : > { %v12288_v20 = vpop.f32.mrf.mxu0  ;;  %v12753_v0 = vand.u32 4294901760, %v12752_v3 }
0x134d   : > { %v12289_v21 = vadd.f32 %v12288_v20, %v12207_v62  ;;  %v12379_v5 = vadd.f32 %v16545_v43, %v12296_v13  ;;  %v14778_v13 = vld [vmem:[%s19496_s7 + $0x1] ss:$0 sm:$0xff]  ;;  %s17025_s7 = scalar_lea.vmem %s17024_s24, 64 }
0x134e   : > { %v16552_v11 = vpop.f32.mrf.mxu0 }
0x134f   : > { %v12462_v24 = vadd.f32 %v16552_v11, %v12379_v5  ;;  %v12371_v25 = vadd.f32 %v12370_v52, %v12289_v21  ;;  %v14777_v52 = vld [vmem:[%s19495_s27 + $0x1] ss:$0 sm:$0xff] }
0x1350   : > { %v12455_v30 = vpop.f32.mrf.mxu0 }
0x1351   : > { %v12541_v40 = vadd.f32 %v16559_v8, %v12462_v24  ;;  %v12456_v41 = vadd.f32 %v12455_v30, %v12371_v25 }
0x1353   : > { %v12535_v1 = vadd.f32 %v12534_v42, %v12456_v41  ;;  %v12553_v45 = vadd.f32 %v14774_v7, %v12541_v40 }
0x1355   : > { %v12555_v46 = vadd.f32 %v12553_v45, %v18298_v54  ;;  %v12552_v37 = vadd.f32 %v14774_v7, %v12535_v1 }
0x1357   : > { %v12563_v51 = vsel %vm723_vm0, %v12555_v46, 0.0  ;;  %v12554_v22 = vadd.f32 %v12552_v37, %v18300_v59  ;;  %v14782_v59 = vld [vmem:[%s19403_s10 + $0x38] sm:$0xff] }
0x1358   : > { %12564 = vadd.xlane.f32.xlu0 %v12563_v51  ;;  %v18702_v36 = vand.u32 4294901760, %v14782_v59 }
0x1359   : > { %v12560_v53 = vsel %vm723_vm0, %v12554_v22, 0.0 }
0x135a   : > { %12561 = vadd.xlane.f32.xlu1 %v12560_v53  ;;  %v18708_v15 = vsub.f32 %v14782_v59, %v18702_v36  ;;  %16560 = vmatprep.subr.mxu0 %v18702_v36 }
0x135b   : > { %16561 = vmatpush3.msra.mxu0 %v18702_v36 }
0x135c   : > { %v18718_v23 = vand.u32 4294901760, %v18708_v15  ;;  %16562 = vmatprep.subr.mxu0 %v18710_v18 }
0x135d   : > { %16563 = vmatpush3.msra.mxu0 %v18710_v18 }
0x135e   : > { %v12738_v47 = vsub.f32 %v18708_v15, %v18718_v23  ;;  %16564 = vmatprep.subr.mxu0 %v18723_v2 }
0x135f   : > { %16565 = vmatpush3.msra.mxu0 %v18723_v2 }
0x1360   : > { %v12739_v4 = vand.u32 4294901760, %v12738_v47  ;;  %16566 = vmatprep.subr.mxu0 %v18738_v50 }
0x1361   : > { %16567 = vmatpush3.msra.mxu0 %v18738_v50 }
0x1362   : > { %16571 = vmatprep.subr.mxu1 %v12739_v4  ;;  %16582 = vmatprep.subr.mxu0 %v18708_v15 }
0x1363   : > { %16572 = vmatpush3.msra.mxu1 %v12739_v4  ;;  %v14794_v4 = vld [vmem:[%s19405_s12 + $0xc8] sm:$0xff] }
0x1364   : > { %16573 = vmatprep.subr.mxu1 %v12746_v6 }
0x1365   : > { %16574 = vmatpush3.msra.mxu1 %v12746_v6  ;;  %v18885_v6 = vand.u32 4294901760, %v14794_v4 }
0x1366   : > { %16575 = vmatprep.subr.mxu1 %v12753_v0 }
0x1367   : > { %16576 = vmatpush3.msra.mxu1 %v12753_v0 }
0x1368   : > { %16577 = vmatprep.subr.mxu1 %v12760_v33 }
0x1369   : > { %16578 = vmatpush3.msra.mxu1 %v12760_v33  ;;  %v18899_v33 = vsub.f32 %v14794_v4, %v18885_v6 }
0x136a   : > { %16593 = vmatprep.subr.mxu1 %v18702_v36 }
0x13e1   : > { %v12565_v55 = vpop.xlane.xlu0 %12564 }
0x13e2   : > { %v12567_v9 = vmul.f32 0.03125, %v12565_v55  ;;  %v14799_v55 = vld [vmem:[%s19405_s12 + $0xf0] sm:$0xff] }
0x13e3   : > { %v12562_v26 = vpop.xlane.xlu1 %12561 }
0x13e4   : > { %v12569_v60 = vsub.f32 %v12555_v46, %v12567_v9  ;;  %v12566_v32 = vmul.f32 0.03125, %v12562_v26  ;;  %v18816_v26 = vand.u32 4294901760, %v14799_v55 }
0x13e6   : > { %v12568_v31 = vsub.f32 %v12554_v22, %v12566_v32  ;;  %v12571_v35 = vmul.f32 %v12569_v60, %v12569_v60  ;;  %v14800_v22 = vld [vmem:[%s19405_s12 + $0xf8] sm:$0xff] }
0x13e7   : > { %v18808_v53 = vand.u32 4294901760, %v14800_v22 }
0x13e8   : > { %v12575_v48 = vsel %vm723_vm0, %v12571_v35, 0.0  ;;  %v12570_v63 = vmul.f32 %v12568_v31, %v12568_v31 }
0x13e9   : > { %12576 = vadd.xlane.f32.xlu0 %v12575_v48  ;;  %v18814_v9 = vsub.f32 %v14800_v22, %v18808_v53  ;;  %v14797_v48 = vld [vmem:[%s19405_s12 + $0xe0] sm:$0xff]  ;;  %v14788_v22 = vld [vmem:[%s19405_s12 + $0x98] sm:$0xff] }
0x13ea   : > { %v12572_v54 = vsel %vm723_vm0, %v12570_v63, 0.0 }
0x13eb   : > { %12573 = vadd.xlane.f32.xlu1 %v12572_v54  ;;  %v18824_v32 = vand.u32 4294901760, %v18814_v9 }
0x13ed   : > { %v13281_v63 = vsub.f32 %v18814_v9, %v18824_v32 }
0x1472   : > { %v12577_v38 = vpop.xlane.xlu0 %12576 }
0x1473   : > { %v12579_v39 = vmul.f32 0.03125, %v12577_v38 }
0x1474   : > { %v12574_v43 = vpop.xlane.xlu1 %12573 }
0x1475   : > { %v12581_v44 = vadd.f32 1e-05, %v12579_v39  ;;  %v12578_v61 = vmul.f32 0.03125, %v12574_v43  ;;  %v14792_v43 = vld [vmem:[%s19405_s12 + $0xb8] sm:$0xff] }
0x1477   : > { %16993 = vrsqrt.f32 %v12581_v44  ;;  %v12580_v56 = vadd.f32 1e-05, %v12578_v61  ;;  %v18913_v61 = vand.u32 4294901760, %v18899_v33 }
0x1479   : > { %16995 = vrsqrt.f32 %v12580_v56 }
0x1484   : > { %v16994_v57 = vpop.eup %16993 }
0x1485   : > { %v12585_v12 = vmul.f32 %v16994_v57, %v12569_v60  ;;  %v14798_v60 = vld [vmem:[%s19405_s12 + $0xe8] sm:$0xff]  ;;  %v18918_v57 = vand.u32 4294901760, %v14792_v43 }
0x1486   : > { %v16996_v62 = vpop.eup %16995  ;;  %v18829_v35 = vand.u32 4294901760, %v14798_v60 }
0x1487   : > { %v12584_v20 = vmul.f32 %v16996_v62, %v12568_v31  ;;  %v12593_v21 = vmul.f32 %v14777_v52, %v12585_v12  ;;  %v18827_v31 = vsub.f32 %v14799_v55, %v18816_v26  ;;  %v14791_v12 = vld [vmem:[%s19405_s12 + $0xb0] sm:$0xff] }
0x1488   : > { %v18842_v59 = vsub.f32 %v14798_v60, %v18829_v35 }
0x1489   : > { %v12592_v5 = vmul.f32 %v14777_v52, %v12584_v20  ;;  %v18767_v8 = vadd.f32 %v14778_v13, %v12593_v21  ;;  %v18839_v54 = vand.u32 4294901760, %v18827_v31  ;;  %v18931_v21 = vsub.f32 %v14792_v43, %v18918_v57 }
0x148a   : > { %v18854_v19 = vand.u32 4294901760, %v18842_v59 }
0x148b   : > { %19523 = vst [vmem:[#allocation15_spill] sm:$0xff] %v18767_v8  ;;  %v18769_v11 = vadd.f32 %v14778_v13, %v12592_v5  ;;  %v12619_v24 = vsel %vm723_vm0, %v18767_v8, 0  ;;  %v13323_v13 = vsub.f32 %v18899_v33, %v18913_v61  ;;  %v18934_v5 = vand.u32 4294901760, %v14791_v12 }
0x148c   : > { %v12700_v25 = vand.u32 4294901760, %v12619_v24  ;;  %v13295_v47 = vsub.f32 %v18842_v59, %v18854_v19 }
0x148d   : > { %19524 = vst [vmem:[#allocation16_spill] sm:$0xff] %v18769_v11  ;;  %v12616_v30 = vsel %vm723_vm0, %v18769_v11, 0 }
0x148e   : > { %v12690_v7 = vand.u32 4294901760, %v12616_v30  ;;  %v12701_v40 = vsub.f32 %v12619_v24, %v12700_v25  ;;  %v13296_v10 = vand.u32 4294901760, %v13295_v47  ;;  %v14790_v24 = vld [vmem:[%s19405_s12 + $0xa8] sm:$0xff] }
0x1490   : > { %16579 = vmatprep.mubr.f32.mxu1 %v12690_v7  ;;  %v12691_v41 = vsub.f32 %v12616_v30, %v12690_v7  ;;  %v12702_v42 = vand.u32 4294901760, %v12701_v40 }
0x1491   : > { %16580 = vmatmul.mubr.f32.vlgmr.msra.gmra.mxu1 %v12700_v25 }
0x1492   : > { %16594 = vmatpush3.msra.mxu1 %v18702_v36  ;;  %v12692_v1 = vand.u32 4294901760, %v12691_v41  ;;  %v12703_v46 = vsub.f32 %v12701_v40, %v12702_v42 }
0x1493   : > { %16595 = vmatprep.subr.mxu1 %v18710_v18 }
0x1494   : > { %16596 = vmatpush3.msra.mxu1 %v18710_v18  ;;  %16601 = vmatprep.mubr.f32.mxu1 %v12692_v1  ;;  %v12693_v45 = vsub.f32 %v12691_v41, %v12692_v1  ;;  %v12704_v51 = vand.u32 4294901760, %v12703_v46 }
0x1495   : > { %16597 = vmatprep.subr.mxu1 %v18723_v2 }
0x1496   : > { %16598 = vmatpush3.msra.mxu1 %v18723_v2  ;;  %v12694_v37 = vand.u32 4294901760, %v12693_v45 }
0x1497   : > { %16599 = vmatprep.subr.mxu1 %v18738_v50 }
0x1498   : > { %16600 = vmatpush3.msra.mxu1 %v18738_v50  ;;  %16568 = vmatprep.mubr.f32.mxu0 %v12694_v37 }
0x1499   : > { %16602 = vmatmul.mubr.f32.vlgmr.msra.gmra.mxu1 %v12702_v42  ;;  %16615 = vmatprep.subr.mxu1 %v18702_v36  ;;  %v14789_v42 = vld [vmem:[%s19405_s12 + $0xa0] sm:$0xff] }
0x149a   : > { %16569 = vmatmul.mubr.f32.vlgmr.msra.gmra.mxu0 %v12704_v51  ;;  %16616 = vmatpush3.msra.mxu1 %v18702_v36  ;;  %v18844_v36 = vand.u32 4294901760, %v14797_v48  ;;  %v18960_v37 = vand.u32 4294901760, %v14789_v42 }
0x149b   : > { %16583 = vmatpush3.msra.mxu0 %v18708_v15  ;;  %16623 = vmatprep.mubr.f32.mxu1 %v12690_v7  ;;  %v13282_v15 = vand.u32 4294901760, %v13281_v63  ;;  %v18976_v63 = vand.u32 4294901760, %v14788_v22 }
0x149c   : > { %16584 = vmatprep.subr.mxu0 %v18721_v27  ;;  %16590 = vmatprep.mubr.f32.mxu0 %v12691_v41  ;;  %v18949_v41 = vsub.f32 %v14791_v12, %v18934_v5 }
0x149d   : > { %16617 = vmatprep.subr.mxu1 %v18710_v18  ;;  %16585 = vmatpush3.msra.mxu0 %v18721_v27  ;;  %v18860_v27 = vand.u32 4294901760, %v14796_v14 }
0x149e   : > { %16618 = vmatpush3.msra.mxu1 %v18710_v18  ;;  %16586 = vmatprep.subr.mxu0 %v18736_v58  ;;  %v13288_v18 = vsub.f32 %v18827_v31, %v18839_v54  ;;  %v18964_v51 = vand.u32 4294901760, %v18949_v41 }
0x149f   : > { %16619 = vmatprep.subr.mxu1 %v18723_v2  ;;  %16587 = vmatpush3.msra.mxu0 %v18736_v58 }
0x14a0   : > { %16620 = vmatpush3.msra.mxu1 %v18723_v2  ;;  %16588 = vmatprep.subr.mxu0 %v18748_v17  ;;  %v14795_v2 = vld [vmem:[%s19405_s12 + $0xd0] sm:$0xff]  ;;  %v13289_v34 = vand.u32 4294901760, %v13288_v18  ;;  %19526 = vst [vmem:[#allocation18_spill] sm:$0xff] %v18964_v51 }
0x14a1   : > { %16621 = vmatprep.subr.mxu1 %v18738_v50  ;;  %16589 = vmatpush3.msra.mxu0 %v18748_v17  ;;  %v18871_v58 = vand.u32 4294901760, %v14795_v2 }
0x14a2   : > { %16622 = vmatpush3.msra.mxu1 %v18738_v50  ;;  %16591 = vmatmul.mubr.f32.vlgmr.msra.gmra.mxu0 %v12701_v40  ;;  %v18874_v50 = vsub.f32 %v14796_v14, %v18860_v27  ;;  %v18945_v40 = vand.u32 4294901760, %v14790_v24  ;;  %v13344_v14 = vsub.f32 %v18949_v41, %v18964_v51 }
0x14a3   : > { %16604 = vmatprep.subr.mxu0 %v18718_v23  ;;  %16624 = vmatmul.mubr.f32.vlgmr.msra.gmra.mxu1 %v12700_v25  ;;  %v18883_v17 = vsub.f32 %v14795_v2, %v18871_v58 }
0x14a4   : > { %16605 = vmatpush3.msra.mxu0 %v18718_v23  ;;  %16612 = vmatprep.mubr.f32.mxu0 %v12690_v7  ;;  %v18857_v23 = vsub.f32 %v14797_v48, %v18844_v36  ;;  %v18889_v3 = vand.u32 4294901760, %v18874_v50  ;;  %v18943_v7 = vand.u32 4294901760, %v18931_v21  ;;  %v18958_v46 = vsub.f32 %v14790_v24, %v18945_v40 }
0x14a5   : > { %16606 = vmatprep.subr.mxu0 %v18733_v49  ;;  %16661 = vmatprep.subr.mxu1 %v13282_v15  ;;  %v18896_v29 = vand.u32 4294901760, %v18883_v17  ;;  %v18974_v48 = vsub.f32 %v14789_v42, %v18960_v37  ;;  %v13345_v4 = vand.u32 4294901760, %v13344_v14 }
0x14a6   : > { %16607 = vmatpush3.msra.mxu0 %v18733_v49  ;;  %v18869_v49 = vand.u32 4294901760, %v18857_v23  ;;  %16662 = vmatpush3.msra.mxu1 %v13282_v15  ;;  %v13309_v39 = vsub.f32 %v18874_v50, %v18889_v3  ;;  %19525 = vst [vmem:[#allocation17_spill] sm:$0xff] %v18943_v7  ;;  %v13337_v45 = vsub.f32 %v18931_v21, %v18943_v7  ;;  %v18971_v60 = vand.u32 4294901760, %v18958_v46  ;;  %v14787_v15 = vld [vmem:[%s19405_s12 + $0x90] sm:$0xff] }
0x14a7   : > { %16608 = vmatprep.subr.mxu0 %v18745_v16  ;;  %16663 = vmatprep.subr.mxu1 %v13289_v34  ;;  %v13316_v44 = vsub.f32 %v18883_v17, %v18896_v29  ;;  %v18988_v2 = vand.u32 4294901760, %v18974_v48  ;;  %v18993_v47 = vand.u32 4294901760, %v14787_v15 }
0x14a8   : > { %16609 = vmatpush3.msra.mxu0 %v18745_v16  ;;  %v13302_v16 = vsub.f32 %v18857_v23, %v18869_v49  ;;  %16664 = vmatpush3.msra.mxu1 %v13289_v34  ;;  %v13310_v52 = vand.u32 4294901760, %v13309_v39  ;;  %v13338_v55 = vand.u32 4294901760, %v13337_v45  ;;  %19527 = vst [vmem:[#allocation19_spill] sm:$0xff] %v18971_v60  ;;  %v13351_v18 = vsub.f32 %v18958_v46, %v18971_v60 }
0x14a9   : > { %16610 = vmatprep.subr.mxu0 %v18755_v28  ;;  %16665 = vmatprep.subr.mxu1 %v13296_v10  ;;  %v13317_v62 = vand.u32 4294901760, %v13316_v44  ;;  %19528 = vst [vmem:[#allocation20_spill] sm:$0xff] %v18988_v2  ;;  %v18991_v34 = vsub.f32 %v14788_v22, %v18976_v63  ;;  %v19006_v39 = vsub.f32 %v14787_v15, %v18993_v47  ;;  %v14785_v44 = vld [vmem:[%s19405_s12 + $0x80] sm:$0xff] }
0x14aa   : > { %16611 = vmatpush3.msra.mxu0 %v18755_v28  ;;  %v14793_v28 = vld [vmem:[%s19405_s12 + $0xc0] sm:$0xff]  ;;  %v13303_v0 = vand.u32 4294901760, %v13302_v16  ;;  %16666 = vmatpush3.msra.mxu1 %v13296_v10  ;;  %v14786_v10 = vld [vmem:[%s19405_s12 + $0x88] sm:$0xff]  ;;  %v13352_v16 = vand.u32 4294901760, %v13351_v18 }
0x14ab   : > { %16613 = vmatmul.mubr.f32.vlgmr.msra.gmra.mxu0 %v12700_v25  ;;  %16626 = vmatprep.subr.mxu0 %v18808_v53  ;;  %v18901_v38 = vand.u32 4294901760, %v14793_v28  ;;  %v13324_v25 = vand.u32 4294901760, %v13323_v13  ;;  %v19009_v43 = vand.u32 4294901760, %v14786_v10  ;;  %v19020_v13 = vand.u32 4294901760, %v14785_v44 }
0x14ac   : > { %16627 = vmatpush3.msra.mxu0 %v18808_v53  ;;  %16667 = vmatprep.subr.mxu1 %v13303_v0 }
0x14ad   : > { %16628 = vmatprep.subr.mxu0 %v18816_v26  ;;  %v18916_v56 = vsub.f32 %v14793_v28, %v18901_v38  ;;  %16668 = vmatpush3.msra.mxu1 %v13303_v0  ;;  %v13358_v28 = vsub.f32 %v18974_v48, %v18988_v2  ;;  %v19003_v0 = vand.u32 4294901760, %v18991_v34  ;;  %v19024_v24 = vsub.f32 %v14786_v10, %v19009_v43  ;;  %v14784_v10 = vld [vmem:[%s19404_s11 + $0x1] ss:$0 sm:$0xff] }
0x14ae   : > { %16629 = vmatpush3.msra.mxu0 %v18816_v26  ;;  %16669 = vmatprep.subr.mxu1 %v13310_v52  ;;  %v19030_v42 = vsub.f32 %v14785_v44, %v19020_v13 }
0x14af   : > { %16630 = vmatprep.subr.mxu0 %v18829_v35  ;;  %v18928_v20 = vand.u32 4294901760, %v18916_v56  ;;  %16670 = vmatpush3.msra.mxu1 %v13310_v52  ;;  %19529 = vst [vmem:[#allocation21_spill] sm:$0xff] %v19003_v0  ;;  %v13359_v52 = vand.u32 4294901760, %v13358_v28  ;;  %v13365_v12 = vsub.f32 %v18991_v34, %v19003_v0 }
0x14b0   : > { %16631 = vmatpush3.msra.mxu0 %v18829_v35  ;;  %16671 = vmatprep.subr.mxu1 %v13317_v62  ;;  %v19038_v22 = vand.u32 4294901760, %v19030_v42 }
0x14b1   : > { %16632 = vmatprep.subr.mxu0 %v18844_v36  ;;  %v13330_v30 = vsub.f32 %v18916_v56, %v18928_v20  ;;  %16672 = vmatpush3.msra.mxu1 %v13317_v62  ;;  %v19018_v62 = vand.u32 4294901760, %v19006_v39 }
0x14b2   : > { %16633 = vmatpush3.msra.mxu0 %v18844_v36  ;;  %16673 = vmatprep.subr.mxu1 %v13324_v25  ;;  %19532 = vst [vmem:[#allocation14_spill] sm:$0xff] %v19038_v22  ;;  %v13386_v14 = vsub.f32 %v19030_v42, %v19038_v22 }
0x14b3   : > { %16634 = vmatprep.subr.mxu0 %v18860_v27  ;;  %v13331_v1 = vand.u32 4294901760, %v13330_v30  ;;  %16674 = vmatpush3.msra.mxu1 %v13324_v25  ;;  %19530 = vst [vmem:[#allocation22_spill] sm:$0xff] %v19018_v62  ;;  %v13366_v25 = vand.u32 4294901760, %v13365_v12  ;;  %v13372_v30 = vsub.f32 %v19006_v39, %v19018_v62 }
0x14b4   : > { %16635 = vmatpush3.msra.mxu0 %v18860_v27  ;;  %v13387_v18 = vand.u32 4294901760, %v13386_v14 }
0x14b5   : > { %16636 = vmatprep.subr.mxu0 %v18871_v58  ;;  %16675 = vmatprep.subr.mxu1 %v13331_v1  ;;  %v13373_v45 = vand.u32 4294901760, %v13372_v30 }
0x14b6   : > { %16637 = vmatpush3.msra.mxu0 %v18871_v58  ;;  %16676 = vmatpush3.msra.mxu1 %v13331_v1  ;;  %v19034_v1 = vand.u32 4294901760, %v19024_v24 }
0x14b7   : > { %16638 = vmatprep.subr.mxu0 %v18885_v6  ;;  %16677 = vmatprep.subr.mxu1 %v13338_v55 }
0x14b8   : > { %16639 = vmatpush3.msra.mxu0 %v18885_v6  ;;  %16678 = vmatpush3.msra.mxu1 %v13338_v55  ;;  %19531 = vst [vmem:[#allocation13_spill] sm:$0xff] %v19034_v1  ;;  %v13379_v55 = vsub.f32 %v19024_v24, %v19034_v1 }
0x14b9   : > { %16640 = vmatprep.subr.mxu0 %v18901_v38  ;;  %16679 = vmatprep.subr.mxu1 %v13345_v4 }
0x14ba   : > { %16641 = vmatpush3.msra.mxu0 %v18901_v38  ;;  %16680 = vmatpush3.msra.mxu1 %v13345_v4  ;;  %v13380_v15 = vand.u32 4294901760, %v13379_v55 }
0x14bb   : > { %16642 = vmatprep.subr.mxu0 %v18918_v57  ;;  %16681 = vmatprep.subr.mxu1 %v13352_v16 }
0x14bc   : > { %16643 = vmatpush3.msra.mxu0 %v18918_v57  ;;  %16682 = vmatpush3.msra.mxu1 %v13352_v16 }
0x14bd   : > { %16644 = vmatprep.subr.mxu0 %v18934_v5  ;;  %16683 = vmatprep.subr.mxu1 %v13359_v52 }
0x14be   : > { %16645 = vmatpush3.msra.mxu0 %v18934_v5  ;;  %16684 = vmatpush3.msra.mxu1 %v13359_v52 }
0x14bf   : > { %16646 = vmatprep.subr.mxu0 %v18945_v40  ;;  %16685 = vmatprep.subr.mxu1 %v13366_v25 }
0x14c0   : > { %16647 = vmatpush3.msra.mxu0 %v18945_v40  ;;  %16686 = vmatpush3.msra.mxu1 %v13366_v25 }
0x14c1   : > { %16648 = vmatprep.subr.mxu0 %v18960_v37  ;;  %16687 = vmatprep.subr.mxu1 %v13373_v45 }
0x14c2   : > { %16649 = vmatpush3.msra.mxu0 %v18960_v37  ;;  %16688 = vmatpush3.msra.mxu1 %v13373_v45 }
0x14c3   : > { %16650 = vmatprep.subr.mxu0 %v18976_v63  ;;  %16689 = vmatprep.subr.mxu1 %v13380_v15 }
0x14c4   : > { %16651 = vmatpush3.msra.mxu0 %v18976_v63  ;;  %16690 = vmatpush3.msra.mxu1 %v13380_v15 }
0x14c5   : > { %16652 = vmatprep.subr.mxu0 %v18993_v47  ;;  %16691 = vmatprep.subr.mxu1 %v13387_v18 }
0x14c6   : > { %16653 = vmatpush3.msra.mxu0 %v18993_v47  ;;  %16692 = vmatpush3.msra.mxu1 %v13387_v18 }
0x14c7   : > { %16654 = vmatprep.subr.mxu0 %v19009_v43  ;;  %16731 = vmatprep.subr.mxu1 %v18808_v53 }
0x14c8   : > { %16655 = vmatpush3.msra.mxu0 %v19009_v43 }
0x14c9   : > { %16656 = vmatprep.subr.mxu0 %v19020_v13 }
0x14ca   : > { %16657 = vmatpush3.msra.mxu0 %v19020_v13 }
0x14cb   : > { %16696 = vmatprep.subr.mxu0 %v18814_v9 }
0x1551   : > { %v16581_v16 = vpop.f32.mrf.mxu1 }
0x1553   : > { %v12797_v25 = vpop.f32.mrf.mxu1 }
0x1559   : > { %v16603_v45 = vpop.f32.mrf.mxu1 }
0x155a   : > { %v16570_v4 = vpop.f32.mrf.mxu0 }
0x155b   : > { %v12707_v44 = vadd.f32 %v16570_v4, %v14784_v10  ;;  %v12967_v18 = vpop.f32.mrf.mxu1 }
0x155c   : > { %v12696_v28 = vpop.f32.mrf.mxu0 }
0x155d   : > { %v12697_v52 = vadd.f32 %v14784_v10, %v12696_v28  ;;  %v12804_v30 = vadd.f32 %v16581_v16, %v12707_v44 }
0x155f   : > { %v12798_v15 = vadd.f32 %v12797_v25, %v12697_v52 }
0x1562   : > { %v16592_v12 = vpop.f32.mrf.mxu0 }
0x1563   : > { %v12891_v14 = vadd.f32 %v16592_v12, %v12804_v30  ;;  %v16625_v22 = vpop.f32.mrf.mxu1 }
0x1564   : > { %v12883_v55 = vpop.f32.mrf.mxu0 }
0x1565   : > { %v12884_v11 = vadd.f32 %v12883_v55, %v12798_v15  ;;  %v12976_v8 = vadd.f32 %v16603_v45, %v12891_v14  ;;  %v13139_v7 = vpop.f32.mrf.mxu1  ;;  %v13911_v15 = vld [vmem:[%s19407_s14 + $0x18] sm:$0xff] }
0x1567   : > { %v12968_v0 = vadd.f32 %v12967_v18, %v12884_v11  ;;  %v19209_v18 = vand.u32 4294901760, %v13911_v15 }
0x156b   : > { %v16614_v1 = vpop.f32.mrf.mxu0 }
0x156c   : > { %v13065_v62 = vadd.f32 %v16614_v1, %v12976_v8 }
0x156d   : > { %v13058_v2 = vpop.f32.mrf.mxu0 }
0x156e   : > { %v13146_v60 = vadd.f32 %v16625_v22, %v13065_v62  ;;  %v13059_v51 = vadd.f32 %v13058_v2, %v12968_v0  ;;  %v19541_v2 = vld [vmem:[#allocation15_spill] sm:$0xff]  ;;  %v19542_v0 = vld [vmem:[#allocation16_spill] sm:$0xff] }
0x1570   : > { %v13150_v4 = vmax.f32 %v13146_v60, 0.0  ;;  %v13140_v10 = vadd.f32 %v13139_v7, %v13059_v51 }
0x1572   : > { %v19050_v28 = vand.u32 4294901760, %v13150_v4  ;;  %v13149_v16 = vmax.f32 %v13140_v10, 0.0  ;;  %v19215_v10 = vsub.f32 %v13911_v15, %v19209_v18 }
0x1574   : > { %v19053_v44 = vsub.f32 %v13150_v4, %v19050_v28  ;;  %v19055_v52 = vand.u32 4294901760, %v13149_v16  ;;  %v13910_v4 = vld [vmem:[%s19407_s14 + $0x10] sm:$0xff] }
0x1576   : > { %v13269_v12 = vand.u32 4294901760, %v19053_v44  ;;  %v13258_v25 = vsub.f32 %v13149_v16, %v19055_v52  ;;  %16693 = vmatprep.mubr.f32.mxu1 %v19055_v52  ;;  %v13909_v16 = vld [vmem:[%s19407_s14 + $0x8] sm:$0xff] }
0x1577   : > { %16694 = vmatmul.mubr.f32.vlgmr.msra.gmra.mxu1 %v19050_v28 }
0x1578   : > { %16732 = vmatpush3.msra.mxu1 %v18808_v53  ;;  %v13259_v8 = vand.u32 4294901760, %v13258_v25  ;;  %v13270_v11 = vsub.f32 %v19053_v44, %v13269_v12 }
0x1579   : > { %16733 = vmatprep.subr.mxu1 %v18816_v26 }
0x157a   : > { %16734 = vmatpush3.msra.mxu1 %v18816_v26  ;;  %16763 = vmatprep.mubr.f32.mxu1 %v13259_v8  ;;  %v13260_v7 = vsub.f32 %v13258_v25, %v13259_v8  ;;  %v13271_v60 = vand.u32 4294901760, %v13270_v11 }
0x157b   : > { %16735 = vmatprep.subr.mxu1 %v18829_v35 }
0x157c   : > { %16736 = vmatpush3.msra.mxu1 %v18829_v35  ;;  %v13261_v51 = vand.u32 4294901760, %v13260_v7 }
0x157d   : > { %16737 = vmatprep.subr.mxu1 %v18844_v36 }
0x157e   : > { %16738 = vmatpush3.msra.mxu1 %v18844_v36  ;;  %16658 = vmatprep.mubr.f32.mxu0 %v13261_v51 }
0x157f   : > { %16739 = vmatprep.subr.mxu1 %v18860_v27  ;;  %16659 = vmatmul.mubr.f32.vlgmr.msra.gmra.mxu0 %v13271_v60 }
0x1580   : > { %16697 = vmatpush3.msra.mxu0 %v18814_v9  ;;  %16740 = vmatpush3.msra.mxu1 %v18860_v27  ;;  %v19534_v9 = vld [vmem:[#allocation18_spill] sm:$0xff] }
0x1581   : > { %16698 = vmatprep.subr.mxu0 %v18827_v31  ;;  %16728 = vmatprep.mubr.f32.mxu0 %v13258_v25  ;;  %v13908_v25 = vld [vmem:[%s19407_s14] sm:$0xff] }
0x1582   : > { %16741 = vmatprep.subr.mxu1 %v18871_v58  ;;  %16699 = vmatpush3.msra.mxu0 %v18827_v31  ;;  %v19537_v31 = vld [vmem:[#allocation21_spill] sm:$0xff]  ;;  %v19245_v51 = vand.u32 4294901760, %v13908_v25 }
0x1583   : > { %16742 = vmatpush3.msra.mxu1 %v18871_v58  ;;  %16700 = vmatprep.subr.mxu0 %v18842_v59 }
0x1584   : > { %16743 = vmatprep.subr.mxu1 %v18885_v6  ;;  %16701 = vmatpush3.msra.mxu0 %v18842_v59  ;;  %v19540_v59 = vld [vmem:[#allocation14_spill] sm:$0xff] }
0x1585   : > { %16744 = vmatpush3.msra.mxu1 %v18885_v6  ;;  %16702 = vmatprep.subr.mxu0 %v18857_v23 }
0x1586   : > { %16745 = vmatprep.subr.mxu1 %v18901_v38  ;;  %16703 = vmatpush3.msra.mxu0 %v18857_v23 }
0x1587   : > { %16746 = vmatpush3.msra.mxu1 %v18901_v38  ;;  %16704 = vmatprep.subr.mxu0 %v18874_v50 }
0x1588   : > { %16747 = vmatprep.subr.mxu1 %v18918_v57  ;;  %16705 = vmatpush3.msra.mxu0 %v18874_v50 }
0x1589   : > { %16748 = vmatpush3.msra.mxu1 %v18918_v57  ;;  %16706 = vmatprep.subr.mxu0 %v18883_v17 }
0x158a   : > { %16749 = vmatprep.subr.mxu1 %v18934_v5  ;;  %16707 = vmatpush3.msra.mxu0 %v18883_v17 }
0x158b   : > { %16750 = vmatpush3.msra.mxu1 %v18934_v5  ;;  %16708 = vmatprep.subr.mxu0 %v18899_v33 }
0x158c   : > { %16751 = vmatprep.subr.mxu1 %v18945_v40  ;;  %16709 = vmatpush3.msra.mxu0 %v18899_v33 }
0x158d   : > { %16752 = vmatpush3.msra.mxu1 %v18945_v40  ;;  %16710 = vmatprep.subr.mxu0 %v18916_v56 }
0x158e   : > { %16753 = vmatprep.subr.mxu1 %v18960_v37  ;;  %16711 = vmatpush3.msra.mxu0 %v18916_v56 }
0x158f   : > { %16754 = vmatpush3.msra.mxu1 %v18960_v37  ;;  %16712 = vmatprep.subr.mxu0 %v18931_v21 }
0x1590   : > { %16755 = vmatprep.subr.mxu1 %v18976_v63  ;;  %16713 = vmatpush3.msra.mxu0 %v18931_v21 }
0x1591   : > { %16756 = vmatpush3.msra.mxu1 %v18976_v63  ;;  %16714 = vmatprep.subr.mxu0 %v18949_v41 }
0x1592   : > { %16757 = vmatprep.subr.mxu1 %v18993_v47  ;;  %16715 = vmatpush3.msra.mxu0 %v18949_v41 }
0x1593   : > { %16758 = vmatpush3.msra.mxu1 %v18993_v47  ;;  %16716 = vmatprep.subr.mxu0 %v18958_v46 }
0x1594   : > { %16759 = vmatprep.subr.mxu1 %v19009_v43  ;;  %16717 = vmatpush3.msra.mxu0 %v18958_v46 }
0x1595   : > { %16760 = vmatpush3.msra.mxu1 %v19009_v43  ;;  %16718 = vmatprep.subr.mxu0 %v18974_v48 }
0x1596   : > { %16761 = vmatprep.subr.mxu1 %v19020_v13  ;;  %16719 = vmatpush3.msra.mxu0 %v18974_v48 }
0x1597   : > { %16762 = vmatpush3.msra.mxu1 %v19020_v13  ;;  %16720 = vmatprep.subr.mxu0 %v18991_v34 }
0x1598   : > { %16764 = vmatmul.mubr.f32.vlgmr.msra.gmra.mxu1 %v13269_v12  ;;  %16801 = vmatprep.subr.mxu1 %v18808_v53  ;;  %v19230_v12 = vand.u32 4294901760, %v13909_v16 }
0x1599   : > { %16721 = vmatpush3.msra.mxu0 %v18991_v34  ;;  %16802 = vmatpush3.msra.mxu1 %v18808_v53  ;;  %v19533_v53 = vld [vmem:[#allocation17_spill] sm:$0xff] }
0x159a   : > { %16833 = vmatprep.mubr.f32.mxu1 %v19055_v52  ;;  %16722 = vmatprep.subr.mxu0 %v19006_v39  ;;  %v19243_v7 = vsub.f32 %v13909_v16, %v19230_v12 }
0x159b   : > { %16803 = vmatprep.subr.mxu1 %v18816_v26  ;;  %16723 = vmatpush3.msra.mxu0 %v19006_v39 }
0x159c   : > { %16804 = vmatpush3.msra.mxu1 %v18816_v26  ;;  %16724 = vmatprep.subr.mxu0 %v19024_v24  ;;  %v19535_v26 = vld [vmem:[#allocation19_spill] sm:$0xff] }
0x159d   : > { %16805 = vmatprep.subr.mxu1 %v18829_v35  ;;  %16725 = vmatpush3.msra.mxu0 %v19024_v24 }
0x159e   : > { %16806 = vmatpush3.msra.mxu1 %v18829_v35  ;;  %16726 = vmatprep.subr.mxu0 %v19030_v42  ;;  %v19538_v35 = vld [vmem:[#allocation22_spill] sm:$0xff] }
0x159f   : > { %16807 = vmatprep.subr.mxu1 %v18844_v36  ;;  %16727 = vmatpush3.msra.mxu0 %v19030_v42 }
0x15a0   : > { %16808 = vmatpush3.msra.mxu1 %v18844_v36  ;;  %16729 = vmatmul.mubr.f32.vlgmr.msra.gmra.mxu0 %v19053_v44  ;;  %v19225_v44 = vand.u32 4294901760, %v19215_v10 }
0x15a1   : > { %16766 = vmatprep.subr.mxu0 %v18824_v32  ;;  %16809 = vmatprep.subr.mxu1 %v18860_v27 }
0x15a2   : > { %16767 = vmatpush3.msra.mxu0 %v18824_v32  ;;  %16798 = vmatprep.mubr.f32.mxu0 %v19055_v52  ;;  %v19536_v32 = vld [vmem:[#allocation20_spill] sm:$0xff]  ;;  %v14042_v8 = vsub.f32 %v19215_v10, %v19225_v44 }
0x15a3   : > { %16810 = vmatpush3.msra.mxu1 %v18860_v27  ;;  %16768 = vmatprep.subr.mxu0 %v18839_v54 }
0x15a4   : > { %16811 = vmatprep.subr.mxu1 %v18871_v58  ;;  %16769 = vmatpush3.msra.mxu0 %v18839_v54  ;;  %v19539_v54 = vld [vmem:[#allocation13_spill] sm:$0xff]  ;;  %v14043_v60 = vand.u32 4294901760, %v14042_v8 }
0x15a5   : > { %16812 = vmatpush3.msra.mxu1 %v18871_v58  ;;  %16770 = vmatprep.subr.mxu0 %v18854_v19 }
0x15a6   : > { %16813 = vmatprep.subr.mxu1 %v18885_v6  ;;  %16771 = vmatpush3.msra.mxu0 %v18854_v19  ;;  %v14802_v19 = vld [vmem:[%s19406_s13 + $0x1] ss:$0 sm:$0xff] }
0x15a7   : > { %16814 = vmatpush3.msra.mxu1 %v18885_v6  ;;  %16772 = vmatprep.subr.mxu0 %v18869_v49 }
0x15a8   : > { %16815 = vmatprep.subr.mxu1 %v18901_v38  ;;  %16773 = vmatpush3.msra.mxu0 %v18869_v49 }
0x15a9   : > { %16816 = vmatpush3.msra.mxu1 %v18901_v38  ;;  %16774 = vmatprep.subr.mxu0 %v18889_v3 }
0x15aa   : > { %16817 = vmatprep.subr.mxu1 %v18918_v57  ;;  %16775 = vmatpush3.msra.mxu0 %v18889_v3 }
0x15ab   : > { %16818 = vmatpush3.msra.mxu1 %v18918_v57  ;;  %16776 = vmatprep.subr.mxu0 %v18896_v29 }
0x15ac   : > { %16819 = vmatprep.subr.mxu1 %v18934_v5  ;;  %16777 = vmatpush3.msra.mxu0 %v18896_v29 }
0x15ad   : > { %16820 = vmatpush3.msra.mxu1 %v18934_v5  ;;  %16778 = vmatprep.subr.mxu0 %v18913_v61 }
0x15ae   : > { %16821 = vmatprep.subr.mxu1 %v18945_v40  ;;  %16779 = vmatpush3.msra.mxu0 %v18913_v61 }
0x15af   : > { %16822 = vmatpush3.msra.mxu1 %v18945_v40  ;;  %16780 = vmatprep.subr.mxu0 %v18928_v20 }
0x15b0   : > { %16823 = vmatprep.subr.mxu1 %v18960_v37  ;;  %16781 = vmatpush3.msra.mxu0 %v18928_v20 }
0x15b1   : > { %16824 = vmatpush3.msra.mxu1 %v18960_v37  ;;  %16782 = vmatprep.subr.mxu0 %v19533_v53 }
0x15b2   : > { %16825 = vmatprep.subr.mxu1 %v18976_v63  ;;  %16783 = vmatpush3.msra.mxu0 %v19533_v53 }
0x15b3   : > { %16826 = vmatpush3.msra.mxu1 %v18976_v63  ;;  %16784 = vmatprep.subr.mxu0 %v19534_v9 }
0x15b4   : > { %16827 = vmatprep.subr.mxu1 %v18993_v47  ;;  %16785 = vmatpush3.msra.mxu0 %v19534_v9  ;;  %v19252_v9 = vand.u32 4294901760, %v19243_v7 }
0x15b5   : > { %16828 = vmatpush3.msra.mxu1 %v18993_v47  ;;  %16786 = vmatprep.subr.mxu0 %v19535_v26 }
0x15b6   : > { %16829 = vmatprep.subr.mxu1 %v19009_v43  ;;  %16787 = vmatpush3.msra.mxu0 %v19535_v26  ;;  %v19255_v26 = vsub.f32 %v13908_v25, %v19245_v51 }
0x15b7   : > { %16830 = vmatpush3.msra.mxu1 %v19009_v43  ;;  %16788 = vmatprep.subr.mxu0 %v19536_v32 }
0x15b8   : > { %16831 = vmatprep.subr.mxu1 %v19020_v13  ;;  %16789 = vmatpush3.msra.mxu0 %v19536_v32 }
0x15b9   : > { %16832 = vmatpush3.msra.mxu1 %v19020_v13  ;;  %16790 = vmatprep.subr.mxu0 %v19537_v31 }
0x15ba   : > { %16834 = vmatmul.mubr.f32.vlgmr.msra.gmra.mxu1 %v19050_v28  ;;  %16791 = vmatpush3.msra.mxu0 %v19537_v31  ;;  %v14056_v31 = vsub.f32 %v19243_v7, %v19252_v9 }
0x15bb   : > { %16792 = vmatprep.subr.mxu0 %v19538_v35  ;;  %16847 = vmatprep.subr.mxu1 %v14043_v60 }
0x15bc   : > { %16793 = vmatpush3.msra.mxu0 %v19538_v35  ;;  %v19262_v35 = vand.u32 4294901760, %v19255_v26  ;;  %16848 = vmatpush3.msra.mxu1 %v14043_v60 }
0x15bd   : > { %16794 = vmatprep.subr.mxu0 %v19539_v54 }
0x15be   : > { %16795 = vmatpush3.msra.mxu0 %v19539_v54  ;;  %v14057_v54 = vand.u32 4294901760, %v14056_v31 }
0x15bf   : > { %16796 = vmatprep.subr.mxu0 %v19540_v59 }
0x15c0   : > { %16797 = vmatpush3.msra.mxu0 %v19540_v59  ;;  %v14063_v59 = vsub.f32 %v19255_v26, %v19262_v35 }
0x15c1   : > { %16799 = vmatmul.mubr.f32.vlgmr.msra.gmra.mxu0 %v19050_v28  ;;  %v19217_v28 = vand.u32 4294901760, %v13910_v4  ;;  %16836 = vmatprep.subr.mxu0 %v19209_v18 }
0x15c2   : > { %16837 = vmatpush3.msra.mxu0 %v19209_v18 }
0x15c3   : > { %v19228_v52 = vsub.f32 %v13910_v4, %v19217_v28  ;;  %16838 = vmatprep.subr.mxu0 %v19217_v28 }
0x15c4   : > { %16839 = vmatpush3.msra.mxu0 %v19217_v28 }
0x15c5   : > { %v19240_v11 = vand.u32 4294901760, %v19228_v52  ;;  %16840 = vmatprep.subr.mxu0 %v19230_v12 }
0x15c6   : > { %16841 = vmatpush3.msra.mxu0 %v19230_v12 }
0x15c7   : > { %v14049_v53 = vsub.f32 %v19228_v52, %v19240_v11  ;;  %16842 = vmatprep.subr.mxu0 %v19245_v51 }
0x15c8   : > { %16843 = vmatpush3.msra.mxu0 %v19245_v51 }
0x15c9   : > { %v14050_v32 = vand.u32 4294901760, %v14049_v53  ;;  %16858 = vmatprep.subr.mxu0 %v19215_v10 }
0x15cb   : > { %16849 = vmatprep.subr.mxu1 %v14050_v32 }
0x15cc   : > { %16850 = vmatpush3.msra.mxu1 %v14050_v32 }
0x15cd   : > { %16851 = vmatprep.subr.mxu1 %v14057_v54 }
0x15ce   : > { %16852 = vmatpush3.msra.mxu1 %v14057_v54  ;;  %v14808_v54 = vld [vmem:[#allocation3] ss:$0 sm:$0xff] }
0x1637   : > { %v16695_v23 = vpop.f32.mrf.mxu1 }
0x1639   : > { %v13424_v17 = vpop.f32.mrf.mxu1 }
0x163f   : > { %v16660_v36 = vpop.f32.mrf.mxu0 }
0x1640   : > { %v13274_v49 = vadd.f32 %v16660_v36, %v14802_v19  ;;  %v14064_v36 = vand.u32 4294901760, %v14063_v59 }
0x1641   : > { %v13263_v27 = vpop.f32.mrf.mxu0 }
0x1642   : > { %v13264_v50 = vadd.f32 %v14802_v19, %v13263_v27  ;;  %v13431_v6 = vadd.f32 %v16695_v23, %v13274_v49  ;;  %16853 = vmatprep.subr.mxu1 %v14064_v36 }
0x1643   : > { %16854 = vmatpush3.msra.mxu1 %v14064_v36 }
0x1644   : > { %v13425_v38 = vadd.f32 %v13424_v17, %v13264_v50  ;;  %16869 = vmatprep.subr.mxu1 %v19209_v18 }
0x1658   : > { %v16765_v3 = vpop.f32.mrf.mxu1 }
0x165a   : > { %v13630_v56 = vpop.f32.mrf.mxu1 }
0x1660   : > { %v16730_v58 = vpop.f32.mrf.mxu0 }
0x1661   : > { %v13542_v33 = vadd.f32 %v16730_v58, %v13431_v6  ;;  %v14805_v6 = vld [vmem:[%s19401_s8 + $0x1] ss:$0 sm:$0xff] }
0x1662   : > { %v13534_v29 = vpop.f32.mrf.mxu0 }
0x1663   : > { %v13535_v61 = vadd.f32 %v13534_v29, %v13425_v38  ;;  %v13639_v57 = vadd.f32 %v16765_v3, %v13542_v33  ;;  %v14806_v33 = vld [vmem:[%s19402_s9 + $0x1] ss:$0 sm:$0xff] }
0x1665   : > { %v13631_v40 = vadd.f32 %v13630_v56, %v13535_v61 }
0x167a   : > { %v16835_v20 = vpop.f32.mrf.mxu1 }
0x167c   : > { %v13850_v48 = vpop.f32.mrf.mxu1 }
0x1681   : > { %v16800_v21 = vpop.f32.mrf.mxu0 }
0x1682   : > { %v13764_v5 = vadd.f32 %v16800_v21, %v13639_v57 }
0x1683   : > { %v13757_v41 = vpop.f32.mrf.mxu0 }
0x1684   : > { %v13857_v46 = vadd.f32 %v16835_v20, %v13764_v5  ;;  %v13758_v37 = vadd.f32 %v13757_v41, %v13631_v40 }
0x1686   : > { %v13851_v63 = vadd.f32 %v13850_v48, %v13758_v37  ;;  %v13861_v34 = vadd.f32 %v13857_v46, %v19541_v2 }
0x1688   : > { %v13869_v47 = vsel %vm723_vm0, %v13861_v34, 0.0  ;;  %v13860_v39 = vadd.f32 %v13851_v63, %v19542_v0 }
0x1689   : > { %13870 = vadd.xlane.f32.xlu0 %v13869_v47 }
0x168a   : > { %v13866_v43 = vsel %vm723_vm0, %v13860_v39, 0.0 }
0x168b   : > { %13867 = vadd.xlane.f32.xlu1 %v13866_v43 }
0x1712   : > { %v13871_v62 = vpop.xlane.xlu0 %13870 }
0x1713   : > { %v13873_v13 = vmul.f32 0.03125, %v13871_v62  ;;  %v14807_v62 = vld [vmem:[#allocation2] ss:$0 sm:$0xff] }
0x1714   : > { %v13868_v24 = vpop.xlane.xlu1 %13867 }
0x1715   : > { %v13875_v42 = vsub.f32 %v13861_v34, %v13873_v13  ;;  %v13872_v1 = vmul.f32 0.03125, %v13868_v24 }
0x1717   : > { %v13874_v22 = vsub.f32 %v13860_v39, %v13872_v1  ;;  %v13877_v30 = vmul.f32 %v13875_v42, %v13875_v42  ;;  %v17088_v39 = vmov 0  }
0x1718   : > { %16952 = vset.pattern.permute.xlu0 %v17088_v39  ;;  %16951 = vset.pattern.permute.xlu1 %v17088_v39 }
0x1719   : > { %v13881_v45 = vsel %vm723_vm0, %v13877_v30, 0.0  ;;  %v13876_v55 = vmul.f32 %v13874_v22, %v13874_v22 }
0x171a   : > { %13882 = vadd.xlane.f32.xlu0 %v13881_v45 }
0x171b   : > { %v13878_v14 = vsel %vm723_vm0, %v13876_v55, 0.0 }
0x171c   : > { %13879 = vadd.xlane.f32.xlu1 %v13878_v14 }
0x17a3   : > { %v13883_v19 = vpop.xlane.xlu0 %13882 }
0x17a4   : > { %v13885_v23 = vmul.f32 0.03125, %v13883_v19  ;;  %v14809_v19 = vld [vmem:[#allocation4] ss:$0 sm:$0xff] }
0x17a5   : > { %v13880_v27 = vpop.xlane.xlu1 %13879 }
0x17a6   : > { %v13887_v49 = vadd.f32 1e-05, %v13885_v23  ;;  %v13884_v58 = vmul.f32 0.03125, %v13880_v27 }
0x17a8   : > { %16997 = vrsqrt.f32 %v13887_v49  ;;  %v13886_v50 = vadd.f32 1e-05, %v13884_v58 }
0x17aa   : > { %16999 = vrsqrt.f32 %v13886_v50 }
0x17b5   : > { %v16998_v17 = vpop.eup %16997 }
0x17b6   : > { %v13891_v3 = vmul.f32 %v16998_v17, %v13875_v42 }
0x17b7   : > { %v17000_v29 = vpop.eup %16999 }
0x17b8   : > { %v13890_v38 = vmul.f32 %v17000_v29, %v13874_v22  ;;  %v13899_v61 = vmul.f32 %v14805_v6, %v13891_v3 }
0x17ba   : > { %v13898_v56 = vmul.f32 %v14805_v6, %v13890_v38  ;;  %v19274_v57 = vadd.f32 %v14806_v33, %v13899_v61 }
0x17bc   : > { %v19276_v20 = vadd.f32 %v14806_v33, %v13898_v56  ;;  %v13923_v21 = vsel %vm723_vm0, %v19274_v57, 0 }
0x17bd   : > { %v14004_v5 = vand.u32 4294901760, %v13923_v21 }
0x17be   : > { %v13920_v40 = vsel %vm723_vm0, %v19276_v20, 0 }
0x17bf   : > { %v13994_v41 = vand.u32 4294901760, %v13920_v40  ;;  %v14005_v46 = vsub.f32 %v13923_v21, %v14004_v5 }
0x17c1   : > { %16855 = vmatprep.mubr.f32.mxu1 %v13994_v41  ;;  %v13995_v37 = vsub.f32 %v13920_v40, %v13994_v41  ;;  %v14006_v48 = vand.u32 4294901760, %v14005_v46 }
0x17c2   : > { %16856 = vmatmul.mubr.f32.vlgmr.msra.gmra.mxu1 %v14004_v5 }
0x17c3   : > { %16870 = vmatpush3.msra.mxu1 %v19209_v18  ;;  %v13996_v63 = vand.u32 4294901760, %v13995_v37  ;;  %v14007_v34 = vsub.f32 %v14005_v46, %v14006_v48 }
0x17c4   : > { %16871 = vmatprep.subr.mxu1 %v19217_v28 }
0x17c5   : > { %16872 = vmatpush3.msra.mxu1 %v19217_v28  ;;  %16877 = vmatprep.mubr.f32.mxu1 %v13996_v63  ;;  %v13997_v2 = vsub.f32 %v13995_v37, %v13996_v63  ;;  %v14008_v0 = vand.u32 4294901760, %v14007_v34 }
0x17c6   : > { %16873 = vmatprep.subr.mxu1 %v19230_v12 }
0x17c7   : > { %16874 = vmatpush3.msra.mxu1 %v19230_v12  ;;  %v13998_v47 = vand.u32 4294901760, %v13997_v2 }
0x17c8   : > { %16875 = vmatprep.subr.mxu1 %v19245_v51 }
0x17c9   : > { %16876 = vmatpush3.msra.mxu1 %v19245_v51  ;;  %16844 = vmatprep.mubr.f32.mxu0 %v13998_v47 }
0x17ca   : > { %16878 = vmatmul.mubr.f32.vlgmr.msra.gmra.mxu1 %v14006_v48  ;;  %16891 = vmatprep.subr.mxu1 %v19209_v18 }
0x17cb   : > { %16845 = vmatmul.mubr.f32.vlgmr.msra.gmra.mxu0 %v14008_v0  ;;  %16892 = vmatpush3.msra.mxu1 %v19209_v18 }
0x17cc   : > { %16859 = vmatpush3.msra.mxu0 %v19215_v10  ;;  %16899 = vmatprep.mubr.f32.mxu1 %v13994_v41 }
0x17cd   : > { %16860 = vmatprep.subr.mxu0 %v19228_v52  ;;  %16866 = vmatprep.mubr.f32.mxu0 %v13995_v37 }
0x17ce   : > { %16893 = vmatprep.subr.mxu1 %v19217_v28  ;;  %16861 = vmatpush3.msra.mxu0 %v19228_v52 }
0x17cf   : > { %16894 = vmatpush3.msra.mxu1 %v19217_v28  ;;  %16862 = vmatprep.subr.mxu0 %v19243_v7 }
0x17d0   : > { %16895 = vmatprep.subr.mxu1 %v19230_v12  ;;  %16863 = vmatpush3.msra.mxu0 %v19243_v7 }
0x17d1   : > { %16896 = vmatpush3.msra.mxu1 %v19230_v12  ;;  %16864 = vmatprep.subr.mxu0 %v19255_v26 }
0x17d2   : > { %16897 = vmatprep.subr.mxu1 %v19245_v51  ;;  %16865 = vmatpush3.msra.mxu0 %v19255_v26 }
0x17d3   : > { %16898 = vmatpush3.msra.mxu1 %v19245_v51  ;;  %16867 = vmatmul.mubr.f32.vlgmr.msra.gmra.mxu0 %v14005_v46 }
0x17d4   : > { %16880 = vmatprep.subr.mxu0 %v19225_v44  ;;  %16900 = vmatmul.mubr.f32.vlgmr.msra.gmra.mxu1 %v14004_v5 }
0x17d5   : > { %16881 = vmatpush3.msra.mxu0 %v19225_v44  ;;  %16888 = vmatprep.mubr.f32.mxu0 %v13994_v41 }
0x17d6   : > { %16882 = vmatprep.subr.mxu0 %v19240_v11 }
0x17d7   : > { %16883 = vmatpush3.msra.mxu0 %v19240_v11 }
0x17d8   : > { %16884 = vmatprep.subr.mxu0 %v19252_v9 }
0x17d9   : > { %16885 = vmatpush3.msra.mxu0 %v19252_v9 }
0x17da   : > { %16886 = vmatprep.subr.mxu0 %v19262_v35 }
0x17db   : > { %16887 = vmatpush3.msra.mxu0 %v19262_v35 }
0x17dc   : > { %16889 = vmatmul.mubr.f32.vlgmr.msra.gmra.mxu0 %v14004_v5 }
0x1882   : > { %v16857_v13 = vpop.f32.mrf.mxu1 }
0x1884   : > { %v14101_v30 = vpop.f32.mrf.mxu1 }
0x188a   : > { %v16879_v55 = vpop.f32.mrf.mxu1 }
0x188b   : > { %v16846_v43 = vpop.f32.mrf.mxu0 }
0x188c   : > { %v14011_v42 = vadd.f32 %v16846_v43, %v14807_v62  ;;  %v14271_v10 = vpop.f32.mrf.mxu1 }
0x188d   : > { %v14000_v24 = vpop.f32.mrf.mxu0 }
0x188e   : > { %v14001_v1 = vadd.f32 %v14807_v62, %v14000_v24  ;;  %v14108_v45 = vadd.f32 %v16857_v13, %v14011_v42 }
0x1890   : > { %v14102_v18 = vadd.f32 %v14101_v30, %v14001_v1 }
0x1893   : > { %v16868_v22 = vpop.f32.mrf.mxu0 }
0x1894   : > { %v14195_v15 = vadd.f32 %v16868_v22, %v14108_v45  ;;  %v16901_v16 = vpop.f32.mrf.mxu1 }
0x1895   : > { %v14187_v14 = vpop.f32.mrf.mxu0 }
0x1896   : > { %v14188_v4 = vadd.f32 %v14187_v14, %v14102_v18  ;;  %v14280_v28 = vadd.f32 %v16879_v55, %v14195_v15  ;;  %v14443_v7 = vpop.f32.mrf.mxu1 }
0x1898   : > { %v14272_v12 = vadd.f32 %v14271_v10, %v14188_v4 }
0x189c   : > { %v16890_v44 = vpop.f32.mrf.mxu0 }
0x189d   : > { %v14369_v52 = vadd.f32 %v16890_v44, %v14280_v28 }
0x189e   : > { %v14362_v25 = vpop.f32.mrf.mxu0 }
0x189f   : > { %v14450_v8 = vadd.f32 %v16901_v16, %v14369_v52  ;;  %v14363_v11 = vadd.f32 %v14362_v25, %v14272_v12 }
0x18a1   : > { %v14458_v51 = vsub.f32 %v14450_v8, %v14450_v8  ;;  %v14444_v60 = vadd.f32 %v14443_v7, %v14363_v11 }
0x18a3   : > { %v14460_v53 = vmul.f32 %v14458_v51, %v14458_v51  ;;  %v14457_v9 = vsub.f32 %v14444_v60, %v14444_v60 }
0x18a5   : > { %v14464_v26 = vadd.f32 1e-05, %v14460_v53  ;;  %v14459_v32 = vmul.f32 %v14457_v9, %v14457_v9 }
0x18a7   : > { %17001 = vrsqrt.f32 %v14464_v26  ;;  %v14463_v31 = vadd.f32 1e-05, %v14459_v32 }
0x18a9   : > { %17003 = vrsqrt.f32 %v14463_v31 }
0x18b4   : > { %v17002_v35 = vpop.eup %17001 }
0x18b5   : > { %v14468_v59 = vmul.f32 %v17002_v35, %v14458_v51 }
0x18b6   : > { %v17004_v36 = vpop.eup %17003 }
0x18b7   : > { %v14476_v23 = vmul.f32 %v14808_v54, %v14468_v59  ;;  %v14467_v27 = vmul.f32 %v17004_v36, %v14457_v9 }
0x18b9   : > { %v14484_v49 = vadd.f32 %v14809_v19, %v14476_v23  ;;  %v14475_v58 = vmul.f32 %v14808_v54, %v14467_v27 }
0x18bb   : > { %v14493_v50 = vsel %vm14485_vm4, %v14484_v49, -inf  ;;  %v14483_v17 = vadd.f32 %v14809_v19, %v14475_v58 }
0x18bc   : > { %v14494_v6 = vrot.slane %v14493_v50, 4 }
0x18bd   : > { %v14486_v3 = vsel %vm14485_vm4, %v14483_v17, -inf }
0x18be   : > { %v14495_v29 = vmax.f32 %v14493_v50, %v14494_v6  ;;  %v14487_v33 = vrot.slane %v14486_v3, 4 }
0x18c0   : > { %v14496_v38 = vrot.slane %v14495_v29, 2  ;;  %v14488_v61 = vmax.f32 %v14486_v3, %v14487_v33 }
0x18c2   : > { %v14497_v56 = vmax.f32 %v14495_v29, %v14496_v38  ;;  %v14489_v21 = vrot.slane %v14488_v61, 2 }
0x18c4   : > { %v14498_v5 = vrot.slane %v14497_v56, 1  ;;  %v14490_v40 = vmax.f32 %v14488_v61, %v14489_v21  ;;  %v14810_v21 = vld [vmem:[%s19409_s18] ss:$0 sm:$0xff] }
0x18c6   : > { %v14499_v41 = vmax.f32 %v14497_v56, %v14498_v5  ;;  %v14491_v46 = vrot.slane %v14490_v40, 1 }
0x18c8   : > { %v14501_v37 = vsub.f32 %v14484_v49, %v14499_v41  ;;  %v14492_v48 = vmax.f32 %v14490_v40, %v14491_v46 }
0x18ca   : > { %v14504_v63 = vmul.f32 1.442695, %v14501_v37  ;;  %v14500_v2 = vsub.f32 %v14483_v17, %v14492_v48  ;;  %v14811_v37 = vld [vmem:[%s19410_s19] ss:$0 sm:$0xff] }
0x18cc   : > { %17005 = vpow2.f32 %v14504_v63  ;;  %v14502_v34 = vmul.f32 1.442695, %v14500_v2  ;;  %v14604_v63 = vld [vmem:[%s707_s23 + $0x1] sm:$0x1] }
0x18ce   : > { %17007 = vpow2.f32 %v14502_v34 }
0x18d9   : > { %v17006_v47 = vpop.eup %17005 }
0x18da   : > { %v14513_v0 = vsel %vm14485_vm4, %v17006_v47, 0.0 }
0x18db   : > { %v17008_v39 = vpop.eup %17007  ;;  %v14514_v43 = vrot.slane %v14513_v0, 4 }
0x18dc   : > { %v14506_v62 = vsel %vm14485_vm4, %v17008_v39, 0.0 }
0x18dd   : > { %v14515_v13 = vadd.f32 %v14514_v43, %v14513_v0  ;;  %v14507_v24 = vrot.slane %v14506_v62, 4 }
0x18df   : > { %v14516_v42 = vrot.slane %v14515_v13, 2  ;;  %v14508_v1 = vadd.f32 %v14507_v24, %v14506_v62 }
0x18e1   : > { %v14517_v22 = vadd.f32 %v14516_v42, %v14515_v13  ;;  %v14509_v30 = vrot.slane %v14508_v1, 2 }
0x18e3   : > { %v14518_v45 = vrot.slane %v14517_v22, 1  ;;  %v14510_v55 = vadd.f32 %v14509_v30, %v14508_v1 }
0x18e5   : > { %v14519_v14 = vadd.f32 %v14518_v45, %v14517_v22  ;;  %v14511_v15 = vrot.slane %v14510_v55, 1 }
0x18e7   : > { %17009 = vrcp.f32 %v14519_v14  ;;  %v14512_v18 = vadd.f32 %v14511_v15, %v14510_v55 }
0x18e9   : > { %17011 = vrcp.f32 %v14512_v18 }
0x18f4   : > { %v17010_v4 = vpop.eup %17009 }
0x18f5   : > { %v14523_v10 = vmul.f32 %v17010_v4, %v17006_v47  ;;  %v14603_v47 = vld [vmem:[%s707_s23] sm:$0x1]  ;;  %s14676_s23 = sshll.u32 %s697_s17, 4  ;;  %s19351_s23 = int_to_ptr.vmem [resolvable:$true] %s14676_s23 }
0x18f6   : > { %v17012_v28 = vpop.eup %17011  ;;  %s17019_s16 = scalar_lea.vmem %s19351_s23, 32  ;;  %p17026_p0 = scmp.lt.s32.totalorder %s19351_s23, %s17024_s24 }
0x18f7   : > { %14531 = vperm.xlu0 %16952, %v14523_v10   ;;  %v14521_v16 = vmul.f32 %v17012_v28, %v17008_v39  ;;  %p17020_p11 = scmp.ne.s32.totalorder %s19351_s23, %s17019_s16  ;;  %p17027_p1 = scmp.lt.s32.totalorder %s17025_s7, %s17019_s16 }
0x18f9   : > { %14526 = vperm.xlu1 %16951, %v14521_v16   ;;  %p17021_p12 = pnand %p17020_p11, %p17254_p5  ;;  %p17028_p2 = por %p17027_p1, %p17026_p0 }
0x18fb   : > { %p17022_p13 = pneg %p17021_p12 }
0x18fd   : > { %p17029_p3 = pnand %p17028_p2, %p17022_p13 }
0x1972   : > { %v14532_v44 = vpop.permute.xlu0 %14531 }
0x1973   : > { %v14535_v52 = vmul.f32 %v14532_v44, %v19274_v57  ;;  %v14812_v44 = vld [vmem:[%s19411_s20] ss:$0 sm:$0xff] }
0x1974   : > { %v14527_v12 = vpop.permute.xlu1 %14526 }
0x1975   : > { %v14543_v25 = vsel %vm723_vm0, %v14535_v52, 0.0  ;;  %v14534_v8 = vmul.f32 %v14527_v12, %v19276_v20 }
0x1976   : > { %v14544_v11 = vrot.slane %v14543_v25, 4 }
0x1977   : > { %v14536_v7 = vsel %vm723_vm0, %v14534_v8, 0.0 }
0x1978   : > { %v14545_v51 = vadd.f32 %v14544_v11, %v14543_v25  ;;  %v14537_v60 = vrot.slane %v14536_v7, 4  ;;  %v14813_v25 = vld [vmem:[%s19412_s21] ss:$0 sm:$0xff] }
0x197a   : > { %v14546_v53 = vrot.slane %v14545_v51, 2  ;;  %v14538_v9 = vadd.f32 %v14537_v60, %v14536_v7 }
0x197c   : > { %v14547_v26 = vadd.f32 %v14546_v53, %v14545_v51  ;;  %v14539_v32 = vrot.slane %v14538_v9, 2 }
0x197e   : > { %v14548_v31 = vrot.slane %v14547_v26, 1  ;;  %v14540_v35 = vadd.f32 %v14539_v32, %v14538_v9 }
0x1980   : > { %v14541_v54 = vrot.slane %v14540_v35, 1  ;;  %v14549_v57 = vadd.f32 %v14548_v31, %v14547_v26 }
0x1982   : > { %v14542_v59 = vadd.f32 %v14541_v54, %v14540_v35 }
0x1984   : > { %v14555_v36 = vsel %vm14554_vm5, %v14549_v57, %v14542_v59 }
0x1985   : > { %v14558_v20 = vsel %vm14557_vm6, %v14555_v36, 0.0 }
0x1986   : > { %14559 = vadd.xlane.f32.xlu1 %v14558_v20 }
0x1a0f   : > { %v14560_v19 = vpop.xlane.xlu1 %14559 }
0x1a10   : > { %v14561_v23 = vmul.f32 0.03125, %v14560_v19 }
0x1a12   : > { %v14563_v27 = vrot.slane %v14561_v23, 1  ;;  %v14566_v49 = vsub.f32 %v14542_v59, %v14561_v23 }
0x1a14   : > { %v14567_v58 = vsub.f32 %v14549_v57, %v14563_v27  ;;  %v14568_v17 = vmul.f32 %v14566_v49, %v14566_v49 }
0x1a16   : > { %v14569_v50 = vmul.f32 %v14567_v58, %v14567_v58 }
0x1a18   : > { %v14572_v6 = vrot.slane %v14569_v50, 7 }
0x1a1a   : > { %v14573_v3 = vsel %vm14554_vm5, %v14572_v6, %v14568_v17 }
0x1a1b   : > { %v14575_v29 = vsel %vm14557_vm6, %v14573_v3, 0.0 }
0x1a1c   : > { %14576 = vadd.xlane.f32.xlu0 %v14575_v29 }
0x1aa5   : > { %v14577_v33 = vpop.xlane.xlu0 %14576 }
0x1aa6   : > { %v14578_v38 = vmul.f32 0.03125, %v14577_v33 }
0x1aa8   : > { %v14579_v61 = vadd.f32 1e-05, %v14578_v38 }
0x1aaa   : > { %17013 = vrsqrt.f32 %v14579_v61 }
0x1ab7   : > { %v17014_v56 = vpop.eup %17013 }
0x1ab8   : > { %v14582_v5 = vrot.slane %v17014_v56, 1  ;;  %v14585_v40 = vmul.f32 %v17014_v56, %v14566_v49 }
0x1aba   : > { %v14586_v41 = vmul.f32 %v14582_v5, %v14567_v58  ;;  %v14593_v46 = vmul.f32 %v14810_v21, %v14585_v40 }
0x1abc   : > { %v14594_v48 = vmul.f32 %v14810_v21, %v14586_v41  ;;  %v14601_v2 = vadd.f32 %v14811_v37, %v14593_v46 }
0x1abe   : > { %v14602_v34 = vadd.f32 %v14811_v37, %v14594_v48  ;;  %v14605_v39 = vadd.f32 %v14603_v47, %v14601_v2 }
0x1ac0   : > { %v14606_v0 = vadd.f32 %v14604_v63, %v14602_v34 }
0x1ac2   : > { %v14611_v43 = vrot.slane %v14606_v0, 7 }
0x1ac4   : > { %v14612_v62 = vsel %vm14554_vm5, %v14611_v43, %v14605_v39 }
0x1ac5   : > { %v14614_v13 = vsel %vm14557_vm6, %v14612_v62, 0.0 }
0x1ac6   : > { %14615 = vadd.xlane.f32.xlu1 %v14614_v13 }
0x1b4f   : > { %v14616_v24 = vpop.xlane.xlu1 %14615 }
0x1b50   : > { %v14617_v42 = vmul.f32 0.03125, %v14616_v24 }
0x1b52   : > { %v14619_v1 = vrot.slane %v14617_v42, 1  ;;  %v14622_v22 = vsub.f32 %v14605_v39, %v14617_v42 }
0x1b54   : > { %v14623_v30 = vsub.f32 %v14606_v0, %v14619_v1  ;;  %v14624_v55 = vmul.f32 %v14622_v22, %v14622_v22 }
0x1b56   : > { %v14625_v45 = vmul.f32 %v14623_v30, %v14623_v30 }
0x1b58   : > { %v14628_v14 = vrot.slane %v14625_v45, 7 }
0x1b5a   : > { %v14629_v15 = vsel %vm14554_vm5, %v14628_v14, %v14624_v55 }
0x1b5b   : > { %v14631_v18 = vsel %vm14557_vm6, %v14629_v15, 0.0 }
0x1b5c   : > { %14632 = vadd.xlane.f32.xlu1 %v14631_v18 }
0x1be5   : > { %v14633_v4 = vpop.xlane.xlu1 %14632 }
0x1be6   : > { %v14634_v10 = vmul.f32 0.03125, %v14633_v4 }
0x1be8   : > { %v14635_v28 = vadd.f32 1e-05, %v14634_v10 }
0x1bea   : > { %17015 = vrsqrt.f32 %v14635_v28 }
0x1bf7   : > { %v17016_v16 = vpop.eup %17015 }
0x1bf8   : > { %v14638_v52 = vrot.slane %v17016_v16, 1  ;;  %v14641_v12 = vmul.f32 %v17016_v16, %v14622_v22 }
0x1bfa   : > { %v14642_v8 = vmul.f32 %v14638_v52, %v14623_v30  ;;  %v14649_v11 = vmul.f32 %v14812_v44, %v14641_v12 }
0x1bfc   : > { %v14650_v7 = vmul.f32 %v14812_v44, %v14642_v8  ;;  %v14657_v51 = vadd.f32 %v14813_v25, %v14649_v11 }
0x1bfe   : > { %v14658_v60 = vadd.f32 %v14813_v25, %v14650_v7  ;;  %14660 = vst.msk [vmem:[%s697_s17] sm:$0x1] %vm14659_vm7, %v14657_v51 }
0x1c00   : > { %14661 = vst.msk [vmem:[%s697_s17 + $0x1] sm:$0x1] %vm14659_vm7, %v14658_v60 }
0x1c01   : > { %17032 = shalt.err (!%p17029_p3)
}
0x1c02   : > { %s17033_s0 = scalar_lea.hbm %s19349_s28, 32  ;;  %s17037_s4 = scalar_lea.hbm %s19413_s22, 64 }
0x1c03   : > { %p17034_p4 = scmp.ne.s32.totalorder %s19349_s28, %s17033_s0  ;;  %p17038_p9 = scmp.lt.s32.totalorder %s19349_s28, %s19413_s22 }
0x1c04   : > { %p17039_p10 = scmp.lt.s32.totalorder %s17037_s4, %s17033_s0 }
0x1c05   : > { %p17035_p7 = pnand %p17034_p4, %p17254_p5 }
0x1c06   : > { %p17040_p11 = por %p17039_p10, %p17038_p9 }
0x1c07   : > { %p17036_p8 = pneg %p17035_p7 }
0x1c09   : > { %p17041_p12 = pnand %p17040_p11, %p17036_p8 }
0x1c0b   : > { %17044 = shalt.err (!%p17041_p12)
}
0x1c0c   : > { %s17090_s16 = smov 16   ;;  %s17091_s24 = smov 1  }
0x1c0d   : > { %16902 = dma.vmem_to_hbm [thread:$0]  (%p17254_p5), %s19351_s23, 32, %s19349_s28, %s19353_s5, %s17090_s16, %s17090_s16, %s17091_s24  }
0x1c0e PF: > { %s19544_s7 = sld [smem:[#allocation8_spill]]  ;;  %p16908_p13 = scmp.ge.s32.totalorder %s17079_s15, 2 }
0x1c10   : > { %p16905_p0 = pnand %p16908_p13, %p17258_p6 }
0x1c12   : > { %p16906_p1 = pneg %p16905_p0 }
0x1c14   : > { %s14691_s26 = sand.u32 1, %s19544_s7  }
0x1c15   : > { %s14692_s0 = scalar_lea.sflag [#allocation6], %s14691_s26 }
0x1c16   : > { %17062 = dma.done.wait (%p16906_p1), %s14692_s0, 32  }
0x1c17   : > { %17064 = vsyncadd (%p16906_p1), %s14692_s0, 4294967264  ;;  %s19546_s15 = sld [smem:[#allocation10_spill]]  ;;  %s19549_s23 = smov %s17071_s1 }
0x1c18   : > { %s19547_s4 = sld [smem:[#allocation9_spill]] }
0x1c19   : > { %s19548_s5 = sld [smem:[#allocation11_spill]] }
0x1c1d   : > { %p38_p2 = scmp.ge.s32.totalorder %s19546_s15, 4  }
0x1c1e   : > { %s19550_s1 = smov %s19547_s4 }
0x1c1f   :  { %40 = sbr.rel (!%p38_p2) target bundleno = 12 (0xc), region = 158 }
0x1c24   :  { %14697 = vsyncpa [#allocation6], 1 }
0x1c25   :  { %14699 = vsyncpa [#allocation6 + $0x1], 1 }

</bundles_post_ra>
